<compile_context>
chip_gen: v7x
topology: tpu7x:2x2x1
jax: 0.10.0
libtpu: 0.0.40
codegen_flags: <defaults>
</compile_context>

<pallas_src>
import functools

import jax
import jax.numpy as jnp
from jax import lax
from jax.experimental import pallas as pl
from jax.experimental.pallas import tpu as pltpu

EPS = 1e-5
LANES = 128  # channels kept register-resident per inner chunk


def bn_relu6_dwconv_kernel(x_ref, gamma_ref, beta_ref, w_ref, o_ref, *, w_valid):
    H, Wp, C = x_ref.shape                     # Wp = W padded to >= W+1, mult of 8
    inv_n = 1.0 / (H * w_valid)

    # Valid-W mask (the zero pad columns of `a` let the sublane rolls wrap
    # zeros in at the W edges for the dw = +/-1 taps).
    col = lax.broadcasted_iota(jnp.int32, (1, Wp, 1), 1)
    valid = col < w_valid

    # Static per-128-lane chunk loop: ~5 arrays x 7 vregs live per chunk,
    # no VMEM streaming of the accumulator.
    for c0 in range(0, C, LANES):
        cs = min(LANES, C - c0)
        sl = slice(c0, c0 + cs)

        x = x_ref[:, :, sl].astype(jnp.float32)            # (H, Wp, cs)

        # ---- BatchNorm2d (training-mode batch stats), folded affine -------
        # One-pass var = E[x^2] - mean^2 (clamped >= 0). Fine for
        # activation-scale data; switch to two-pass if |mean| >> std.
        s = jnp.sum(x, axis=(0, 1), keepdims=True)          # (1, 1, cs)
        ss = jnp.sum(x * x, axis=(0, 1), keepdims=True)     # (1, 1, cs)
        mean = s * inv_n
        var = jnp.maximum(ss * inv_n - mean * mean, 0.0)
        scale = gamma_ref[:, :, sl] * lax.rsqrt(var + EPS)
        bias = beta_ref[:, :, sl] - mean * scale

        # ---- BN affine + ReLU6, pad columns forced back to zero ----------
        a = jnp.where(valid, jnp.clip(x * scale + bias, 0.0, 6.0), 0.0)

        # ---- depthwise 3x3, stride 1, zero pad 1, no bias -----------------
        wc = w_ref[:, :, sl].astype(jnp.float32)             # (3, 3, cs)

        # W shifts: native 8-sublane rolls; the zero pad column supplies the
        # conv zero-padding at both W edges.
        a_left = pltpu.roll(a, shift=1, axis=1)        # [:, w] = a[:, w-1]
        a_right = pltpu.roll(a, shift=Wp - 1, axis=1)  # [:, w] = a[:, w+1]

        zero_row = jnp.zeros((1, Wp, cs), jnp.float32)
        acc = a * wc[1:2, 1:2, :]                       # center tap init
        for t, kw in ((a_left, 0), (a, 1), (a_right, 2)):
            if kw != 1:
                acc = acc + t * wc[1:2, kw:kw + 1, :]
            up = jnp.concatenate([t[1:], zero_row], axis=0)    # [h] = t[h+1]
            dn = jnp.concatenate([zero_row, t[:-1]], axis=0)   # [h] = t[h-1]
            acc = acc + up * wc[2:3, kw:kw + 1, :] + dn * wc[0:1, kw:kw + 1, :]

        o_ref[:, :, sl] = acc.astype(o_ref.dtype)


@jax.jit
def bn_relu6_dwconv(x_nchw, gamma, beta, w_oihw):
    """x_nchw: (1, C, H, W) f32; gamma/beta: (C,); w_oihw: (C, 1, 3, 3)."""
    N, C, H, W = x_nchw.shape
    assert N == 1, "reference module uses batch size 1"

    # Pad W up to a multiple of 8 with at least one zero column.
    Wp = -(-(W + 1) // 8) * 8

    x_hwc = jnp.transpose(x_nchw[0], (1, 2, 0)).astype(jnp.float32)      # (H, W, C)
    x_hwc = jnp.pad(x_hwc, ((0, 0), (0, Wp - W), (0, 0)))                # (H, Wp, C)
    w_hwc = jnp.transpose(w_oihw[:, 0], (1, 2, 0)).astype(jnp.float32)   # (3, 3, C)
    g = gamma.reshape(1, 1, C).astype(jnp.float32)
    b = beta.reshape(1, 1, C).astype(jnp.float32)

    out_hwc = pl.pallas_call(
        functools.partial(bn_relu6_dwconv_kernel, w_valid=W),
        out_shape=jax.ShapeDtypeStruct((H, Wp, C), jnp.float32),
        grid=(1,),
        in_specs=[
            pl.BlockSpec((H, Wp, C), lambda i: (0, 0, 0)),
            pl.BlockSpec((1, 1, C), lambda i: (0, 0, 0)),
            pl.BlockSpec((1, 1, C), lambda i: (0, 0, 0)),
            pl.BlockSpec((3, 3, C), lambda i: (0, 0, 0)),
        ],
        out_specs=pl.BlockSpec((H, Wp, C), lambda i: (0, 0, 0)),
        compiler_params=pltpu.CompilerParams(
            dimension_semantics=("arbitrary",)),
        cost_estimate=pl.CostEstimate(
            flops=21 * H * W * C,
            transcendentals=C,
            bytes_accessed=2 * H * Wp * C * 4 + 11 * C * 4),
    )(x_hwc, g, b, w_hwc)

    out_hwc = out_hwc[:, :W, :]
    # Kept only to match the PyTorch NCHW interface; drop in a channels-last model.
    return jnp.transpose(out_hwc, (2, 0, 1))[None]


def _reference(x, gamma, beta, w):
    # Pure-JAX reference: training-mode BN + ReLU6 + depthwise conv.
    mean = x.mean(axis=(0, 2, 3), keepdims=True)
    var = ((x - mean) ** 2).mean(axis=(0, 2, 3), keepdims=True)
    a = (x - mean) * jax.lax.rsqrt(var + EPS)
    a = a * gamma[None, :, None, None] + beta[None, :, None, None]
    a = jnp.clip(a, 0.0, 6.0)
    return jax.lax.conv_general_dilated(
        a, w, window_strides=(1, 1), padding=((1, 1), (1, 1)),
        feature_group_count=x.shape[1],
        dimension_numbers=("NCHW", "OIHW", "NCHW"))


if __name__ == "__main__":
    # Real module shape (1, 960, 7, 7): small, exercises the W=7->8 sublane
    # padding and the 960 = 7*128 + 64 channel-chunk tail.
    N, C, H, W = 1, 960, 7, 7

    key = jax.random.PRNGKey(0)
    kx, kg, kb, kw = jax.random.split(key, 4)
    x = jax.random.normal(kx, (N, C, H, W), jnp.float32)
    gamma = 1.0 + 0.1 * jax.random.normal(kg, (C,), jnp.float32)   # BN weight
    beta = 0.1 * jax.random.normal(kb, (C,), jnp.float32)          # BN bias
    w = 0.1 * jax.random.normal(kw, (C, 1, 3, 3), jnp.float32)     # depthwise weight

    out = jax.block_until_ready(bn_relu6_dwconv(x, gamma, beta, w))

    ref = _reference(x, gamma, beta, w)
    assert out.shape == (N, C, H, W)
    assert jnp.allclose(out, ref, atol=1e-4, rtol=1e-4), "mismatch vs reference"

    print("KERNEL_OK")
</pallas_src>

<mosaic_0001>
module attributes {stable_mosaic.version = 11 : i64} {
  func.func @bn_relu6_dwconv_kernel(%arg0: i32, %arg1: memref<7x8x960xf32, #tpu.memory_space<vmem>>, %arg2: memref<1x1x960xf32, #tpu.memory_space<vmem>>, %arg3: memref<1x1x960xf32, #tpu.memory_space<vmem>>, %arg4: memref<3x3x960xf32, #tpu.memory_space<vmem>>, %arg5: memref<7x8x960xf32, #tpu.memory_space<vmem>>) attributes {dimension_semantics = [#tpu.dimension_semantics<arbitrary>], iteration_bounds = array<i64: 1>, scalar_prefetch = 0 : i64, scratch_operands = 0 : i64, tpu.core_type = #tpu.core_type<tc>, window_params = [{pipeline_mode = #tpu.pipeline_mode<synchronous>, transform_indices = @transform_0, window_bounds = array<i64: 7, 8, 960>}, {pipeline_mode = #tpu.pipeline_mode<synchronous>, transform_indices = @transform_1, window_bounds = array<i64: 1, 1, 960>}, {pipeline_mode = #tpu.pipeline_mode<synchronous>, transform_indices = @transform_2, window_bounds = array<i64: 1, 1, 960>}, {pipeline_mode = #tpu.pipeline_mode<synchronous>, transform_indices = @transform_3, window_bounds = array<i64: 3, 3, 960>}, {pipeline_mode = #tpu.pipeline_mode<synchronous>, transform_indices = @transform_4, window_bounds = array<i64: 7, 8, 960>}]} {
    %0 = tpu.iota {dimensions = array<i32: 1>} : vector<1x8x1xi32>
    %c7_i32 = arith.constant 7 : i32
    %1 = vector.broadcast %c7_i32 : i32 to vector<1x8x1xi32>
    %2 = arith.cmpi slt, %0, %1 : vector<1x8x1xi32>
    %c0 = arith.constant 0 : index
    %c0_0 = arith.constant 0 : index
    %c0_1 = arith.constant 0 : index
    %3 = vector.load %arg1[%c0, %c0_0, %c0_1] : memref<7x8x960xf32, #tpu.memory_space<vmem>>, vector<7x8x128xf32>
    %cst = arith.constant dense<0.000000e+00> : vector<128xf32>
    %4 = vector.multi_reduction <add>, %3, %cst [0, 1] : vector<7x8x128xf32> to vector<128xf32>
    %5 = vector.shape_cast %4 : vector<128xf32> to vector<1x1x128xf32>
    %6 = arith.mulf %3, %3 : vector<7x8x128xf32>
    %cst_2 = arith.constant dense<0.000000e+00> : vector<128xf32>
    %7 = vector.multi_reduction <add>, %6, %cst_2 [0, 1] : vector<7x8x128xf32> to vector<128xf32>
    %8 = vector.shape_cast %7 : vector<128xf32> to vector<1x1x128xf32>
    %cst_3 = arith.constant 0.0204081628 : f32
    %9 = vector.broadcast %cst_3 : f32 to vector<1x1x128xf32>
    %10 = arith.mulf %5, %9 : vector<1x1x128xf32>
    %cst_4 = arith.constant 0.0204081628 : f32
    %11 = vector.broadcast %cst_4 : f32 to vector<1x1x128xf32>
    %12 = arith.mulf %8, %11 : vector<1x1x128xf32>
    %13 = arith.mulf %10, %10 : vector<1x1x128xf32>
    %14 = arith.subf %12, %13 : vector<1x1x128xf32>
    %cst_5 = arith.constant 0.000000e+00 : f32
    %15 = vector.broadcast %cst_5 : f32 to vector<1x1x128xf32>
    %16 = arith.maximumf %14, %15 : vector<1x1x128xf32>
    %c0_6 = arith.constant 0 : index
    %c0_7 = arith.constant 0 : index
    %c0_8 = arith.constant 0 : index
    %17 = vector.load %arg2[%c0_6, %c0_7, %c0_8] : memref<1x1x960xf32, #tpu.memory_space<vmem>>, vector<1x1x128xf32>
    %cst_9 = arith.constant 9.99999974E-6 : f32
    %18 = vector.broadcast %cst_9 : f32 to vector<1x1x128xf32>
    %19 = arith.addf %16, %18 : vector<1x1x128xf32>
    %20 = math.rsqrt %19 : vector<1x1x128xf32>
    %21 = arith.mulf %17, %20 : vector<1x1x128xf32>
    %c0_10 = arith.constant 0 : index
    %c0_11 = arith.constant 0 : index
    %c0_12 = arith.constant 0 : index
    %22 = vector.load %arg3[%c0_10, %c0_11, %c0_12] : memref<1x1x960xf32, #tpu.memory_space<vmem>>, vector<1x1x128xf32>
    %23 = arith.mulf %10, %21 : vector<1x1x128xf32>
    %24 = arith.subf %22, %23 : vector<1x1x128xf32>
    %25 = vector.broadcast %21 : vector<1x1x128xf32> to vector<7x8x128xf32>
    %26 = arith.mulf %3, %25 : vector<7x8x128xf32>
    %27 = vector.broadcast %24 : vector<1x1x128xf32> to vector<7x8x128xf32>
    %28 = arith.addf %26, %27 : vector<7x8x128xf32>
    %cst_13 = arith.constant 0.000000e+00 : f32
    %cst_14 = arith.constant 6.000000e+00 : f32
    %29 = vector.broadcast %cst_13 : f32 to vector<7x8x128xf32>
    %30 = arith.maximumf %29, %28 : vector<7x8x128xf32>
    %31 = vector.broadcast %cst_14 : f32 to vector<7x8x128xf32>
    %32 = arith.minimumf %31, %30 : vector<7x8x128xf32>
    %cst_15 = arith.constant 0.000000e+00 : f32
    %33 = vector.shape_cast %2 : vector<1x8x1xi1> to vector<1x8x1xi1>
    %34 = vector.broadcast %33 : vector<1x8x1xi1> to vector<7x8x128xi1>
    %35 = vector.broadcast %cst_15 : f32 to vector<7x8x128xf32>
    %36 = arith.select %34, %32, %35 : vector<7x8x128xi1>, vector<7x8x128xf32>
    %c0_16 = arith.constant 0 : index
    %c0_17 = arith.constant 0 : index
    %c0_18 = arith.constant 0 : index
    %37 = vector.load %arg4[%c0_16, %c0_17, %c0_18] : memref<3x3x960xf32, #tpu.memory_space<vmem>>, vector<3x3x128xf32>
    %c1_i32 = arith.constant 1 : i32
    %38 = tpu.dynamic_rotate %36 by %c1_i32 dim 1 : vector<7x8x128xf32>, i32 -> vector<7x8x128xf32>
    %c7_i32_19 = arith.constant 7 : i32
    %39 = tpu.dynamic_rotate %36 by %c7_i32_19 dim 1 : vector<7x8x128xf32>, i32 -> vector<7x8x128xf32>
    %cst_20 = arith.constant 0.000000e+00 : f32
    %40 = vector.broadcast %cst_20 : f32 to vector<1x8x128xf32>
    %41 = vector.extract_strided_slice %37 {offsets = [1, 1, 0], sizes = [1, 1, 128], strides = [1, 1, 1]} : vector<3x3x128xf32> to vector<1x1x128xf32>
    %42 = vector.broadcast %41 : vector<1x1x128xf32> to vector<7x8x128xf32>
    %43 = arith.mulf %36, %42 : vector<7x8x128xf32>
    %44 = vector.extract_strided_slice %37 {offsets = [1, 0, 0], sizes = [1, 1, 128], strides = [1, 1, 1]} : vector<3x3x128xf32> to vector<1x1x128xf32>
    %45 = vector.broadcast %44 : vector<1x1x128xf32> to vector<7x8x128xf32>
    %46 = arith.mulf %38, %45 : vector<7x8x128xf32>
    %47 = arith.addf %43, %46 : vector<7x8x128xf32>
    %48 = vector.extract_strided_slice %38 {offsets = [1, 0, 0], sizes = [6, 8, 128], strides = [1, 1, 1]} : vector<7x8x128xf32> to vector<6x8x128xf32>
    %49 = tpu.concatenate %48, %40 in 0 : vector<6x8x128xf32>, vector<1x8x128xf32> -> vector<7x8x128xf32>
    %50 = vector.extract_strided_slice %38 {offsets = [0, 0, 0], sizes = [6, 8, 128], strides = [1, 1, 1]} : vector<7x8x128xf32> to vector<6x8x128xf32>
    %51 = tpu.concatenate %40, %50 in 0 : vector<1x8x128xf32>, vector<6x8x128xf32> -> vector<7x8x128xf32>
    %52 = vector.extract_strided_slice %37 {offsets = [2, 0, 0], sizes = [1, 1, 128], strides = [1, 1, 1]} : vector<3x3x128xf32> to vector<1x1x128xf32>
    %53 = vector.broadcast %52 : vector<1x1x128xf32> to vector<7x8x128xf32>
    %54 = arith.mulf %49, %53 : vector<7x8x128xf32>
    %55 = arith.addf %47, %54 : vector<7x8x128xf32>
    %56 = vector.extract_strided_slice %37 {offsets = [0, 0, 0], sizes = [1, 1, 128], strides = [1, 1, 1]} : vector<3x3x128xf32> to vector<1x1x128xf32>
    %57 = vector.broadcast %56 : vector<1x1x128xf32> to vector<7x8x128xf32>
    %58 = arith.mulf %51, %57 : vector<7x8x128xf32>
    %59 = arith.addf %55, %58 : vector<7x8x128xf32>
    %60 = vector.extract_strided_slice %36 {offsets = [1, 0, 0], sizes = [6, 8, 128], strides = [1, 1, 1]} : vector<7x8x128xf32> to vector<6x8x128xf32>
    %61 = tpu.concatenate %60, %40 in 0 : vector<6x8x128xf32>, vector<1x8x128xf32> -> vector<7x8x128xf32>
    %62 = vector.extract_strided_slice %36 {offsets = [0, 0, 0], sizes = [6, 8, 128], strides = [1, 1, 1]} : vector<7x8x128xf32> to vector<6x8x128xf32>
    %63 = tpu.concatenate %40, %62 in 0 : vector<1x8x128xf32>, vector<6x8x128xf32> -> vector<7x8x128xf32>
    %64 = vector.extract_strided_slice %37 {offsets = [2, 1, 0], sizes = [1, 1, 128], strides = [1, 1, 1]} : vector<3x3x128xf32> to vector<1x1x128xf32>
    %65 = vector.broadcast %64 : vector<1x1x128xf32> to vector<7x8x128xf32>
    %66 = arith.mulf %61, %65 : vector<7x8x128xf32>
    %67 = arith.addf %59, %66 : vector<7x8x128xf32>
    %68 = vector.extract_strided_slice %37 {offsets = [0, 1, 0], sizes = [1, 1, 128], strides = [1, 1, 1]} : vector<3x3x128xf32> to vector<1x1x128xf32>
    %69 = vector.broadcast %68 : vector<1x1x128xf32> to vector<7x8x128xf32>
    %70 = arith.mulf %63, %69 : vector<7x8x128xf32>
    %71 = arith.addf %67, %70 : vector<7x8x128xf32>
    %72 = vector.extract_strided_slice %37 {offsets = [1, 2, 0], sizes = [1, 1, 128], strides = [1, 1, 1]} : vector<3x3x128xf32> to vector<1x1x128xf32>
    %73 = vector.broadcast %72 : vector<1x1x128xf32> to vector<7x8x128xf32>
    %74 = arith.mulf %39, %73 : vector<7x8x128xf32>
    %75 = arith.addf %71, %74 : vector<7x8x128xf32>
    %76 = vector.extract_strided_slice %39 {offsets = [1, 0, 0], sizes = [6, 8, 128], strides = [1, 1, 1]} : vector<7x8x128xf32> to vector<6x8x128xf32>
    %77 = tpu.concatenate %76, %40 in 0 : vector<6x8x128xf32>, vector<1x8x128xf32> -> vector<7x8x128xf32>
    %78 = vector.extract_strided_slice %39 {offsets = [0, 0, 0], sizes = [6, 8, 128], strides = [1, 1, 1]} : vector<7x8x128xf32> to vector<6x8x128xf32>
    %79 = tpu.concatenate %40, %78 in 0 : vector<1x8x128xf32>, vector<6x8x128xf32> -> vector<7x8x128xf32>
    %80 = vector.extract_strided_slice %37 {offsets = [2, 2, 0], sizes = [1, 1, 128], strides = [1, 1, 1]} : vector<3x3x128xf32> to vector<1x1x128xf32>
    %81 = vector.broadcast %80 : vector<1x1x128xf32> to vector<7x8x128xf32>
    %82 = arith.mulf %77, %81 : vector<7x8x128xf32>
    %83 = arith.addf %75, %82 : vector<7x8x128xf32>
    %84 = vector.extract_strided_slice %37 {offsets = [0, 2, 0], sizes = [1, 1, 128], strides = [1, 1, 1]} : vector<3x3x128xf32> to vector<1x1x128xf32>
    %85 = vector.broadcast %84 : vector<1x1x128xf32> to vector<7x8x128xf32>
    %86 = arith.mulf %79, %85 : vector<7x8x128xf32>
    %87 = arith.addf %83, %86 : vector<7x8x128xf32>
    %c0_21 = arith.constant 0 : index
    %c0_22 = arith.constant 0 : index
    %c0_23 = arith.constant 0 : index
    %88 = vector.load %arg5[%c0_21, %c0_22, %c0_23] : memref<7x8x960xf32, #tpu.memory_space<vmem>>, vector<7x8x128xf32>
    tpu.vector_store %arg5[%c0_21, %c0_22, %c0_23], %87 {strides = array<i32>} : memref<7x8x960xf32, #tpu.memory_space<vmem>>, vector<7x8x128xf32>,
    %c0_24 = arith.constant 0 : index
    %c0_25 = arith.constant 0 : index
    %c128 = arith.constant 128 : index
    %89 = vector.load %arg1[%c0_24, %c0_25, %c128] : memref<7x8x960xf32, #tpu.memory_space<vmem>>, vector<7x8x128xf32>
    %cst_26 = arith.constant dense<0.000000e+00> : vector<128xf32>
    %90 = vector.multi_reduction <add>, %89, %cst_26 [0, 1] : vector<7x8x128xf32> to vector<128xf32>
    %91 = vector.shape_cast %90 : vector<128xf32> to vector<1x1x128xf32>
    %92 = arith.mulf %89, %89 : vector<7x8x128xf32>
    %cst_27 = arith.constant dense<0.000000e+00> : vector<128xf32>
    %93 = vector.multi_reduction <add>, %92, %cst_27 [0, 1] : vector<7x8x128xf32> to vector<128xf32>
    %94 = vector.shape_cast %93 : vector<128xf32> to vector<1x1x128xf32>
    %cst_28 = arith.constant 0.0204081628 : f32
    %95 = vector.broadcast %cst_28 : f32 to vector<1x1x128xf32>
    %96 = arith.mulf %91, %95 : vector<1x1x128xf32>
    %cst_29 = arith.constant 0.0204081628 : f32
    %97 = vector.broadcast %cst_29 : f32 to vector<1x1x128xf32>
    %98 = arith.mulf %94, %97 : vector<1x1x128xf32>
    %99 = arith.mulf %96, %96 : vector<1x1x128xf32>
    %100 = arith.subf %98, %99 : vector<1x1x128xf32>
    %cst_30 = arith.constant 0.000000e+00 : f32
    %101 = vector.broadcast %cst_30 : f32 to vector<1x1x128xf32>
    %102 = arith.maximumf %100, %101 : vector<1x1x128xf32>
    %c0_31 = arith.constant 0 : index
    %c0_32 = arith.constant 0 : index
    %c128_33 = arith.constant 128 : index
    %103 = vector.load %arg2[%c0_31, %c0_32, %c128_33] : memref<1x1x960xf32, #tpu.memory_space<vmem>>, vector<1x1x128xf32>
    %cst_34 = arith.constant 9.99999974E-6 : f32
    %104 = vector.broadcast %cst_34 : f32 to vector<1x1x128xf32>
    %105 = arith.addf %102, %104 : vector<1x1x128xf32>
    %106 = math.rsqrt %105 : vector<1x1x128xf32>
    %107 = arith.mulf %103, %106 : vector<1x1x128xf32>
    %c0_35 = arith.constant 0 : index
    %c0_36 = arith.constant 0 : index
    %c128_37 = arith.constant 128 : index
    %108 = vector.load %arg3[%c0_35, %c0_36, %c128_37] : memref<1x1x960xf32, #tpu.memory_space<vmem>>, vector<1x1x128xf32>
    %109 = arith.mulf %96, %107 : vector<1x1x128xf32>
    %110 = arith.subf %108, %109 : vector<1x1x128xf32>
    %111 = vector.broadcast %107 : vector<1x1x128xf32> to vector<7x8x128xf32>
    %112 = arith.mulf %89, %111 : vector<7x8x128xf32>
    %113 = vector.broadcast %110 : vector<1x1x128xf32> to vector<7x8x128xf32>
    %114 = arith.addf %112, %113 : vector<7x8x128xf32>
    %cst_38 = arith.constant 0.000000e+00 : f32
    %cst_39 = arith.constant 6.000000e+00 : f32
    %115 = vector.broadcast %cst_38 : f32 to vector<7x8x128xf32>
    %116 = arith.maximumf %115, %114 : vector<7x8x128xf32>
    %117 = vector.broadcast %cst_39 : f32 to vector<7x8x128xf32>
    %118 = arith.minimumf %117, %116 : vector<7x8x128xf32>
    %cst_40 = arith.constant 0.000000e+00 : f32
    %119 = vector.shape_cast %2 : vector<1x8x1xi1> to vector<1x8x1xi1>
    %120 = vector.broadcast %119 : vector<1x8x1xi1> to vector<7x8x128xi1>
    %121 = vector.broadcast %cst_40 : f32 to vector<7x8x128xf32>
    %122 = arith.select %120, %118, %121 : vector<7x8x128xi1>, vector<7x8x128xf32>
    %c0_41 = arith.constant 0 : index
    %c0_42 = arith.constant 0 : index
    %c128_43 = arith.constant 128 : index
    %123 = vector.load %arg4[%c0_41, %c0_42, %c128_43] : memref<3x3x960xf32, #tpu.memory_space<vmem>>, vector<3x3x128xf32>
    %c1_i32_44 = arith.constant 1 : i32
    %124 = tpu.dynamic_rotate %122 by %c1_i32_44 dim 1 : vector<7x8x128xf32>, i32 -> vector<7x8x128xf32>
    %c7_i32_45 = arith.constant 7 : i32
    %125 = tpu.dynamic_rotate %122 by %c7_i32_45 dim 1 : vector<7x8x128xf32>, i32 -> vector<7x8x128xf32>
    %cst_46 = arith.constant 0.000000e+00 : f32
    %126 = vector.broadcast %cst_46 : f32 to vector<1x8x128xf32>
    %127 = vector.extract_strided_slice %123 {offsets = [1, 1, 0], sizes = [1, 1, 128], strides = [1, 1, 1]} : vector<3x3x128xf32> to vector<1x1x128xf32>
    %128 = vector.broadcast %127 : vector<1x1x128xf32> to vector<7x8x128xf32>
    %129 = arith.mulf %122, %128 : vector<7x8x128xf32>
    %130 = vector.extract_strided_slice %123 {offsets = [1, 0, 0], sizes = [1, 1, 128], strides = [1, 1, 1]} : vector<3x3x128xf32> to vector<1x1x128xf32>
    %131 = vector.broadcast %130 : vector<1x1x128xf32> to vector<7x8x128xf32>
    %132 = arith.mulf %124, %131 : vector<7x8x128xf32>
    %133 = arith.addf %129, %132 : vector<7x8x128xf32>
    %134 = vector.extract_strided_slice %124 {offsets = [1, 0, 0], sizes = [6, 8, 128], strides = [1, 1, 1]} : vector<7x8x128xf32> to vector<6x8x128xf32>
    %135 = tpu.concatenate %134, %126 in 0 : vector<6x8x128xf32>, vector<1x8x128xf32> -> vector<7x8x128xf32>
    %136 = vector.extract_strided_slice %124 {offsets = [0, 0, 0], sizes = [6, 8, 128], strides = [1, 1, 1]} : vector<7x8x128xf32> to vector<6x8x128xf32>
    %137 = tpu.concatenate %126, %136 in 0 : vector<1x8x128xf32>, vector<6x8x128xf32> -> vector<7x8x128xf32>
    %138 = vector.extract_strided_slice %123 {offsets = [2, 0, 0], sizes = [1, 1, 128], strides = [1, 1, 1]} : vector<3x3x128xf32> to vector<1x1x128xf32>
    %139 = vector.broadcast %138 : vector<1x1x128xf32> to vector<7x8x128xf32>
    %140 = arith.mulf %135, %139 : vector<7x8x128xf32>
    %141 = arith.addf %133, %140 : vector<7x8x128xf32>
    %142 = vector.extract_strided_slice %123 {offsets = [0, 0, 0], sizes = [1, 1, 128], strides = [1, 1, 1]} : vector<3x3x128xf32> to vector<1x1x128xf32>
    %143 = vector.broadcast %142 : vector<1x1x128xf32> to vector<7x8x128xf32>
    %144 = arith.mulf %137, %143 : vector<7x8x128xf32>
    %145 = arith.addf %141, %144 : vector<7x8x128xf32>
    %146 = vector.extract_strided_slice %122 {offsets = [1, 0, 0], sizes = [6, 8, 128], strides = [1, 1, 1]} : vector<7x8x128xf32> to vector<6x8x128xf32>
    %147 = tpu.concatenate %146, %126 in 0 : vector<6x8x128xf32>, vector<1x8x128xf32> -> vector<7x8x128xf32>
    %148 = vector.extract_strided_slice %122 {offsets = [0, 0, 0], sizes = [6, 8, 128], strides = [1, 1, 1]} : vector<7x8x128xf32> to vector<6x8x128xf32>
    %149 = tpu.concatenate %126, %148 in 0 : vector<1x8x128xf32>, vector<6x8x128xf32> -> vector<7x8x128xf32>
    %150 = vector.extract_strided_slice %123 {offsets = [2, 1, 0], sizes = [1, 1, 128], strides = [1, 1, 1]} : vector<3x3x128xf32> to vector<1x1x128xf32>
    %151 = vector.broadcast %150 : vector<1x1x128xf32> to vector<7x8x128xf32>
    %152 = arith.mulf %147, %151 : vector<7x8x128xf32>
    %153 = arith.addf %145, %152 : vector<7x8x128xf32>
    %154 = vector.extract_strided_slice %123 {offsets = [0, 1, 0], sizes = [1, 1, 128], strides = [1, 1, 1]} : vector<3x3x128xf32> to vector<1x1x128xf32>
    %155 = vector.broadcast %154 : vector<1x1x128xf32> to vector<7x8x128xf32>
    %156 = arith.mulf %149, %155 : vector<7x8x128xf32>
    %157 = arith.addf %153, %156 : vector<7x8x128xf32>
    %158 = vector.extract_strided_slice %123 {offsets = [1, 2, 0], sizes = [1, 1, 128], strides = [1, 1, 1]} : vector<3x3x128xf32> to vector<1x1x128xf32>
    %159 = vector.broadcast %158 : vector<1x1x128xf32> to vector<7x8x128xf32>
    %160 = arith.mulf %125, %159 : vector<7x8x128xf32>
    %161 = arith.addf %157, %160 : vector<7x8x128xf32>
    %162 = vector.extract_strided_slice %125 {offsets = [1, 0, 0], sizes = [6, 8, 128], strides = [1, 1, 1]} : vector<7x8x128xf32> to vector<6x8x128xf32>
    %163 = tpu.concatenate %162, %126 in 0 : vector<6x8x128xf32>, vector<1x8x128xf32> -> vector<7x8x128xf32>
    %164 = vector.extract_strided_slice %125 {offsets = [0, 0, 0], sizes = [6, 8, 128], strides = [1, 1, 1]} : vector<7x8x128xf32> to vector<6x8x128xf32>
    %165 = tpu.concatenate %126, %164 in 0 : vector<1x8x128xf32>, vector<6x8x128xf32> -> vector<7x8x128xf32>
    %166 = vector.extract_strided_slice %123 {offsets = [2, 2, 0], sizes = [1, 1, 128], strides = [1, 1, 1]} : vector<3x3x128xf32> to vector<1x1x128xf32>
    %167 = vector.broadcast %166 : vector<1x1x128xf32> to vector<7x8x128xf32>
    %168 = arith.mulf %163, %167 : vector<7x8x128xf32>
    %169 = arith.addf %161, %168 : vector<7x8x128xf32>
    %170 = vector.extract_strided_slice %123 {offsets = [0, 2, 0], sizes = [1, 1, 128], strides = [1, 1, 1]} : vector<3x3x128xf32> to vector<1x1x128xf32>
    %171 = vector.broadcast %170 : vector<1x1x128xf32> to vector<7x8x128xf32>
    %172 = arith.mulf %165, %171 : vector<7x8x128xf32>
    %173 = arith.addf %169, %172 : vector<7x8x128xf32>
    %c0_47 = arith.constant 0 : index
    %c0_48 = arith.constant 0 : index
    %c128_49 = arith.constant 128 : index
    %174 = vector.load %arg5[%c0_47, %c0_48, %c128_49] : memref<7x8x960xf32, #tpu.memory_space<vmem>>, vector<7x8x128xf32>
    tpu.vector_store %arg5[%c0_47, %c0_48, %c128_49], %173 {strides = array<i32>} : memref<7x8x960xf32, #tpu.memory_space<vmem>>, vector<7x8x128xf32>,
    %c0_50 = arith.constant 0 : index
    %c0_51 = arith.constant 0 : index
    %c256 = arith.constant 256 : index
    %175 = vector.load %arg1[%c0_50, %c0_51, %c256] : memref<7x8x960xf32, #tpu.memory_space<vmem>>, vector<7x8x128xf32>
    %cst_52 = arith.constant dense<0.000000e+00> : vector<128xf32>
    %176 = vector.multi_reduction <add>, %175, %cst_52 [0, 1] : vector<7x8x128xf32> to vector<128xf32>
    %177 = vector.shape_cast %176 : vector<128xf32> to vector<1x1x128xf32>
    %178 = arith.mulf %175, %175 : vector<7x8x128xf32>
    %cst_53 = arith.constant dense<0.000000e+00> : vector<128xf32>
    %179 = vector.multi_reduction <add>, %178, %cst_53 [0, 1] : vector<7x8x128xf32> to vector<128xf32>
    %180 = vector.shape_cast %179 : vector<128xf32> to vector<1x1x128xf32>
    %cst_54 = arith.constant 0.0204081628 : f32
    %181 = vector.broadcast %cst_54 : f32 to vector<1x1x128xf32>
    %182 = arith.mulf %177, %181 : vector<1x1x128xf32>
    %cst_55 = arith.constant 0.0204081628 : f32
    %183 = vector.broadcast %cst_55 : f32 to vector<1x1x128xf32>
    %184 = arith.mulf %180, %183 : vector<1x1x128xf32>
    %185 = arith.mulf %182, %182 : vector<1x1x128xf32>
    %186 = arith.subf %184, %185 : vector<1x1x128xf32>
    %cst_56 = arith.constant 0.000000e+00 : f32
    %187 = vector.broadcast %cst_56 : f32 to vector<1x1x128xf32>
    %188 = arith.maximumf %186, %187 : vector<1x1x128xf32>
    %c0_57 = arith.constant 0 : index
    %c0_58 = arith.constant 0 : index
    %c256_59 = arith.constant 256 : index
    %189 = vector.load %arg2[%c0_57, %c0_58, %c256_59] : memref<1x1x960xf32, #tpu.memory_space<vmem>>, vector<1x1x128xf32>
    %cst_60 = arith.constant 9.99999974E-6 : f32
    %190 = vector.broadcast %cst_60 : f32 to vector<1x1x128xf32>
    %191 = arith.addf %188, %190 : vector<1x1x128xf32>
    %192 = math.rsqrt %191 : vector<1x1x128xf32>
    %193 = arith.mulf %189, %192 : vector<1x1x128xf32>
    %c0_61 = arith.constant 0 : index
    %c0_62 = arith.constant 0 : index
    %c256_63 = arith.constant 256 : index
    %194 = vector.load %arg3[%c0_61, %c0_62, %c256_63] : memref<1x1x960xf32, #tpu.memory_space<vmem>>, vector<1x1x128xf32>
    %195 = arith.mulf %182, %193 : vector<1x1x128xf32>
    %196 = arith.subf %194, %195 : vector<1x1x128xf32>
    %197 = vector.broadcast %193 : vector<1x1x128xf32> to vector<7x8x128xf32>
    %198 = arith.mulf %175, %197 : vector<7x8x128xf32>
    %199 = vector.broadcast %196 : vector<1x1x128xf32> to vector<7x8x128xf32>
    %200 = arith.addf %198, %199 : vector<7x8x128xf32>
    %cst_64 = arith.constant 0.000000e+00 : f32
    %cst_65 = arith.constant 6.000000e+00 : f32
    %201 = vector.broadcast %cst_64 : f32 to vector<7x8x128xf32>
    %202 = arith.maximumf %201, %200 : vector<7x8x128xf32>
    %203 = vector.broadcast %cst_65 : f32 to vector<7x8x128xf32>
    %204 = arith.minimumf %203, %202 : vector<7x8x128xf32>
    %cst_66 = arith.constant 0.000000e+00 : f32
    %205 = vector.shape_cast %2 : vector<1x8x1xi1> to vector<1x8x1xi1>
    %206 = vector.broadcast %205 : vector<1x8x1xi1> to vector<7x8x128xi1>
    %207 = vector.broadcast %cst_66 : f32 to vector<7x8x128xf32>
    %208 = arith.select %206, %204, %207 : vector<7x8x128xi1>, vector<7x8x128xf32>
    %c0_67 = arith.constant 0 : index
    %c0_68 = arith.constant 0 : index
    %c256_69 = arith.constant 256 : index
    %209 = vector.load %arg4[%c0_67, %c0_68, %c256_69] : memref<3x3x960xf32, #tpu.memory_space<vmem>>, vector<3x3x128xf32>
    %c1_i32_70 = arith.constant 1 : i32
    %210 = tpu.dynamic_rotate %208 by %c1_i32_70 dim 1 : vector<7x8x128xf32>, i32 -> vector<7x8x128xf32>
    %c7_i32_71 = arith.constant 7 : i32
    %211 = tpu.dynamic_rotate %208 by %c7_i32_71 dim 1 : vector<7x8x128xf32>, i32 -> vector<7x8x128xf32>
    %cst_72 = arith.constant 0.000000e+00 : f32
    %212 = vector.broadcast %cst_72 : f32 to vector<1x8x128xf32>
    %213 = vector.extract_strided_slice %209 {offsets = [1, 1, 0], sizes = [1, 1, 128], strides = [1, 1, 1]} : vector<3x3x128xf32> to vector<1x1x128xf32>
    %214 = vector.broadcast %213 : vector<1x1x128xf32> to vector<7x8x128xf32>
    %215 = arith.mulf %208, %214 : vector<7x8x128xf32>
    %216 = vector.extract_strided_slice %209 {offsets = [1, 0, 0], sizes = [1, 1, 128], strides = [1, 1, 1]} : vector<3x3x128xf32> to vector<1x1x128xf32>
    %217 = vector.broadcast %216 : vector<1x1x128xf32> to vector<7x8x128xf32>
    %218 = arith.mulf %210, %217 : vector<7x8x128xf32>
    %219 = arith.addf %215, %218 : vector<7x8x128xf32>
    %220 = vector.extract_strided_slice %210 {offsets = [1, 0, 0], sizes = [6, 8, 128], strides = [1, 1, 1]} : vector<7x8x128xf32> to vector<6x8x128xf32>
    %221 = tpu.concatenate %220, %212 in 0 : vector<6x8x128xf32>, vector<1x8x128xf32> -> vector<7x8x128xf32>
    %222 = vector.extract_strided_slice %210 {offsets = [0, 0, 0], sizes = [6, 8, 128], strides = [1, 1, 1]} : vector<7x8x128xf32> to vector<6x8x128xf32>
    %223 = tpu.concatenate %212, %222 in 0 : vector<1x8x128xf32>, vector<6x8x128xf32> -> vector<7x8x128xf32>
    %224 = vector.extract_strided_slice %209 {offsets = [2, 0, 0], sizes = [1, 1, 128], strides = [1, 1, 1]} : vector<3x3x128xf32> to vector<1x1x128xf32>
    %225 = vector.broadcast %224 : vector<1x1x128xf32> to vector<7x8x128xf32>
    %226 = arith.mulf %221, %225 : vector<7x8x128xf32>
    %227 = arith.addf %219, %226 : vector<7x8x128xf32>
    %228 = vector.extract_strided_slice %209 {offsets = [0, 0, 0], sizes = [1, 1, 128], strides = [1, 1, 1]} : vector<3x3x128xf32> to vector<1x1x128xf32>
    %229 = vector.broadcast %228 : vector<1x1x128xf32> to vector<7x8x128xf32>
    %230 = arith.mulf %223, %229 : vector<7x8x128xf32>
    %231 = arith.addf %227, %230 : vector<7x8x128xf32>
    %232 = vector.extract_strided_slice %208 {offsets = [1, 0, 0], sizes = [6, 8, 128], strides = [1, 1, 1]} : vector<7x8x128xf32> to vector<6x8x128xf32>
    %233 = tpu.concatenate %232, %212 in 0 : vector<6x8x128xf32>, vector<1x8x128xf32> -> vector<7x8x128xf32>
    %234 = vector.extract_strided_slice %208 {offsets = [0, 0, 0], sizes = [6, 8, 128], strides = [1, 1, 1]} : vector<7x8x128xf32> to vector<6x8x128xf32>
    %235 = tpu.concatenate %212, %234 in 0 : vector<1x8x128xf32>, vector<6x8x128xf32> -> vector<7x8x128xf32>
    %236 = vector.extract_strided_slice %209 {offsets = [2, 1, 0], sizes = [1, 1, 128], strides = [1, 1, 1]} : vector<3x3x128xf32> to vector<1x1x128xf32>
    %237 = vector.broadcast %236 : vector<1x1x128xf32> to vector<7x8x128xf32>
    %238 = arith.mulf %233, %237 : vector<7x8x128xf32>
    %239 = arith.addf %231, %238 : vector<7x8x128xf32>
    %240 = vector.extract_strided_slice %209 {offsets = [0, 1, 0], sizes = [1, 1, 128], strides = [1, 1, 1]} : vector<3x3x128xf32> to vector<1x1x128xf32>
    %241 = vector.broadcast %240 : vector<1x1x128xf32> to vector<7x8x128xf32>
    %242 = arith.mulf %235, %241 : vector<7x8x128xf32>
    %243 = arith.addf %239, %242 : vector<7x8x128xf32>
    %244 = vector.extract_strided_slice %209 {offsets = [1, 2, 0], sizes = [1, 1, 128], strides = [1, 1, 1]} : vector<3x3x128xf32> to vector<1x1x128xf32>
    %245 = vector.broadcast %244 : vector<1x1x128xf32> to vector<7x8x128xf32>
    %246 = arith.mulf %211, %245 : vector<7x8x128xf32>
    %247 = arith.addf %243, %246 : vector<7x8x128xf32>
    %248 = vector.extract_strided_slice %211 {offsets = [1, 0, 0], sizes = [6, 8, 128], strides = [1, 1, 1]} : vector<7x8x128xf32> to vector<6x8x128xf32>
    %249 = tpu.concatenate %248, %212 in 0 : vector<6x8x128xf32>, vector<1x8x128xf32> -> vector<7x8x128xf32>
    %250 = vector.extract_strided_slice %211 {offsets = [0, 0, 0], sizes = [6, 8, 128], strides = [1, 1, 1]} : vector<7x8x128xf32> to vector<6x8x128xf32>
    %251 = tpu.concatenate %212, %250 in 0 : vector<1x8x128xf32>, vector<6x8x128xf32> -> vector<7x8x128xf32>
    %252 = vector.extract_strided_slice %209 {offsets = [2, 2, 0], sizes = [1, 1, 128], strides = [1, 1, 1]} : vector<3x3x128xf32> to vector<1x1x128xf32>
    %253 = vector.broadcast %252 : vector<1x1x128xf32> to vector<7x8x128xf32>
    %254 = arith.mulf %249, %253 : vector<7x8x128xf32>
    %255 = arith.addf %247, %254 : vector<7x8x128xf32>
    %256 = vector.extract_strided_slice %209 {offsets = [0, 2, 0], sizes = [1, 1, 128], strides = [1, 1, 1]} : vector<3x3x128xf32> to vector<1x1x128xf32>
    %257 = vector.broadcast %256 : vector<1x1x128xf32> to vector<7x8x128xf32>
    %258 = arith.mulf %251, %257 : vector<7x8x128xf32>
    %259 = arith.addf %255, %258 : vector<7x8x128xf32>
    %c0_73 = arith.constant 0 : index
    %c0_74 = arith.constant 0 : index
    %c256_75 = arith.constant 256 : index
    %260 = vector.load %arg5[%c0_73, %c0_74, %c256_75] : memref<7x8x960xf32, #tpu.memory_space<vmem>>, vector<7x8x128xf32>
    tpu.vector_store %arg5[%c0_73, %c0_74, %c256_75], %259 {strides = array<i32>} : memref<7x8x960xf32, #tpu.memory_space<vmem>>, vector<7x8x128xf32>,
    %c0_76 = arith.constant 0 : index
    %c0_77 = arith.constant 0 : index
    %c384 = arith.constant 384 : index
    %261 = vector.load %arg1[%c0_76, %c0_77, %c384] : memref<7x8x960xf32, #tpu.memory_space<vmem>>, vector<7x8x128xf32>
    %cst_78 = arith.constant dense<0.000000e+00> : vector<128xf32>
    %262 = vector.multi_reduction <add>, %261, %cst_78 [0, 1] : vector<7x8x128xf32> to vector<128xf32>
    %263 = vector.shape_cast %262 : vector<128xf32> to vector<1x1x128xf32>
    %264 = arith.mulf %261, %261 : vector<7x8x128xf32>
    %cst_79 = arith.constant dense<0.000000e+00> : vector<128xf32>
    %265 = vector.multi_reduction <add>, %264, %cst_79 [0, 1] : vector<7x8x128xf32> to vector<128xf32>
    %266 = vector.shape_cast %265 : vector<128xf32> to vector<1x1x128xf32>
    %cst_80 = arith.constant 0.0204081628 : f32
    %267 = vector.broadcast %cst_80 : f32 to vector<1x1x128xf32>
    %268 = arith.mulf %263, %267 : vector<1x1x128xf32>
    %cst_81 = arith.constant 0.0204081628 : f32
    %269 = vector.broadcast %cst_81 : f32 to vector<1x1x128xf32>
    %270 = arith.mulf %266, %269 : vector<1x1x128xf32>
    %271 = arith.mulf %268, %268 : vector<1x1x128xf32>
    %272 = arith.subf %270, %271 : vector<1x1x128xf32>
    %cst_82 = arith.constant 0.000000e+00 : f32
    %273 = vector.broadcast %cst_82 : f32 to vector<1x1x128xf32>
    %274 = arith.maximumf %272, %273 : vector<1x1x128xf32>
    %c0_83 = arith.constant 0 : index
    %c0_84 = arith.constant 0 : index
    %c384_85 = arith.constant 384 : index
    %275 = vector.load %arg2[%c0_83, %c0_84, %c384_85] : memref<1x1x960xf32, #tpu.memory_space<vmem>>, vector<1x1x128xf32>
    %cst_86 = arith.constant 9.99999974E-6 : f32
    %276 = vector.broadcast %cst_86 : f32 to vector<1x1x128xf32>
    %277 = arith.addf %274, %276 : vector<1x1x128xf32>
    %278 = math.rsqrt %277 : vector<1x1x128xf32>
    %279 = arith.mulf %275, %278 : vector<1x1x128xf32>
    %c0_87 = arith.constant 0 : index
    %c0_88 = arith.constant 0 : index
    %c384_89 = arith.constant 384 : index
    %280 = vector.load %arg3[%c0_87, %c0_88, %c384_89] : memref<1x1x960xf32, #tpu.memory_space<vmem>>, vector<1x1x128xf32>
    %281 = arith.mulf %268, %279 : vector<1x1x128xf32>
    %282 = arith.subf %280, %281 : vector<1x1x128xf32>
    %283 = vector.broadcast %279 : vector<1x1x128xf32> to vector<7x8x128xf32>
    %284 = arith.mulf %261, %283 : vector<7x8x128xf32>
    %285 = vector.broadcast %282 : vector<1x1x128xf32> to vector<7x8x128xf32>
    %286 = arith.addf %284, %285 : vector<7x8x128xf32>
    %cst_90 = arith.constant 0.000000e+00 : f32
    %cst_91 = arith.constant 6.000000e+00 : f32
    %287 = vector.broadcast %cst_90 : f32 to vector<7x8x128xf32>
    %288 = arith.maximumf %287, %286 : vector<7x8x128xf32>
    %289 = vector.broadcast %cst_91 : f32 to vector<7x8x128xf32>
    %290 = arith.minimumf %289, %288 : vector<7x8x128xf32>
    %cst_92 = arith.constant 0.000000e+00 : f32
    %291 = vector.shape_cast %2 : vector<1x8x1xi1> to vector<1x8x1xi1>
    %292 = vector.broadcast %291 : vector<1x8x1xi1> to vector<7x8x128xi1>
    %293 = vector.broadcast %cst_92 : f32 to vector<7x8x128xf32>
    %294 = arith.select %292, %290, %293 : vector<7x8x128xi1>, vector<7x8x128xf32>
    %c0_93 = arith.constant 0 : index
    %c0_94 = arith.constant 0 : index
    %c384_95 = arith.constant 384 : index
    %295 = vector.load %arg4[%c0_93, %c0_94, %c384_95] : memref<3x3x960xf32, #tpu.memory_space<vmem>>, vector<3x3x128xf32>
    %c1_i32_96 = arith.constant 1 : i32
    %296 = tpu.dynamic_rotate %294 by %c1_i32_96 dim 1 : vector<7x8x128xf32>, i32 -> vector<7x8x128xf32>
    %c7_i32_97 = arith.constant 7 : i32
    %297 = tpu.dynamic_rotate %294 by %c7_i32_97 dim 1 : vector<7x8x128xf32>, i32 -> vector<7x8x128xf32>
    %cst_98 = arith.constant 0.000000e+00 : f32
    %298 = vector.broadcast %cst_98 : f32 to vector<1x8x128xf32>
    %299 = vector.extract_strided_slice %295 {offsets = [1, 1, 0], sizes = [1, 1, 128], strides = [1, 1, 1]} : vector<3x3x128xf32> to vector<1x1x128xf32>
    %300 = vector.broadcast %299 : vector<1x1x128xf32> to vector<7x8x128xf32>
    %301 = arith.mulf %294, %300 : vector<7x8x128xf32>
    %302 = vector.extract_strided_slice %295 {offsets = [1, 0, 0], sizes = [1, 1, 128], strides = [1, 1, 1]} : vector<3x3x128xf32> to vector<1x1x128xf32>
    %303 = vector.broadcast %302 : vector<1x1x128xf32> to vector<7x8x128xf32>
    %304 = arith.mulf %296, %303 : vector<7x8x128xf32>
    %305 = arith.addf %301, %304 : vector<7x8x128xf32>
    %306 = vector.extract_strided_slice %296 {offsets = [1, 0, 0], sizes = [6, 8, 128], strides = [1, 1, 1]} : vector<7x8x128xf32> to vector<6x8x128xf32>
    %307 = tpu.concatenate %306, %298 in 0 : vector<6x8x128xf32>, vector<1x8x128xf32> -> vector<7x8x128xf32>
    %308 = vector.extract_strided_slice %296 {offsets = [0, 0, 0], sizes = [6, 8, 128], strides = [1, 1, 1]} : vector<7x8x128xf32> to vector<6x8x128xf32>
    %309 = tpu.concatenate %298, %308 in 0 : vector<1x8x128xf32>, vector<6x8x128xf32> -> vector<7x8x128xf32>
    %310 = vector.extract_strided_slice %295 {offsets = [2, 0, 0], sizes = [1, 1, 128], strides = [1, 1, 1]} : vector<3x3x128xf32> to vector<1x1x128xf32>
    %311 = vector.broadcast %310 : vector<1x1x128xf32> to vector<7x8x128xf32>
    %312 = arith.mulf %307, %311 : vector<7x8x128xf32>
    %313 = arith.addf %305, %312 : vector<7x8x128xf32>
    %314 = vector.extract_strided_slice %295 {offsets = [0, 0, 0], sizes = [1, 1, 128], strides = [1, 1, 1]} : vector<3x3x128xf32> to vector<1x1x128xf32>
    %315 = vector.broadcast %314 : vector<1x1x128xf32> to vector<7x8x128xf32>
    %316 = arith.mulf %309, %315 : vector<7x8x128xf32>
    %317 = arith.addf %313, %316 : vector<7x8x128xf32>
    %318 = vector.extract_strided_slice %294 {offsets = [1, 0, 0], sizes = [6, 8, 128], strides = [1, 1, 1]} : vector<7x8x128xf32> to vector<6x8x128xf32>
    %319 = tpu.concatenate %318, %298 in 0 : vector<6x8x128xf32>, vector<1x8x128xf32> -> vector<7x8x128xf32>
    %320 = vector.extract_strided_slice %294 {offsets = [0, 0, 0], sizes = [6, 8, 128], strides = [1, 1, 1]} : vector<7x8x128xf32> to vector<6x8x128xf32>
    %321 = tpu.concatenate %298, %320 in 0 : vector<1x8x128xf32>, vector<6x8x128xf32> -> vector<7x8x128xf32>
    %322 = vector.extract_strided_slice %295 {offsets = [2, 1, 0], sizes = [1, 1, 128], strides = [1, 1, 1]} : vector<3x3x128xf32> to vector<1x1x128xf32>
    %323 = vector.broadcast %322 : vector<1x1x128xf32> to vector<7x8x128xf32>
    %324 = arith.mulf %319, %323 : vector<7x8x128xf32>
    %325 = arith.addf %317, %324 : vector<7x8x128xf32>
    %326 = vector.extract_strided_slice %295 {offsets = [0, 1, 0], sizes = [1, 1, 128], strides = [1, 1, 1]} : vector<3x3x128xf32> to vector<1x1x128xf32>
    %327 = vector.broadcast %326 : vector<1x1x128xf32> to vector<7x8x128xf32>
    %328 = arith.mulf %321, %327 : vector<7x8x128xf32>
    %329 = arith.addf %325, %328 : vector<7x8x128xf32>
    %330 = vector.extract_strided_slice %295 {offsets = [1, 2, 0], sizes = [1, 1, 128], strides = [1, 1, 1]} : vector<3x3x128xf32> to vector<1x1x128xf32>
    %331 = vector.broadcast %330 : vector<1x1x128xf32> to vector<7x8x128xf32>
    %332 = arith.mulf %297, %331 : vector<7x8x128xf32>
    %333 = arith.addf %329, %332 : vector<7x8x128xf32>
    %334 = vector.extract_strided_slice %297 {offsets = [1, 0, 0], sizes = [6, 8, 128], strides = [1, 1, 1]} : vector<7x8x128xf32> to vector<6x8x128xf32>
    %335 = tpu.concatenate %334, %298 in 0 : vector<6x8x128xf32>, vector<1x8x128xf32> -> vector<7x8x128xf32>
    %336 = vector.extract_strided_slice %297 {offsets = [0, 0, 0], sizes = [6, 8, 128], strides = [1, 1, 1]} : vector<7x8x128xf32> to vector<6x8x128xf32>
    %337 = tpu.concatenate %298, %336 in 0 : vector<1x8x128xf32>, vector<6x8x128xf32> -> vector<7x8x128xf32>
    %338 = vector.extract_strided_slice %295 {offsets = [2, 2, 0], sizes = [1, 1, 128], strides = [1, 1, 1]} : vector<3x3x128xf32> to vector<1x1x128xf32>
    %339 = vector.broadcast %338 : vector<1x1x128xf32> to vector<7x8x128xf32>
    %340 = arith.mulf %335, %339 : vector<7x8x128xf32>
    %341 = arith.addf %333, %340 : vector<7x8x128xf32>
    %342 = vector.extract_strided_slice %295 {offsets = [0, 2, 0], sizes = [1, 1, 128], strides = [1, 1, 1]} : vector<3x3x128xf32> to vector<1x1x128xf32>
    %343 = vector.broadcast %342 : vector<1x1x128xf32> to vector<7x8x128xf32>
    %344 = arith.mulf %337, %343 : vector<7x8x128xf32>
    %345 = arith.addf %341, %344 : vector<7x8x128xf32>
    %c0_99 = arith.constant 0 : index
    %c0_100 = arith.constant 0 : index
    %c384_101 = arith.constant 384 : index
    %346 = vector.load %arg5[%c0_99, %c0_100, %c384_101] : memref<7x8x960xf32, #tpu.memory_space<vmem>>, vector<7x8x128xf32>
    tpu.vector_store %arg5[%c0_99, %c0_100, %c384_101], %345 {strides = array<i32>} : memref<7x8x960xf32, #tpu.memory_space<vmem>>, vector<7x8x128xf32>,
    %c0_102 = arith.constant 0 : index
    %c0_103 = arith.constant 0 : index
    %c512 = arith.constant 512 : index
    %347 = vector.load %arg1[%c0_102, %c0_103, %c512] : memref<7x8x960xf32, #tpu.memory_space<vmem>>, vector<7x8x128xf32>
    %cst_104 = arith.constant dense<0.000000e+00> : vector<128xf32>
    %348 = vector.multi_reduction <add>, %347, %cst_104 [0, 1] : vector<7x8x128xf32> to vector<128xf32>
    %349 = vector.shape_cast %348 : vector<128xf32> to vector<1x1x128xf32>
    %350 = arith.mulf %347, %347 : vector<7x8x128xf32>
    %cst_105 = arith.constant dense<0.000000e+00> : vector<128xf32>
    %351 = vector.multi_reduction <add>, %350, %cst_105 [0, 1] : vector<7x8x128xf32> to vector<128xf32>
    %352 = vector.shape_cast %351 : vector<128xf32> to vector<1x1x128xf32>
    %cst_106 = arith.constant 0.0204081628 : f32
    %353 = vector.broadcast %cst_106 : f32 to vector<1x1x128xf32>
    %354 = arith.mulf %349, %353 : vector<1x1x128xf32>
    %cst_107 = arith.constant 0.0204081628 : f32
    %355 = vector.broadcast %cst_107 : f32 to vector<1x1x128xf32>
    %356 = arith.mulf %352, %355 : vector<1x1x128xf32>
    %357 = arith.mulf %354, %354 : vector<1x1x128xf32>
    %358 = arith.subf %356, %357 : vector<1x1x128xf32>
    %cst_108 = arith.constant 0.000000e+00 : f32
    %359 = vector.broadcast %cst_108 : f32 to vector<1x1x128xf32>
    %360 = arith.maximumf %358, %359 : vector<1x1x128xf32>
    %c0_109 = arith.constant 0 : index
    %c0_110 = arith.constant 0 : index
    %c512_111 = arith.constant 512 : index
    %361 = vector.load %arg2[%c0_109, %c0_110, %c512_111] : memref<1x1x960xf32, #tpu.memory_space<vmem>>, vector<1x1x128xf32>
    %cst_112 = arith.constant 9.99999974E-6 : f32
    %362 = vector.broadcast %cst_112 : f32 to vector<1x1x128xf32>
    %363 = arith.addf %360, %362 : vector<1x1x128xf32>
    %364 = math.rsqrt %363 : vector<1x1x128xf32>
    %365 = arith.mulf %361, %364 : vector<1x1x128xf32>
    %c0_113 = arith.constant 0 : index
    %c0_114 = arith.constant 0 : index
    %c512_115 = arith.constant 512 : index
    %366 = vector.load %arg3[%c0_113, %c0_114, %c512_115] : memref<1x1x960xf32, #tpu.memory_space<vmem>>, vector<1x1x128xf32>
    %367 = arith.mulf %354, %365 : vector<1x1x128xf32>
    %368 = arith.subf %366, %367 : vector<1x1x128xf32>
    %369 = vector.broadcast %365 : vector<1x1x128xf32> to vector<7x8x128xf32>
    %370 = arith.mulf %347, %369 : vector<7x8x128xf32>
    %371 = vector.broadcast %368 : vector<1x1x128xf32> to vector<7x8x128xf32>
    %372 = arith.addf %370, %371 : vector<7x8x128xf32>
    %cst_116 = arith.constant 0.000000e+00 : f32
    %cst_117 = arith.constant 6.000000e+00 : f32
    %373 = vector.broadcast %cst_116 : f32 to vector<7x8x128xf32>
    %374 = arith.maximumf %373, %372 : vector<7x8x128xf32>
    %375 = vector.broadcast %cst_117 : f32 to vector<7x8x128xf32>
    %376 = arith.minimumf %375, %374 : vector<7x8x128xf32>
    %cst_118 = arith.constant 0.000000e+00 : f32
    %377 = vector.shape_cast %2 : vector<1x8x1xi1> to vector<1x8x1xi1>
    %378 = vector.broadcast %377 : vector<1x8x1xi1> to vector<7x8x128xi1>
    %379 = vector.broadcast %cst_118 : f32 to vector<7x8x128xf32>
    %380 = arith.select %378, %376, %379 : vector<7x8x128xi1>, vector<7x8x128xf32>
    %c0_119 = arith.constant 0 : index
    %c0_120 = arith.constant 0 : index
    %c512_121 = arith.constant 512 : index
    %381 = vector.load %arg4[%c0_119, %c0_120, %c512_121] : memref<3x3x960xf32, #tpu.memory_space<vmem>>, vector<3x3x128xf32>
    %c1_i32_122 = arith.constant 1 : i32
    %382 = tpu.dynamic_rotate %380 by %c1_i32_122 dim 1 : vector<7x8x128xf32>, i32 -> vector<7x8x128xf32>
    %c7_i32_123 = arith.constant 7 : i32
    %383 = tpu.dynamic_rotate %380 by %c7_i32_123 dim 1 : vector<7x8x128xf32>, i32 -> vector<7x8x128xf32>
    %cst_124 = arith.constant 0.000000e+00 : f32
    %384 = vector.broadcast %cst_124 : f32 to vector<1x8x128xf32>
    %385 = vector.extract_strided_slice %381 {offsets = [1, 1, 0], sizes = [1, 1, 128], strides = [1, 1, 1]} : vector<3x3x128xf32> to vector<1x1x128xf32>
    %386 = vector.broadcast %385 : vector<1x1x128xf32> to vector<7x8x128xf32>
    %387 = arith.mulf %380, %386 : vector<7x8x128xf32>
    %388 = vector.extract_strided_slice %381 {offsets = [1, 0, 0], sizes = [1, 1, 128], strides = [1, 1, 1]} : vector<3x3x128xf32> to vector<1x1x128xf32>
    %389 = vector.broadcast %388 : vector<1x1x128xf32> to vector<7x8x128xf32>
    %390 = arith.mulf %382, %389 : vector<7x8x128xf32>
    %391 = arith.addf %387, %390 : vector<7x8x128xf32>
    %392 = vector.extract_strided_slice %382 {offsets = [1, 0, 0], sizes = [6, 8, 128], strides = [1, 1, 1]} : vector<7x8x128xf32> to vector<6x8x128xf32>
    %393 = tpu.concatenate %392, %384 in 0 : vector<6x8x128xf32>, vector<1x8x128xf32> -> vector<7x8x128xf32>
    %394 = vector.extract_strided_slice %382 {offsets = [0, 0, 0], sizes = [6, 8, 128], strides = [1, 1, 1]} : vector<7x8x128xf32> to vector<6x8x128xf32>
    %395 = tpu.concatenate %384, %394 in 0 : vector<1x8x128xf32>, vector<6x8x128xf32> -> vector<7x8x128xf32>
    %396 = vector.extract_strided_slice %381 {offsets = [2, 0, 0], sizes = [1, 1, 128], strides = [1, 1, 1]} : vector<3x3x128xf32> to vector<1x1x128xf32>
    %397 = vector.broadcast %396 : vector<1x1x128xf32> to vector<7x8x128xf32>
    %398 = arith.mulf %393, %397 : vector<7x8x128xf32>
    %399 = arith.addf %391, %398 : vector<7x8x128xf32>
    %400 = vector.extract_strided_slice %381 {offsets = [0, 0, 0], sizes = [1, 1, 128], strides = [1, 1, 1]} : vector<3x3x128xf32> to vector<1x1x128xf32>
    %401 = vector.broadcast %400 : vector<1x1x128xf32> to vector<7x8x128xf32>
    %402 = arith.mulf %395, %401 : vector<7x8x128xf32>
    %403 = arith.addf %399, %402 : vector<7x8x128xf32>
    %404 = vector.extract_strided_slice %380 {offsets = [1, 0, 0], sizes = [6, 8, 128], strides = [1, 1, 1]} : vector<7x8x128xf32> to vector<6x8x128xf32>
    %405 = tpu.concatenate %404, %384 in 0 : vector<6x8x128xf32>, vector<1x8x128xf32> -> vector<7x8x128xf32>
    %406 = vector.extract_strided_slice %380 {offsets = [0, 0, 0], sizes = [6, 8, 128], strides = [1, 1, 1]} : vector<7x8x128xf32> to vector<6x8x128xf32>
    %407 = tpu.concatenate %384, %406 in 0 : vector<1x8x128xf32>, vector<6x8x128xf32> -> vector<7x8x128xf32>
    %408 = vector.extract_strided_slice %381 {offsets = [2, 1, 0], sizes = [1, 1, 128], strides = [1, 1, 1]} : vector<3x3x128xf32> to vector<1x1x128xf32>
    %409 = vector.broadcast %408 : vector<1x1x128xf32> to vector<7x8x128xf32>
    %410 = arith.mulf %405, %409 : vector<7x8x128xf32>
    %411 = arith.addf %403, %410 : vector<7x8x128xf32>
    %412 = vector.extract_strided_slice %381 {offsets = [0, 1, 0], sizes = [1, 1, 128], strides = [1, 1, 1]} : vector<3x3x128xf32> to vector<1x1x128xf32>
    %413 = vector.broadcast %412 : vector<1x1x128xf32> to vector<7x8x128xf32>
    %414 = arith.mulf %407, %413 : vector<7x8x128xf32>
    %415 = arith.addf %411, %414 : vector<7x8x128xf32>
    %416 = vector.extract_strided_slice %381 {offsets = [1, 2, 0], sizes = [1, 1, 128], strides = [1, 1, 1]} : vector<3x3x128xf32> to vector<1x1x128xf32>
    %417 = vector.broadcast %416 : vector<1x1x128xf32> to vector<7x8x128xf32>
    %418 = arith.mulf %383, %417 : vector<7x8x128xf32>
    %419 = arith.addf %415, %418 : vector<7x8x128xf32>
    %420 = vector.extract_strided_slice %383 {offsets = [1, 0, 0], sizes = [6, 8, 128], strides = [1, 1, 1]} : vector<7x8x128xf32> to vector<6x8x128xf32>
    %421 = tpu.concatenate %420, %384 in 0 : vector<6x8x128xf32>, vector<1x8x128xf32> -> vector<7x8x128xf32>
    %422 = vector.extract_strided_slice %383 {offsets = [0, 0, 0], sizes = [6, 8, 128], strides = [1, 1, 1]} : vector<7x8x128xf32> to vector<6x8x128xf32>
    %423 = tpu.concatenate %384, %422 in 0 : vector<1x8x128xf32>, vector<6x8x128xf32> -> vector<7x8x128xf32>
    %424 = vector.extract_strided_slice %381 {offsets = [2, 2, 0], sizes = [1, 1, 128], strides = [1, 1, 1]} : vector<3x3x128xf32> to vector<1x1x128xf32>
    %425 = vector.broadcast %424 : vector<1x1x128xf32> to vector<7x8x128xf32>
    %426 = arith.mulf %421, %425 : vector<7x8x128xf32>
    %427 = arith.addf %419, %426 : vector<7x8x128xf32>
    %428 = vector.extract_strided_slice %381 {offsets = [0, 2, 0], sizes = [1, 1, 128], strides = [1, 1, 1]} : vector<3x3x128xf32> to vector<1x1x128xf32>
    %429 = vector.broadcast %428 : vector<1x1x128xf32> to vector<7x8x128xf32>
    %430 = arith.mulf %423, %429 : vector<7x8x128xf32>
    %431 = arith.addf %427, %430 : vector<7x8x128xf32>
    %c0_125 = arith.constant 0 : index
    %c0_126 = arith.constant 0 : index
    %c512_127 = arith.constant 512 : index
    %432 = vector.load %arg5[%c0_125, %c0_126, %c512_127] : memref<7x8x960xf32, #tpu.memory_space<vmem>>, vector<7x8x128xf32>
    tpu.vector_store %arg5[%c0_125, %c0_126, %c512_127], %431 {strides = array<i32>} : memref<7x8x960xf32, #tpu.memory_space<vmem>>, vector<7x8x128xf32>,
    %c0_128 = arith.constant 0 : index
    %c0_129 = arith.constant 0 : index
    %c640 = arith.constant 640 : index
    %433 = vector.load %arg1[%c0_128, %c0_129, %c640] : memref<7x8x960xf32, #tpu.memory_space<vmem>>, vector<7x8x128xf32>
    %cst_130 = arith.constant dense<0.000000e+00> : vector<128xf32>
    %434 = vector.multi_reduction <add>, %433, %cst_130 [0, 1] : vector<7x8x128xf32> to vector<128xf32>
    %435 = vector.shape_cast %434 : vector<128xf32> to vector<1x1x128xf32>
    %436 = arith.mulf %433, %433 : vector<7x8x128xf32>
    %cst_131 = arith.constant dense<0.000000e+00> : vector<128xf32>
    %437 = vector.multi_reduction <add>, %436, %cst_131 [0, 1] : vector<7x8x128xf32> to vector<128xf32>
    %438 = vector.shape_cast %437 : vector<128xf32> to vector<1x1x128xf32>
    %cst_132 = arith.constant 0.0204081628 : f32
    %439 = vector.broadcast %cst_132 : f32 to vector<1x1x128xf32>
    %440 = arith.mulf %435, %439 : vector<1x1x128xf32>
    %cst_133 = arith.constant 0.0204081628 : f32
    %441 = vector.broadcast %cst_133 : f32 to vector<1x1x128xf32>
    %442 = arith.mulf %438, %441 : vector<1x1x128xf32>
    %443 = arith.mulf %440, %440 : vector<1x1x128xf32>
    %444 = arith.subf %442, %443 : vector<1x1x128xf32>
    %cst_134 = arith.constant 0.000000e+00 : f32
    %445 = vector.broadcast %cst_134 : f32 to vector<1x1x128xf32>
    %446 = arith.maximumf %444, %445 : vector<1x1x128xf32>
    %c0_135 = arith.constant 0 : index
    %c0_136 = arith.constant 0 : index
    %c640_137 = arith.constant 640 : index
    %447 = vector.load %arg2[%c0_135, %c0_136, %c640_137] : memref<1x1x960xf32, #tpu.memory_space<vmem>>, vector<1x1x128xf32>
    %cst_138 = arith.constant 9.99999974E-6 : f32
    %448 = vector.broadcast %cst_138 : f32 to vector<1x1x128xf32>
    %449 = arith.addf %446, %448 : vector<1x1x128xf32>
    %450 = math.rsqrt %449 : vector<1x1x128xf32>
    %451 = arith.mulf %447, %450 : vector<1x1x128xf32>
    %c0_139 = arith.constant 0 : index
    %c0_140 = arith.constant 0 : index
    %c640_141 = arith.constant 640 : index
    %452 = vector.load %arg3[%c0_139, %c0_140, %c640_141] : memref<1x1x960xf32, #tpu.memory_space<vmem>>, vector<1x1x128xf32>
    %453 = arith.mulf %440, %451 : vector<1x1x128xf32>
    %454 = arith.subf %452, %453 : vector<1x1x128xf32>
    %455 = vector.broadcast %451 : vector<1x1x128xf32> to vector<7x8x128xf32>
    %456 = arith.mulf %433, %455 : vector<7x8x128xf32>
    %457 = vector.broadcast %454 : vector<1x1x128xf32> to vector<7x8x128xf32>
    %458 = arith.addf %456, %457 : vector<7x8x128xf32>
    %cst_142 = arith.constant 0.000000e+00 : f32
    %cst_143 = arith.constant 6.000000e+00 : f32
    %459 = vector.broadcast %cst_142 : f32 to vector<7x8x128xf32>
    %460 = arith.maximumf %459, %458 : vector<7x8x128xf32>
    %461 = vector.broadcast %cst_143 : f32 to vector<7x8x128xf32>
    %462 = arith.minimumf %461, %460 : vector<7x8x128xf32>
    %cst_144 = arith.constant 0.000000e+00 : f32
    %463 = vector.shape_cast %2 : vector<1x8x1xi1> to vector<1x8x1xi1>
    %464 = vector.broadcast %463 : vector<1x8x1xi1> to vector<7x8x128xi1>
    %465 = vector.broadcast %cst_144 : f32 to vector<7x8x128xf32>
    %466 = arith.select %464, %462, %465 : vector<7x8x128xi1>, vector<7x8x128xf32>
    %c0_145 = arith.constant 0 : index
    %c0_146 = arith.constant 0 : index
    %c640_147 = arith.constant 640 : index
    %467 = vector.load %arg4[%c0_145, %c0_146, %c640_147] : memref<3x3x960xf32, #tpu.memory_space<vmem>>, vector<3x3x128xf32>
    %c1_i32_148 = arith.constant 1 : i32
    %468 = tpu.dynamic_rotate %466 by %c1_i32_148 dim 1 : vector<7x8x128xf32>, i32 -> vector<7x8x128xf32>
    %c7_i32_149 = arith.constant 7 : i32
    %469 = tpu.dynamic_rotate %466 by %c7_i32_149 dim 1 : vector<7x8x128xf32>, i32 -> vector<7x8x128xf32>
    %cst_150 = arith.constant 0.000000e+00 : f32
    %470 = vector.broadcast %cst_150 : f32 to vector<1x8x128xf32>
    %471 = vector.extract_strided_slice %467 {offsets = [1, 1, 0], sizes = [1, 1, 128], strides = [1, 1, 1]} : vector<3x3x128xf32> to vector<1x1x128xf32>
    %472 = vector.broadcast %471 : vector<1x1x128xf32> to vector<7x8x128xf32>
    %473 = arith.mulf %466, %472 : vector<7x8x128xf32>
    %474 = vector.extract_strided_slice %467 {offsets = [1, 0, 0], sizes = [1, 1, 128], strides = [1, 1, 1]} : vector<3x3x128xf32> to vector<1x1x128xf32>
    %475 = vector.broadcast %474 : vector<1x1x128xf32> to vector<7x8x128xf32>
    %476 = arith.mulf %468, %475 : vector<7x8x128xf32>
    %477 = arith.addf %473, %476 : vector<7x8x128xf32>
    %478 = vector.extract_strided_slice %468 {offsets = [1, 0, 0], sizes = [6, 8, 128], strides = [1, 1, 1]} : vector<7x8x128xf32> to vector<6x8x128xf32>
    %479 = tpu.concatenate %478, %470 in 0 : vector<6x8x128xf32>, vector<1x8x128xf32> -> vector<7x8x128xf32>
    %480 = vector.extract_strided_slice %468 {offsets = [0, 0, 0], sizes = [6, 8, 128], strides = [1, 1, 1]} : vector<7x8x128xf32> to vector<6x8x128xf32>
    %481 = tpu.concatenate %470, %480 in 0 : vector<1x8x128xf32>, vector<6x8x128xf32> -> vector<7x8x128xf32>
    %482 = vector.extract_strided_slice %467 {offsets = [2, 0, 0], sizes = [1, 1, 128], strides = [1, 1, 1]} : vector<3x3x128xf32> to vector<1x1x128xf32>
    %483 = vector.broadcast %482 : vector<1x1x128xf32> to vector<7x8x128xf32>
    %484 = arith.mulf %479, %483 : vector<7x8x128xf32>
    %485 = arith.addf %477, %484 : vector<7x8x128xf32>
    %486 = vector.extract_strided_slice %467 {offsets = [0, 0, 0], sizes = [1, 1, 128], strides = [1, 1, 1]} : vector<3x3x128xf32> to vector<1x1x128xf32>
    %487 = vector.broadcast %486 : vector<1x1x128xf32> to vector<7x8x128xf32>
    %488 = arith.mulf %481, %487 : vector<7x8x128xf32>
    %489 = arith.addf %485, %488 : vector<7x8x128xf32>
    %490 = vector.extract_strided_slice %466 {offsets = [1, 0, 0], sizes = [6, 8, 128], strides = [1, 1, 1]} : vector<7x8x128xf32> to vector<6x8x128xf32>
    %491 = tpu.concatenate %490, %470 in 0 : vector<6x8x128xf32>, vector<1x8x128xf32> -> vector<7x8x128xf32>
    %492 = vector.extract_strided_slice %466 {offsets = [0, 0, 0], sizes = [6, 8, 128], strides = [1, 1, 1]} : vector<7x8x128xf32> to vector<6x8x128xf32>
    %493 = tpu.concatenate %470, %492 in 0 : vector<1x8x128xf32>, vector<6x8x128xf32> -> vector<7x8x128xf32>
    %494 = vector.extract_strided_slice %467 {offsets = [2, 1, 0], sizes = [1, 1, 128], strides = [1, 1, 1]} : vector<3x3x128xf32> to vector<1x1x128xf32>
    %495 = vector.broadcast %494 : vector<1x1x128xf32> to vector<7x8x128xf32>
    %496 = arith.mulf %491, %495 : vector<7x8x128xf32>
    %497 = arith.addf %489, %496 : vector<7x8x128xf32>
    %498 = vector.extract_strided_slice %467 {offsets = [0, 1, 0], sizes = [1, 1, 128], strides = [1, 1, 1]} : vector<3x3x128xf32> to vector<1x1x128xf32>
    %499 = vector.broadcast %498 : vector<1x1x128xf32> to vector<7x8x128xf32>
    %500 = arith.mulf %493, %499 : vector<7x8x128xf32>
    %501 = arith.addf %497, %500 : vector<7x8x128xf32>
    %502 = vector.extract_strided_slice %467 {offsets = [1, 2, 0], sizes = [1, 1, 128], strides = [1, 1, 1]} : vector<3x3x128xf32> to vector<1x1x128xf32>
    %503 = vector.broadcast %502 : vector<1x1x128xf32> to vector<7x8x128xf32>
    %504 = arith.mulf %469, %503 : vector<7x8x128xf32>
    %505 = arith.addf %501, %504 : vector<7x8x128xf32>
    %506 = vector.extract_strided_slice %469 {offsets = [1, 0, 0], sizes = [6, 8, 128], strides = [1, 1, 1]} : vector<7x8x128xf32> to vector<6x8x128xf32>
    %507 = tpu.concatenate %506, %470 in 0 : vector<6x8x128xf32>, vector<1x8x128xf32> -> vector<7x8x128xf32>
    %508 = vector.extract_strided_slice %469 {offsets = [0, 0, 0], sizes = [6, 8, 128], strides = [1, 1, 1]} : vector<7x8x128xf32> to vector<6x8x128xf32>
    %509 = tpu.concatenate %470, %508 in 0 : vector<1x8x128xf32>, vector<6x8x128xf32> -> vector<7x8x128xf32>
    %510 = vector.extract_strided_slice %467 {offsets = [2, 2, 0], sizes = [1, 1, 128], strides = [1, 1, 1]} : vector<3x3x128xf32> to vector<1x1x128xf32>
    %511 = vector.broadcast %510 : vector<1x1x128xf32> to vector<7x8x128xf32>
    %512 = arith.mulf %507, %511 : vector<7x8x128xf32>
    %513 = arith.addf %505, %512 : vector<7x8x128xf32>
    %514 = vector.extract_strided_slice %467 {offsets = [0, 2, 0], sizes = [1, 1, 128], strides = [1, 1, 1]} : vector<3x3x128xf32> to vector<1x1x128xf32>
    %515 = vector.broadcast %514 : vector<1x1x128xf32> to vector<7x8x128xf32>
    %516 = arith.mulf %509, %515 : vector<7x8x128xf32>
    %517 = arith.addf %513, %516 : vector<7x8x128xf32>
    %c0_151 = arith.constant 0 : index
    %c0_152 = arith.constant 0 : index
    %c640_153 = arith.constant 640 : index
    %518 = vector.load %arg5[%c0_151, %c0_152, %c640_153] : memref<7x8x960xf32, #tpu.memory_space<vmem>>, vector<7x8x128xf32>
    tpu.vector_store %arg5[%c0_151, %c0_152, %c640_153], %517 {strides = array<i32>} : memref<7x8x960xf32, #tpu.memory_space<vmem>>, vector<7x8x128xf32>,
    %c0_154 = arith.constant 0 : index
    %c0_155 = arith.constant 0 : index
    %c768 = arith.constant 768 : index
    %519 = vector.load %arg1[%c0_154, %c0_155, %c768] : memref<7x8x960xf32, #tpu.memory_space<vmem>>, vector<7x8x128xf32>
    %cst_156 = arith.constant dense<0.000000e+00> : vector<128xf32>
    %520 = vector.multi_reduction <add>, %519, %cst_156 [0, 1] : vector<7x8x128xf32> to vector<128xf32>
    %521 = vector.shape_cast %520 : vector<128xf32> to vector<1x1x128xf32>
    %522 = arith.mulf %519, %519 : vector<7x8x128xf32>
    %cst_157 = arith.constant dense<0.000000e+00> : vector<128xf32>
    %523 = vector.multi_reduction <add>, %522, %cst_157 [0, 1] : vector<7x8x128xf32> to vector<128xf32>
    %524 = vector.shape_cast %523 : vector<128xf32> to vector<1x1x128xf32>
    %cst_158 = arith.constant 0.0204081628 : f32
    %525 = vector.broadcast %cst_158 : f32 to vector<1x1x128xf32>
    %526 = arith.mulf %521, %525 : vector<1x1x128xf32>
    %cst_159 = arith.constant 0.0204081628 : f32
    %527 = vector.broadcast %cst_159 : f32 to vector<1x1x128xf32>
    %528 = arith.mulf %524, %527 : vector<1x1x128xf32>
    %529 = arith.mulf %526, %526 : vector<1x1x128xf32>
    %530 = arith.subf %528, %529 : vector<1x1x128xf32>
    %cst_160 = arith.constant 0.000000e+00 : f32
    %531 = vector.broadcast %cst_160 : f32 to vector<1x1x128xf32>
    %532 = arith.maximumf %530, %531 : vector<1x1x128xf32>
    %c0_161 = arith.constant 0 : index
    %c0_162 = arith.constant 0 : index
    %c768_163 = arith.constant 768 : index
    %533 = vector.load %arg2[%c0_161, %c0_162, %c768_163] : memref<1x1x960xf32, #tpu.memory_space<vmem>>, vector<1x1x128xf32>
    %cst_164 = arith.constant 9.99999974E-6 : f32
    %534 = vector.broadcast %cst_164 : f32 to vector<1x1x128xf32>
    %535 = arith.addf %532, %534 : vector<1x1x128xf32>
    %536 = math.rsqrt %535 : vector<1x1x128xf32>
    %537 = arith.mulf %533, %536 : vector<1x1x128xf32>
    %c0_165 = arith.constant 0 : index
    %c0_166 = arith.constant 0 : index
    %c768_167 = arith.constant 768 : index
    %538 = vector.load %arg3[%c0_165, %c0_166, %c768_167] : memref<1x1x960xf32, #tpu.memory_space<vmem>>, vector<1x1x128xf32>
    %539 = arith.mulf %526, %537 : vector<1x1x128xf32>
    %540 = arith.subf %538, %539 : vector<1x1x128xf32>
    %541 = vector.broadcast %537 : vector<1x1x128xf32> to vector<7x8x128xf32>
    %542 = arith.mulf %519, %541 : vector<7x8x128xf32>
    %543 = vector.broadcast %540 : vector<1x1x128xf32> to vector<7x8x128xf32>
    %544 = arith.addf %542, %543 : vector<7x8x128xf32>
    %cst_168 = arith.constant 0.000000e+00 : f32
    %cst_169 = arith.constant 6.000000e+00 : f32
    %545 = vector.broadcast %cst_168 : f32 to vector<7x8x128xf32>
    %546 = arith.maximumf %545, %544 : vector<7x8x128xf32>
    %547 = vector.broadcast %cst_169 : f32 to vector<7x8x128xf32>
    %548 = arith.minimumf %547, %546 : vector<7x8x128xf32>
    %cst_170 = arith.constant 0.000000e+00 : f32
    %549 = vector.shape_cast %2 : vector<1x8x1xi1> to vector<1x8x1xi1>
    %550 = vector.broadcast %549 : vector<1x8x1xi1> to vector<7x8x128xi1>
    %551 = vector.broadcast %cst_170 : f32 to vector<7x8x128xf32>
    %552 = arith.select %550, %548, %551 : vector<7x8x128xi1>, vector<7x8x128xf32>
    %c0_171 = arith.constant 0 : index
    %c0_172 = arith.constant 0 : index
    %c768_173 = arith.constant 768 : index
    %553 = vector.load %arg4[%c0_171, %c0_172, %c768_173] : memref<3x3x960xf32, #tpu.memory_space<vmem>>, vector<3x3x128xf32>
    %c1_i32_174 = arith.constant 1 : i32
    %554 = tpu.dynamic_rotate %552 by %c1_i32_174 dim 1 : vector<7x8x128xf32>, i32 -> vector<7x8x128xf32>
    %c7_i32_175 = arith.constant 7 : i32
    %555 = tpu.dynamic_rotate %552 by %c7_i32_175 dim 1 : vector<7x8x128xf32>, i32 -> vector<7x8x128xf32>
    %cst_176 = arith.constant 0.000000e+00 : f32
    %556 = vector.broadcast %cst_176 : f32 to vector<1x8x128xf32>
    %557 = vector.extract_strided_slice %553 {offsets = [1, 1, 0], sizes = [1, 1, 128], strides = [1, 1, 1]} : vector<3x3x128xf32> to vector<1x1x128xf32>
    %558 = vector.broadcast %557 : vector<1x1x128xf32> to vector<7x8x128xf32>
    %559 = arith.mulf %552, %558 : vector<7x8x128xf32>
    %560 = vector.extract_strided_slice %553 {offsets = [1, 0, 0], sizes = [1, 1, 128], strides = [1, 1, 1]} : vector<3x3x128xf32> to vector<1x1x128xf32>
    %561 = vector.broadcast %560 : vector<1x1x128xf32> to vector<7x8x128xf32>
    %562 = arith.mulf %554, %561 : vector<7x8x128xf32>
    %563 = arith.addf %559, %562 : vector<7x8x128xf32>
    %564 = vector.extract_strided_slice %554 {offsets = [1, 0, 0], sizes = [6, 8, 128], strides = [1, 1, 1]} : vector<7x8x128xf32> to vector<6x8x128xf32>
    %565 = tpu.concatenate %564, %556 in 0 : vector<6x8x128xf32>, vector<1x8x128xf32> -> vector<7x8x128xf32>
    %566 = vector.extract_strided_slice %554 {offsets = [0, 0, 0], sizes = [6, 8, 128], strides = [1, 1, 1]} : vector<7x8x128xf32> to vector<6x8x128xf32>
    %567 = tpu.concatenate %556, %566 in 0 : vector<1x8x128xf32>, vector<6x8x128xf32> -> vector<7x8x128xf32>
    %568 = vector.extract_strided_slice %553 {offsets = [2, 0, 0], sizes = [1, 1, 128], strides = [1, 1, 1]} : vector<3x3x128xf32> to vector<1x1x128xf32>
    %569 = vector.broadcast %568 : vector<1x1x128xf32> to vector<7x8x128xf32>
    %570 = arith.mulf %565, %569 : vector<7x8x128xf32>
    %571 = arith.addf %563, %570 : vector<7x8x128xf32>
    %572 = vector.extract_strided_slice %553 {offsets = [0, 0, 0], sizes = [1, 1, 128], strides = [1, 1, 1]} : vector<3x3x128xf32> to vector<1x1x128xf32>
    %573 = vector.broadcast %572 : vector<1x1x128xf32> to vector<7x8x128xf32>
    %574 = arith.mulf %567, %573 : vector<7x8x128xf32>
    %575 = arith.addf %571, %574 : vector<7x8x128xf32>
    %576 = vector.extract_strided_slice %552 {offsets = [1, 0, 0], sizes = [6, 8, 128], strides = [1, 1, 1]} : vector<7x8x128xf32> to vector<6x8x128xf32>
    %577 = tpu.concatenate %576, %556 in 0 : vector<6x8x128xf32>, vector<1x8x128xf32> -> vector<7x8x128xf32>
    %578 = vector.extract_strided_slice %552 {offsets = [0, 0, 0], sizes = [6, 8, 128], strides = [1, 1, 1]} : vector<7x8x128xf32> to vector<6x8x128xf32>
    %579 = tpu.concatenate %556, %578 in 0 : vector<1x8x128xf32>, vector<6x8x128xf32> -> vector<7x8x128xf32>
    %580 = vector.extract_strided_slice %553 {offsets = [2, 1, 0], sizes = [1, 1, 128], strides = [1, 1, 1]} : vector<3x3x128xf32> to vector<1x1x128xf32>
    %581 = vector.broadcast %580 : vector<1x1x128xf32> to vector<7x8x128xf32>
    %582 = arith.mulf %577, %581 : vector<7x8x128xf32>
    %583 = arith.addf %575, %582 : vector<7x8x128xf32>
    %584 = vector.extract_strided_slice %553 {offsets = [0, 1, 0], sizes = [1, 1, 128], strides = [1, 1, 1]} : vector<3x3x128xf32> to vector<1x1x128xf32>
    %585 = vector.broadcast %584 : vector<1x1x128xf32> to vector<7x8x128xf32>
    %586 = arith.mulf %579, %585 : vector<7x8x128xf32>
    %587 = arith.addf %583, %586 : vector<7x8x128xf32>
    %588 = vector.extract_strided_slice %553 {offsets = [1, 2, 0], sizes = [1, 1, 128], strides = [1, 1, 1]} : vector<3x3x128xf32> to vector<1x1x128xf32>
    %589 = vector.broadcast %588 : vector<1x1x128xf32> to vector<7x8x128xf32>
    %590 = arith.mulf %555, %589 : vector<7x8x128xf32>
    %591 = arith.addf %587, %590 : vector<7x8x128xf32>
    %592 = vector.extract_strided_slice %555 {offsets = [1, 0, 0], sizes = [6, 8, 128], strides = [1, 1, 1]} : vector<7x8x128xf32> to vector<6x8x128xf32>
    %593 = tpu.concatenate %592, %556 in 0 : vector<6x8x128xf32>, vector<1x8x128xf32> -> vector<7x8x128xf32>
    %594 = vector.extract_strided_slice %555 {offsets = [0, 0, 0], sizes = [6, 8, 128], strides = [1, 1, 1]} : vector<7x8x128xf32> to vector<6x8x128xf32>
    %595 = tpu.concatenate %556, %594 in 0 : vector<1x8x128xf32>, vector<6x8x128xf32> -> vector<7x8x128xf32>
    %596 = vector.extract_strided_slice %553 {offsets = [2, 2, 0], sizes = [1, 1, 128], strides = [1, 1, 1]} : vector<3x3x128xf32> to vector<1x1x128xf32>
    %597 = vector.broadcast %596 : vector<1x1x128xf32> to vector<7x8x128xf32>
    %598 = arith.mulf %593, %597 : vector<7x8x128xf32>
    %599 = arith.addf %591, %598 : vector<7x8x128xf32>
    %600 = vector.extract_strided_slice %553 {offsets = [0, 2, 0], sizes = [1, 1, 128], strides = [1, 1, 1]} : vector<3x3x128xf32> to vector<1x1x128xf32>
    %601 = vector.broadcast %600 : vector<1x1x128xf32> to vector<7x8x128xf32>
    %602 = arith.mulf %595, %601 : vector<7x8x128xf32>
    %603 = arith.addf %599, %602 : vector<7x8x128xf32>
    %c0_177 = arith.constant 0 : index
    %c0_178 = arith.constant 0 : index
    %c768_179 = arith.constant 768 : index
    %604 = vector.load %arg5[%c0_177, %c0_178, %c768_179] : memref<7x8x960xf32, #tpu.memory_space<vmem>>, vector<7x8x128xf32>
    tpu.vector_store %arg5[%c0_177, %c0_178, %c768_179], %603 {strides = array<i32>} : memref<7x8x960xf32, #tpu.memory_space<vmem>>, vector<7x8x128xf32>,
    %c0_180 = arith.constant 0 : index
    %c0_181 = arith.constant 0 : index
    %c896 = arith.constant 896 : index
    %605 = vector.load %arg1[%c0_180, %c0_181, %c896] : memref<7x8x960xf32, #tpu.memory_space<vmem>>, vector<7x8x64xf32>
    %cst_182 = arith.constant dense<0.000000e+00> : vector<64xf32>
    %606 = vector.multi_reduction <add>, %605, %cst_182 [0, 1] : vector<7x8x64xf32> to vector<64xf32>
    %607 = vector.shape_cast %606 : vector<64xf32> to vector<1x1x64xf32>
    %608 = arith.mulf %605, %605 : vector<7x8x64xf32>
    %cst_183 = arith.constant dense<0.000000e+00> : vector<64xf32>
    %609 = vector.multi_reduction <add>, %608, %cst_183 [0, 1] : vector<7x8x64xf32> to vector<64xf32>
    %610 = vector.shape_cast %609 : vector<64xf32> to vector<1x1x64xf32>
    %cst_184 = arith.constant 0.0204081628 : f32
    %611 = vector.broadcast %cst_184 : f32 to vector<1x1x64xf32>
    %612 = arith.mulf %607, %611 : vector<1x1x64xf32>
    %cst_185 = arith.constant 0.0204081628 : f32
    %613 = vector.broadcast %cst_185 : f32 to vector<1x1x64xf32>
    %614 = arith.mulf %610, %613 : vector<1x1x64xf32>
    %615 = arith.mulf %612, %612 : vector<1x1x64xf32>
    %616 = arith.subf %614, %615 : vector<1x1x64xf32>
    %cst_186 = arith.constant 0.000000e+00 : f32
    %617 = vector.broadcast %cst_186 : f32 to vector<1x1x64xf32>
    %618 = arith.maximumf %616, %617 : vector<1x1x64xf32>
    %c0_187 = arith.constant 0 : index
    %c0_188 = arith.constant 0 : index
    %c896_189 = arith.constant 896 : index
    %619 = vector.load %arg2[%c0_187, %c0_188, %c896_189] : memref<1x1x960xf32, #tpu.memory_space<vmem>>, vector<1x1x64xf32>
    %cst_190 = arith.constant 9.99999974E-6 : f32
    %620 = vector.broadcast %cst_190 : f32 to vector<1x1x64xf32>
    %621 = arith.addf %618, %620 : vector<1x1x64xf32>
    %622 = math.rsqrt %621 : vector<1x1x64xf32>
    %623 = arith.mulf %619, %622 : vector<1x1x64xf32>
    %c0_191 = arith.constant 0 : index
    %c0_192 = arith.constant 0 : index
    %c896_193 = arith.constant 896 : index
    %624 = vector.load %arg3[%c0_191, %c0_192, %c896_193] : memref<1x1x960xf32, #tpu.memory_space<vmem>>, vector<1x1x64xf32>
    %625 = arith.mulf %612, %623 : vector<1x1x64xf32>
    %626 = arith.subf %624, %625 : vector<1x1x64xf32>
    %627 = vector.broadcast %623 : vector<1x1x64xf32> to vector<7x8x64xf32>
    %628 = arith.mulf %605, %627 : vector<7x8x64xf32>
    %629 = vector.broadcast %626 : vector<1x1x64xf32> to vector<7x8x64xf32>
    %630 = arith.addf %628, %629 : vector<7x8x64xf32>
    %cst_194 = arith.constant 0.000000e+00 : f32
    %cst_195 = arith.constant 6.000000e+00 : f32
    %631 = vector.broadcast %cst_194 : f32 to vector<7x8x64xf32>
    %632 = arith.maximumf %631, %630 : vector<7x8x64xf32>
    %633 = vector.broadcast %cst_195 : f32 to vector<7x8x64xf32>
    %634 = arith.minimumf %633, %632 : vector<7x8x64xf32>
    %cst_196 = arith.constant 0.000000e+00 : f32
    %635 = vector.shape_cast %2 : vector<1x8x1xi1> to vector<1x8x1xi1>
    %636 = vector.broadcast %635 : vector<1x8x1xi1> to vector<7x8x64xi1>
    %637 = vector.broadcast %cst_196 : f32 to vector<7x8x64xf32>
    %638 = arith.select %636, %634, %637 : vector<7x8x64xi1>, vector<7x8x64xf32>
    %c0_197 = arith.constant 0 : index
    %c0_198 = arith.constant 0 : index
    %c896_199 = arith.constant 896 : index
    %639 = vector.load %arg4[%c0_197, %c0_198, %c896_199] : memref<3x3x960xf32, #tpu.memory_space<vmem>>, vector<3x3x64xf32>
    %c1_i32_200 = arith.constant 1 : i32
    %640 = tpu.dynamic_rotate %638 by %c1_i32_200 dim 1 : vector<7x8x64xf32>, i32 -> vector<7x8x64xf32>
    %c7_i32_201 = arith.constant 7 : i32
    %641 = tpu.dynamic_rotate %638 by %c7_i32_201 dim 1 : vector<7x8x64xf32>, i32 -> vector<7x8x64xf32>
    %cst_202 = arith.constant 0.000000e+00 : f32
    %642 = vector.broadcast %cst_202 : f32 to vector<1x8x64xf32>
    %643 = vector.extract_strided_slice %639 {offsets = [1, 1, 0], sizes = [1, 1, 64], strides = [1, 1, 1]} : vector<3x3x64xf32> to vector<1x1x64xf32>
    %644 = vector.broadcast %643 : vector<1x1x64xf32> to vector<7x8x64xf32>
    %645 = arith.mulf %638, %644 : vector<7x8x64xf32>
    %646 = vector.extract_strided_slice %639 {offsets = [1, 0, 0], sizes = [1, 1, 64], strides = [1, 1, 1]} : vector<3x3x64xf32> to vector<1x1x64xf32>
    %647 = vector.broadcast %646 : vector<1x1x64xf32> to vector<7x8x64xf32>
    %648 = arith.mulf %640, %647 : vector<7x8x64xf32>
    %649 = arith.addf %645, %648 : vector<7x8x64xf32>
    %650 = vector.extract_strided_slice %640 {offsets = [1, 0, 0], sizes = [6, 8, 64], strides = [1, 1, 1]} : vector<7x8x64xf32> to vector<6x8x64xf32>
    %651 = tpu.concatenate %650, %642 in 0 : vector<6x8x64xf32>, vector<1x8x64xf32> -> vector<7x8x64xf32>
    %652 = vector.extract_strided_slice %640 {offsets = [0, 0, 0], sizes = [6, 8, 64], strides = [1, 1, 1]} : vector<7x8x64xf32> to vector<6x8x64xf32>
    %653 = tpu.concatenate %642, %652 in 0 : vector<1x8x64xf32>, vector<6x8x64xf32> -> vector<7x8x64xf32>
    %654 = vector.extract_strided_slice %639 {offsets = [2, 0, 0], sizes = [1, 1, 64], strides = [1, 1, 1]} : vector<3x3x64xf32> to vector<1x1x64xf32>
    %655 = vector.broadcast %654 : vector<1x1x64xf32> to vector<7x8x64xf32>
    %656 = arith.mulf %651, %655 : vector<7x8x64xf32>
    %657 = arith.addf %649, %656 : vector<7x8x64xf32>
    %658 = vector.extract_strided_slice %639 {offsets = [0, 0, 0], sizes = [1, 1, 64], strides = [1, 1, 1]} : vector<3x3x64xf32> to vector<1x1x64xf32>
    %659 = vector.broadcast %658 : vector<1x1x64xf32> to vector<7x8x64xf32>
    %660 = arith.mulf %653, %659 : vector<7x8x64xf32>
    %661 = arith.addf %657, %660 : vector<7x8x64xf32>
    %662 = vector.extract_strided_slice %638 {offsets = [1, 0, 0], sizes = [6, 8, 64], strides = [1, 1, 1]} : vector<7x8x64xf32> to vector<6x8x64xf32>
    %663 = tpu.concatenate %662, %642 in 0 : vector<6x8x64xf32>, vector<1x8x64xf32> -> vector<7x8x64xf32>
    %664 = vector.extract_strided_slice %638 {offsets = [0, 0, 0], sizes = [6, 8, 64], strides = [1, 1, 1]} : vector<7x8x64xf32> to vector<6x8x64xf32>
    %665 = tpu.concatenate %642, %664 in 0 : vector<1x8x64xf32>, vector<6x8x64xf32> -> vector<7x8x64xf32>
    %666 = vector.extract_strided_slice %639 {offsets = [2, 1, 0], sizes = [1, 1, 64], strides = [1, 1, 1]} : vector<3x3x64xf32> to vector<1x1x64xf32>
    %667 = vector.broadcast %666 : vector<1x1x64xf32> to vector<7x8x64xf32>
    %668 = arith.mulf %663, %667 : vector<7x8x64xf32>
    %669 = arith.addf %661, %668 : vector<7x8x64xf32>
    %670 = vector.extract_strided_slice %639 {offsets = [0, 1, 0], sizes = [1, 1, 64], strides = [1, 1, 1]} : vector<3x3x64xf32> to vector<1x1x64xf32>
    %671 = vector.broadcast %670 : vector<1x1x64xf32> to vector<7x8x64xf32>
    %672 = arith.mulf %665, %671 : vector<7x8x64xf32>
    %673 = arith.addf %669, %672 : vector<7x8x64xf32>
    %674 = vector.extract_strided_slice %639 {offsets = [1, 2, 0], sizes = [1, 1, 64], strides = [1, 1, 1]} : vector<3x3x64xf32> to vector<1x1x64xf32>
    %675 = vector.broadcast %674 : vector<1x1x64xf32> to vector<7x8x64xf32>
    %676 = arith.mulf %641, %675 : vector<7x8x64xf32>
    %677 = arith.addf %673, %676 : vector<7x8x64xf32>
    %678 = vector.extract_strided_slice %641 {offsets = [1, 0, 0], sizes = [6, 8, 64], strides = [1, 1, 1]} : vector<7x8x64xf32> to vector<6x8x64xf32>
    %679 = tpu.concatenate %678, %642 in 0 : vector<6x8x64xf32>, vector<1x8x64xf32> -> vector<7x8x64xf32>
    %680 = vector.extract_strided_slice %641 {offsets = [0, 0, 0], sizes = [6, 8, 64], strides = [1, 1, 1]} : vector<7x8x64xf32> to vector<6x8x64xf32>
    %681 = tpu.concatenate %642, %680 in 0 : vector<1x8x64xf32>, vector<6x8x64xf32> -> vector<7x8x64xf32>
    %682 = vector.extract_strided_slice %639 {offsets = [2, 2, 0], sizes = [1, 1, 64], strides = [1, 1, 1]} : vector<3x3x64xf32> to vector<1x1x64xf32>
    %683 = vector.broadcast %682 : vector<1x1x64xf32> to vector<7x8x64xf32>
    %684 = arith.mulf %679, %683 : vector<7x8x64xf32>
    %685 = arith.addf %677, %684 : vector<7x8x64xf32>
    %686 = vector.extract_strided_slice %639 {offsets = [0, 2, 0], sizes = [1, 1, 64], strides = [1, 1, 1]} : vector<3x3x64xf32> to vector<1x1x64xf32>
    %687 = vector.broadcast %686 : vector<1x1x64xf32> to vector<7x8x64xf32>
    %688 = arith.mulf %681, %687 : vector<7x8x64xf32>
    %689 = arith.addf %685, %688 : vector<7x8x64xf32>
    %c0_203 = arith.constant 0 : index
    %c0_204 = arith.constant 0 : index
    %c896_205 = arith.constant 896 : index
    %690 = vector.load %arg5[%c0_203, %c0_204, %c896_205] : memref<7x8x960xf32, #tpu.memory_space<vmem>>, vector<7x8x64xf32>
    tpu.vector_store %arg5[%c0_203, %c0_204, %c896_205], %689 {strides = array<i32>} : memref<7x8x960xf32, #tpu.memory_space<vmem>>, vector<7x8x64xf32>,
    return
  }
  func.func @transform_0(%arg0: i32) -> (i32, i32, i32) {
    %c0_i32 = arith.constant 0 : i32
    %c0_i32_0 = arith.constant 0 : i32
    %c0_i32_1 = arith.constant 0 : i32
    %c0_i32_2 = arith.constant 0 : i32
    return %c0_i32, %c0_i32_0, %c0_i32_1 : i32, i32, i32
  }
  func.func @transform_1(%arg0: i32) -> (i32, i32, i32) {
    %c0_i32 = arith.constant 0 : i32
    %c0_i32_0 = arith.constant 0 : i32
    %c0_i32_1 = arith.constant 0 : i32
    %c0_i32_2 = arith.constant 0 : i32
    return %c0_i32, %c0_i32_0, %c0_i32_1 : i32, i32, i32
  }
  func.func @transform_2(%arg0: i32) -> (i32, i32, i32) {
    %c0_i32 = arith.constant 0 : i32
    %c0_i32_0 = arith.constant 0 : i32
    %c0_i32_1 = arith.constant 0 : i32
    %c0_i32_2 = arith.constant 0 : i32
    return %c0_i32, %c0_i32_0, %c0_i32_1 : i32, i32, i32
  }
  func.func @transform_3(%arg0: i32) -> (i32, i32, i32) {
    %c0_i32 = arith.constant 0 : i32
    %c0_i32_0 = arith.constant 0 : i32
    %c0_i32_1 = arith.constant 0 : i32
    %c0_i32_2 = arith.constant 0 : i32
    return %c0_i32, %c0_i32_0, %c0_i32_1 : i32, i32, i32
  }
  func.func @transform_4(%arg0: i32) -> (i32, i32, i32) {
    %c0_i32 = arith.constant 0 : i32
    %c0_i32_0 = arith.constant 0 : i32
    %c0_i32_1 = arith.constant 0 : i32
    %c0_i32_2 = arith.constant 0 : i32
    return %c0_i32, %c0_i32_0, %c0_i32_1 : i32, i32, i32
  }
}

</mosaic_0001>

<bundles_post_ra>
// kernel: bn_relu6_dwconv.1
= control target key start
LH: loop header
LB: loop body
LE: loop exit
PB: predicated region body
PF: predicated region fallthrough
CT: control target
= control target key end

     0   :  { %v17_v7 = vlaneseq  ;;  %vm1961_vm1 = vcmask 523264   ;;  %s4708_s0 = inlined_call_operand.vmem [shape: f32[7,8,960], index: 0, kind: input, shape index: {}]   ;;  %s4709_s3 = inlined_call_operand.vmem [shape: f32[3,3,960], index: 3, kind: input, shape index: {}]   ;;  %s4710_s1 = inlined_call_operand.vmem [shape: f32[1,1,960], index: 1, kind: input, shape index: {}]   ;;  %s4711_s2 = inlined_call_operand.vmem [shape: f32[1,1,960], index: 2, kind: input, shape index: {}]   ;;  %s4712_s4 = inlined_call_operand.vmem [shape: f32[7,8,960], index: 4, kind: output, shape index: {}]  }
   0x1   :  { %v2317_v0 = vld [vmem:[%s4708_s0] sm:$0xff]  ;;  %v2353_v13 = vld [vmem:[%s4708_s0 + $0x8] sm:$0xff] }
   0x2   :  { %v2322_v1 = vld [vmem:[%s4708_s0 + $0x40] sm:$0xff]  ;;  %v39_v5 = vmul.f32 %v2317_v0, %v2317_v0  ;;  %v2363_v15 = vld [vmem:[%s4708_s0 + $0x48] sm:$0xff]  ;;  %v2373_v20 = vshrl.u32 %v17_v7, 7  ;;  %v317_v32 = vmul.f32 %v2353_v13, %v2353_v13  ;;  %v574_v7 = vld [vmem:[%s4708_s0 + $0x10] sm:$0xff] }
   0x3   :  { %v2327_v2 = vld [vmem:[%s4708_s0 + $0x80] sm:$0xff]  ;;  %v27_v4 = vadd.f32 %v2322_v1, %v2317_v0  ;;  %v40_v6 = vmul.f32 %v2322_v1, %v2322_v1  ;;  %v305_v21 = vadd.f32 %v2363_v15, %v2353_v13  ;;  %v2383_v25 = vld [vmem:[%s4708_s0 + $0x88] sm:$0xff]  ;;  %v318_v33 = vmul.f32 %v2363_v15, %v2363_v15 }
   0x4   :  { %v2332_v3 = vld [vmem:[%s4708_s0 + $0xc0] sm:$0xff]  ;;  %v41_v9 = vmul.f32 %v2327_v2, %v2327_v2  ;;  %v2388_v27 = vsub.s32 1, %v2373_v20  ;;  %v2397_v31 = vld [vmem:[%s4708_s0 + $0xc8] sm:$0xff]  ;;  %v319_v40 = vmul.f32 %v2383_v25, %v2383_v25  ;;  %v2419_v41 = vsub.s32 0, %v2373_v20 }
   0x5   :  { %v2343_v8 = vld [vmem:[%s4708_s0 + $0x100] sm:$0xff]  ;;  %v28_v10 = vadd.f32 %v27_v4, %v2327_v2  ;;  %v42_v11 = vmul.f32 %v2332_v3, %v2332_v3  ;;  %v46_v12 = vadd.f32 %v40_v6, %v39_v5  ;;  %v306_v34 = vadd.f32 %v305_v21, %v2383_v25  ;;  %v2414_v39 = vld [vmem:[%s4708_s0 + $0x108] sm:$0xff] }
   0x6   :  { %v2358_v14 = vld [vmem:[%s4708_s0 + $0x140] sm:$0xff]  ;;  %v43_v18 = vmul.f32 %v2343_v8, %v2343_v8  ;;  %4793 = vst [vmem:[#allocation2_spill] sm:$0xff] %v2388_v27  ;;  %4794 = vst [vmem:[#allocation3_spill] sm:$0xff] %v2419_v41  ;;  %v2425_v43 = vsub.s32 2, %v2373_v20  ;;  %v2431_v47 = vld [vmem:[%s4708_s0 + $0x148] sm:$0xff]  ;;  %v320_v48 = vmul.f32 %v2397_v31, %v2397_v31  ;;  %v324_v49 = vadd.f32 %v318_v33, %v317_v32 }
   0x7   :  { %v2368_v16 = vld [vmem:[%s4708_s0 + $0x180] sm:$0xff]  ;;  %v29_v17 = vadd.f32 %v28_v10, %v2332_v3  ;;  %v47_v19 = vadd.f32 %v46_v12, %v41_v9  ;;  %v44_v23 = vmul.f32 %v2358_v14, %v2358_v14  ;;  %v307_v44 = vadd.f32 %v306_v34, %v2397_v31  ;;  %4796 = vst [vmem:[#allocation5_spill] sm:$0xff] %v2431_v47  ;;  %v2448_v56 = vld [vmem:[%s4708_s0 + $0x188] sm:$0xff]  ;;  %v575_v9 = vld [vmem:[%s4708_s0 + $0x50] sm:$0xff] }
   0x8   :  { %v45_v26 = vmul.f32 %v2368_v16, %v2368_v16  ;;  %v120_v30 = vld [vmem:[%s4709_s3 + $0x20] sm:$0x7]  ;;  %4795 = vst [vmem:[#allocation4_spill] sm:$0xff] %v2425_v43  ;;  %4797 = vst [vmem:[#allocation6_spill] sm:$0xff] %v2448_v56  ;;  %v321_v57 = vmul.f32 %v2414_v39, %v2414_v39  ;;  %v325_v58 = vadd.f32 %v324_v49, %v319_v40  ;;  %v578_v49 = vld [vmem:[%s4708_s0 + $0x110] sm:$0xff]  ;;  %vm19_vm0 = vcmp.lt.s32.totalorder %v2373_v20, 7 }
   0x9   :  { %v30_v22 = vadd.f32 %v29_v17, %v2343_v8  ;;  %v48_v24 = vadd.f32 %v47_v19, %v42_v11  ;;  %v119_v37 = vld [vmem:[%s4709_s3] sm:$0x7]  ;;  %v2422_v42 = vrot.slane %v120_v30, %v2388_v27  ;;  %v2436_v50 = vrot.slane %v120_v30, %v2419_v41 }
   0xa   :  { %v121_v38 = vld [vmem:[%s4709_s3 + $0x40] sm:$0x7]  ;;  %v2442_v52 = vrot.slane %v119_v37, %v2419_v41  ;;  %v308_v53 = vadd.f32 %v307_v44, %v2414_v39  ;;  %v2456_v60 = vrot.slane %v119_v37, %v2388_v27  ;;  %v2459_v61 = vrot.slane %v119_v37, %v2425_v43 }
   0xb   :  { %v31_v28 = vadd.f32 %v30_v22, %v2358_v14  ;;  %v49_v29 = vadd.f32 %v48_v24, %v43_v18  ;;  %v2439_v51 = vrot.slane %v121_v38, %v2419_v41  ;;  %v2453_v59 = vrot.slane %v121_v38, %v2388_v27 }
   0xc   :  { %v309_v62 = vadd.f32 %v308_v53, %v2431_v47  ;;  %v322_v5 = vmul.f32 %v2431_v47, %v2431_v47  ;;  %v326_v6 = vadd.f32 %v325_v58, %v320_v48  ;;  %v2471_v10 = vmul.f32 0.0, %v2442_v52  ;;  %v850_v53 = vld [vmem:[%s4708_s0 + $0x18] sm:$0xff]  ;;  %v2517_v58 = vld [vmem:[%s4709_s3 + $0x24] sm:$0x7]  ;;  %v671_v47 = vld [vmem:[%s4709_s3 + $0x8] sm:$0x7] }
   0xd   :  { %v32_v35 = vadd.f32 %v31_v28, %v2368_v16  ;;  %v50_v36 = vadd.f32 %v49_v29, %v44_v23  ;;  %v2474_v11 = vrot.slane %v120_v30, %v2425_v43  ;;  %v2477_v12 = vrot.slane %v121_v38, %v2425_v43  ;;  %v576_v23 = vld [vmem:[%s4708_s0 + $0x90] sm:$0xff] }
   0xe   :  { %v310_v17 = vadd.f32 %v309_v62, %v2448_v56  ;;  %v323_v21 = vmul.f32 %v2448_v56, %v2448_v56  ;;  %v327_v22 = vadd.f32 %v326_v6, %v321_v57  ;;  %v2486_v24 = vmul.f32 0.0, %v2456_v60 }
   0xf   :  { %v33_v45 = vrot.slane %v32_v35, 4  ;;  %v51_v46 = vadd.f32 %v50_v36, %v45_v26  ;;  %v2489_v26 = vmul.f32 0.0, %v2439_v51  ;;  %v581_v29 = vadd.f32 %v575_v9, %v574_v7 }
  0x10   :  { %v311_v28 = vrot.slane %v310_v17, 4  ;;  %v2492_v33 = vmul.f32 0.0, %v2459_v61  ;;  %v328_v34 = vadd.f32 %v327_v22, %v322_v5  ;;  %v593_v38 = vmul.f32 %v574_v7, %v574_v7  ;;  %v579_v7 = vld [vmem:[%s4708_s0 + $0x150] sm:$0xff] }
  0x11   :  { %v34_v54 = vadd.f32 %v33_v45, %v32_v35  ;;  %v52_v55 = vrot.slane %v51_v46, 4  ;;  %v577_v35 = vld [vmem:[%s4708_s0 + $0xd0] sm:$0xff]  ;;  %v582_v37 = vadd.f32 %v581_v29, %v576_v23  ;;  %v594_v40 = vmul.f32 %v575_v9, %v575_v9 }
  0x12   :  { %v312_v36 = vadd.f32 %v311_v28, %v310_v17  ;;  %v329_v48 = vadd.f32 %v328_v34, %v323_v21  ;;  %v596_v9 = vmul.f32 %v577_v35, %v577_v35  ;;  %v2527_v21 = vld [vmem:[%s4708_s0 + $0x98] sm:$0xff] }
  0x13   :  { %v35_v63 = vrot.slane %v34_v54, 2  ;;  %v53_v4 = vadd.f32 %v52_v55, %v51_v46  ;;  %v2498_v46 = vmul.f32 0.0, %v2453_v59  ;;  %v2512_v55 = vmul.f32 0.0, %v2477_v12 }
  0x14   :  { %v313_v57 = vrot.slane %v312_v36, 2  ;;  %v583_v62 = vadd.f32 %v582_v37, %v577_v35  ;;  %v330_v6 = vrot.slane %v329_v48, 4  ;;  %v397_v35 = vld [vmem:[%s4709_s3 + $0x44] sm:$0x7]  ;;  %v597_v37 = vmul.f32 %v578_v49, %v578_v49 }
  0x15   :  { %v36_v18 = vadd.f32 %v35_v63, %v34_v54  ;;  %v54_v19 = vrot.slane %v53_v4, 2  ;;  %v2509_v54 = vld [vmem:[%s4708_s0 + $0x58] sm:$0xff]  ;;  %4798 = vst [vmem:[#allocation7_spill] sm:$0xff] %v2512_v55  ;;  %v595_v63 = vmul.f32 %v576_v23, %v576_v23  ;;  %v2556_v56 = vrot.slane %v397_v35, %v2419_v41 }
  0x16   :  { %v314_v17 = vadd.f32 %v313_v57, %v312_v36  ;;  %v857_v22 = vadd.f32 %v2509_v54, %v850_v53  ;;  %v331_v29 = vadd.f32 %v330_v6, %v329_v48  ;;  %v2549_v48 = vrot.slane %v2517_v58, %v2419_v41 }
  0x17   :  { %v37_v30 = vrot.slane %v36_v18, 1  ;;  %v55_v32 = vadd.f32 %v54_v19, %v53_v4  ;;  %v600_v19 = vadd.f32 %v594_v40, %v593_v38  ;;  %v2545_v40 = vld [vmem:[%s4708_s0 + $0xd8] sm:$0xff] }
  0x18   :  { %v315_v34 = vrot.slane %v314_v17, 1  ;;  %4800 = vst [vmem:[#allocation9_spill] sm:$0xff] %v2549_v48  ;;  %v858_v57 = vadd.f32 %v857_v22, %v2527_v21 }
  0x19   :  { %v38_v44 = vadd.f32 %v37_v30, %v36_v18  ;;  %v56_v45 = vrot.slane %v55_v32, 1  ;;  %v584_v18 = vadd.f32 %v583_v62, %v578_v49  ;;  %v2534_v30 = vrot.slane %v2517_v58, %v2388_v27 }
  0x1a   :  { %v601_v38 = vadd.f32 %v600_v19, %v595_v63  ;;  %v316_v62 = vadd.f32 %v315_v34, %v314_v17  ;;  %v598_v63 = vmul.f32 %v579_v7, %v579_v7  ;;  %v859_v22 = vadd.f32 %v858_v57, %v2545_v40 }
  0x1b   :  { %v57_v4 = vadd.f32 %v56_v45, %v55_v32  ;;  %v2519_v5 = vmul.f32 0.020408163, %v38_v44  ;;  %4799 = vst [vmem:[#allocation8_spill] sm:$0xff] %v2534_v30  ;;  %v580_v32 = vld [vmem:[%s4708_s0 + $0x190] sm:$0xff]  ;;  %v585_v36 = vadd.f32 %v584_v18, %v579_v7  ;;  %v332_v45 = vrot.slane %v331_v29, 2 }
  0x1c   :  { %v602_v6 = vadd.f32 %v601_v38, %v596_v9  ;;  %v2564_v17 = vmul.f32 0.020408163, %v316_v62  ;;  %v599_v34 = vmul.f32 %v580_v32, %v580_v32  ;;  %v2575_v38 = vld [vmem:[%s4708_s0 + $0x158] sm:$0xff] }
  0x1d   :  { %v59_v23 = vmul.f32 0.020408163, %v57_v4  ;;  %v60_v28 = vmul.f32 %v2519_v5, %v2519_v5  ;;  %v395_v4 = vld [vmem:[%s4709_s3 + $0x4] sm:$0x7]  ;;  %v586_v49 = vadd.f32 %v585_v36, %v580_v32  ;;  %v333_v19 = vadd.f32 %v332_v45, %v331_v29 }
  0x1e   :  { %v603_v48 = vadd.f32 %v602_v6, %v597_v37  ;;  %v2567_v9 = vrot.slane %v395_v4, %v2419_v41  ;;  %v2570_v29 = vrot.slane %v397_v35, %v2388_v27  ;;  %v338_v62 = vmul.f32 %v2564_v17, %v2564_v17  ;;  %v856_v6 = vld [vmem:[%s4708_s0 + $0x198] sm:$0xff] }
  0x1f   :  { %v61_v44 = vsub.f32 %v59_v23, %v60_v28  ;;  %v2561_v23 = vld [vmem:[%s4708_s0 + $0x118] sm:$0xff]  ;;  %v587_v28 = vrot.slane %v586_v49, 4  ;;  %v334_v7 = vrot.slane %v333_v19, 1 }
  0x20   :  { %4801 = vst [vmem:[#allocation10_spill] sm:$0xff] %v2567_v9  ;;  %4802 = vst [vmem:[#allocation11_spill] sm:$0xff] %v2570_v29  ;;  %v604_v57 = vadd.f32 %v603_v48, %v598_v63  ;;  %v860_v32 = vadd.f32 %v859_v22, %v2561_v23  ;;  %v2597_v22 = vrot.slane %v2517_v58, %v2425_v43  ;;  %v672_v58 = vld [vmem:[%s4709_s3 + $0x28] sm:$0x7] }
  0x21   :  { %v62_v18 = vmax.f32 %v61_v44, 0.0  ;;  %v2578_v44 = vrot.slane %v395_v4, %v2388_v27  ;;  %v588_v45 = vadd.f32 %v587_v28, %v586_v49  ;;  %v335_v37 = vadd.f32 %v334_v7, %v333_v19 }
  0x22   :  { %v605_v55 = vadd.f32 %v604_v57, %v599_v34  ;;  %v861_v48 = vadd.f32 %v860_v32, %v2575_v38  ;;  %v870_v49 = vmul.f32 %v2509_v54, %v2509_v54  ;;  %v2593_v19 = vmul.f32 0.0, %v2567_v9  ;;  %4805 = vst [vmem:[#allocation14_spill] sm:$0xff] %v2597_v22 }
  0x23   :  { %v64_v36 = vadd.f32 1e-05, %v62_v18  ;;  %4803 = vst [vmem:[#allocation12_spill] sm:$0xff] %v2578_v44  ;;  %v869_v18 = vmul.f32 %v850_v53, %v850_v53  ;;  %v589_v30 = vrot.slane %v588_v45, 2  ;;  %v337_v63 = vmul.f32 0.020408163, %v335_v37 }
  0x24   :  { %4804 = vst [vmem:[#allocation13_spill] sm:$0xff] %v2593_v19  ;;  %v2600_v53 = vrot.slane %v397_v35, %v2425_v43  ;;  %v2603_v28 = vrot.slane %v395_v4, %v2425_v43  ;;  %v862_v7 = vadd.f32 %v861_v48, %v856_v6  ;;  %v2606_v54 = vmul.f32 0.0, %v2578_v44  ;;  %v1126_v44 = vld [vmem:[%s4708_s0 + $0x20] sm:$0xff] }
  0x25   :  { %2249 = vrsqrt.f32 %v64_v36  ;;  %v590_v34 = vadd.f32 %v589_v30, %v588_v45  ;;  %v606_v36 = vrot.slane %v605_v55, 4  ;;  %v339_v57 = vsub.f32 %v337_v63, %v338_v62  ;;  %v673_v30 = vld [vmem:[%s4709_s3 + $0x48] sm:$0x7] }
  0x26   :  { %4806 = vst [vmem:[#allocation15_spill] sm:$0xff] %v2600_v53  ;;  %4807 = vst [vmem:[#allocation16_spill] sm:$0xff] %v2603_v28  ;;  %v2609_v32 = vmul.f32 0.0, %v2556_v56  ;;  %v2615_v35 = vrot.slane %v671_v47, %v2419_v41  ;;  %v2618_v4 = vmul.f32 0.0, %v2570_v29  ;;  %v2624_v45 = vrot.slane %v671_v47, %v2388_v27 }
  0x27   :  { %4808 = vst [vmem:[#allocation17_spill] sm:$0xff] %v2606_v54  ;;  %v871_v37 = vmul.f32 %v2527_v21, %v2527_v21  ;;  %v876_v62 = vadd.f32 %v870_v49, %v869_v18  ;;  %v340_v48 = vmax.f32 %v339_v57, 0.0  ;;  %v591_v63 = vrot.slane %v590_v34, 1  ;;  %v63_v18 = vld [vmem:[%s4710_s1] sm:$0x1] }
  0x28   :  { %4809 = vst [vmem:[#allocation18_spill] sm:$0xff] %v2609_v32  ;;  %4810 = vst [vmem:[#allocation19_spill] sm:$0xff] %v2615_v35  ;;  %v607_v32 = vadd.f32 %v606_v36, %v605_v55  ;;  %v863_v54 = vrot.slane %v862_v7, 4  ;;  %v2635_v19 = vmul.f32 0.0, %v2603_v28  ;;  %v2638_v9 = vmul.f32 0.0, %v2600_v53 }
  0x29   :  { %4811 = vst [vmem:[#allocation20_spill] sm:$0xff] %v2618_v4  ;;  %4812 = vst [vmem:[#allocation21_spill] sm:$0xff] %v2624_v45  ;;  %v1127_v4 = vld [vmem:[%s4708_s0 + $0x60] sm:$0xff]  ;;  %v2641_v21 = vrot.slane %v672_v58, %v2388_v27  ;;  %v2644_v55 = vrot.slane %v672_v58, %v2419_v41  ;;  %v342_v49 = vadd.f32 1e-05, %v340_v48  ;;  %v2650_v36 = vrot.slane %v673_v30, %v2419_v41 }
  0x2a   :  { %4813 = vst [vmem:[#allocation22_spill] sm:$0xff] %v2635_v19  ;;  %4814 = vst [vmem:[#allocation23_spill] sm:$0xff] %v2638_v9  ;;  %v2653_v57 = vmul.f32 0.0, %v2615_v35  ;;  %v2656_v19 = vrot.slane %v673_v30, %v2388_v27  ;;  %v2659_v9 = vmul.f32 0.0, %v2624_v45  ;;  %v1133_v28 = vadd.f32 %v1127_v4, %v1126_v44 }
  0x2b   :  { %4815 = vst [vmem:[#allocation24_spill] sm:$0xff] %v2641_v21  ;;  %4816 = vst [vmem:[#allocation25_spill] sm:$0xff] %v2644_v55  ;;  %v872_v55 = vmul.f32 %v2545_v40, %v2545_v40  ;;  %v877_v21 = vadd.f32 %v876_v62, %v871_v37  ;;  %v592_v22 = vadd.f32 %v591_v63, %v590_v34  ;;  %v608_v48 = vrot.slane %v607_v32, 2  ;;  %v67_v34 = vld [vmem:[%s4711_s2] sm:$0x1] }
  0x2c   :  { %4817 = vst [vmem:[#allocation26_spill] sm:$0xff] %v2650_v36  ;;  %4818 = vst [vmem:[#allocation27_spill] sm:$0xff] %v2653_v57  ;;  %v2664_v29 = vrot.slane %v671_v47, %v2425_v43  ;;  %v864_v36 = vadd.f32 %v863_v54, %v862_v7  ;;  %v1128_v57 = vld [vmem:[%s4708_s0 + $0xa0] sm:$0xff]  ;;  %2251 = vrsqrt.f32 %v342_v49  ;;  %v873_v40 = vmul.f32 %v2561_v23, %v2561_v23 }
  0x2d   :  { %4819 = vst [vmem:[#allocation28_spill] sm:$0xff] %v2656_v19  ;;  %4820 = vst [vmem:[#allocation29_spill] sm:$0xff] %v2659_v9  ;;  %v2670_v9 = vrot.slane %v672_v58, %v2425_v43  ;;  %v2678_v47 = vrot.slane %v673_v30, %v2425_v43  ;;  %v874_v7 = vmul.f32 %v2575_v38, %v2575_v38  ;;  %v1129_v38 = vld [vmem:[%s4708_s0 + $0xe0] sm:$0xff] }
  0x2e   :  { %4821 = vst [vmem:[#allocation30_spill] sm:$0xff] %v2664_v29  ;;  %v2682_v54 = vmul.f32 %v856_v6, %v856_v6  ;;  %v878_v62 = vadd.f32 %v877_v21, %v872_v55  ;;  %v1134_v23 = vadd.f32 %v1133_v28, %v1128_v57  ;;  %v609_v63 = vadd.f32 %v608_v48, %v607_v32 }
  0x2f   :  { %v2250_v53 = vpop.eup %2249  ;;  %4822 = vst [vmem:[#allocation31_spill] sm:$0xff] %v2670_v9  ;;  %4823 = vst [vmem:[#allocation32_spill] sm:$0xff] %v2678_v47  ;;  %v2692_v30 = vmul.f32 0.0, %v2664_v29  ;;  %v865_v49 = vrot.slane %v864_v36, 2  ;;  %v2705_v29 = vmul.f32 %v1127_v4, %v1127_v4 }
  0x30   :  { %v66_v35 = vmul.f32 %v2250_v53, %v63_v18  ;;  %v2684_v53 = vmul.f32 %v1126_v44, %v1126_v44  ;;  %v2689_v18 = vmul.f32 0.020408163, %v592_v22  ;;  %v879_v48 = vadd.f32 %v878_v62, %v873_v40  ;;  %v341_v62 = vld [vmem:[%s4710_s1 + $0x1] sm:$0x1] }
  0x31   :  { %4826 = vst [vmem:[#allocation35_spill] sm:$0xff] %v2692_v30  ;;  %v1135_v30 = vadd.f32 %v1134_v23, %v1129_v38  ;;  %4827 = vst [vmem:[#allocation36_spill] sm:$0xff] %v2705_v29  ;;  %v2721_v23 = vadd.f32 %v865_v49, %v864_v36 }
  0x32   :  { %4824 = vst [vmem:[#allocation33_spill] sm:$0xff] %v2684_v53  ;;  %v68_v58 = vmul.f32 %v66_v35, %v2519_v5  ;;  %v74_v37 = vrot.slane %v66_v35, %v2419_v41  ;;  %4825 = vst [vmem:[#allocation34_spill] sm:$0xff] %v2689_v18 }
  0x34   :  { %v69_v44 = vsub.f32 %v67_v34, %v68_v58  ;;  %v76_v5 = vmul.f32 %v74_v37, %v2317_v0  ;;  %v77_v6 = vmul.f32 %v74_v37, %v2322_v1  ;;  %v78_v28 = vmul.f32 %v74_v37, %v2327_v2 }
  0x35   :  { %v79_v35 = vmul.f32 %v74_v37, %v2332_v3  ;;  %v80_v22 = vmul.f32 %v74_v37, %v2343_v8  ;;  %v81_v32 = vmul.f32 %v74_v37, %v2358_v14  ;;  %v82_v21 = vmul.f32 %v74_v37, %v2368_v16  ;;  %v1130_v16 = vld [vmem:[%s4708_s0 + $0x120] sm:$0xff] }
  0x36   :  { %v87_v55 = vrot.slane %v69_v44, %v2419_v41  ;;  %v610_v34 = vrot.slane %v609_v63, 1  ;;  %v2709_v0 = vmul.f32 %v2689_v18, %v2689_v18  ;;  %v2711_v1 = vmul.f32 %v1128_v57, %v1128_v57  ;;  %v2252_v57 = vpop.eup %2251 }
  0x37   :  { %v2713_v2 = vmul.f32 %v1129_v38, %v1129_v38 }
  0x38   :  { %4828 = vst [vmem:[#allocation37_spill] sm:$0xff] %v2711_v1  ;;  %v89_v3 = vadd.f32 %v87_v55, %v76_v5  ;;  %v90_v8 = vadd.f32 %v87_v55, %v77_v6  ;;  %v91_v14 = vadd.f32 %v87_v55, %v78_v28  ;;  %v92_v58 = vadd.f32 %v87_v55, %v79_v35  ;;  %v2726_v28 = vld [vmem:[%s4708_s0 + $0x160] sm:$0xff] }
  0x39   :  { %4829 = vst [vmem:[#allocation38_spill] sm:$0xff] %v2713_v2  ;;  %v93_v40 = vadd.f32 %v87_v55, %v80_v22  ;;  %v94_v4 = vadd.f32 %v87_v55, %v81_v32  ;;  %v95_v37 = vadd.f32 %v87_v55, %v82_v21  ;;  %4830 = vst [vmem:[#allocation39_spill] sm:$0xff] %v2726_v28 }
  0x3a   :  { %v96_v38 = vmax.f32 %v89_v3, 0.0  ;;  %v97_v44 = vmax.f32 %v90_v8, 0.0  ;;  %v98_v5 = vmax.f32 %v91_v14, 0.0  ;;  %v99_v6 = vmax.f32 %v92_v58, 0.0 }
  0x3b   :  { %v100_v35 = vmax.f32 %v93_v40, 0.0  ;;  %v101_v22 = vmax.f32 %v94_v4, 0.0  ;;  %v2728_v32 = vadd.f32 %v879_v48, %v874_v7  ;;  %v2730_v21 = vadd.f32 %v1135_v30, %v1130_v16 }
  0x3c   :  { %v103_v55 = vmin.f32 %v96_v38, 6.0  ;;  %v104_v45 = vmin.f32 %v97_v44, 6.0  ;;  %v105_v36 = vmin.f32 %v98_v5, 6.0  ;;  %v102_v49 = vmax.f32 %v95_v37, 0.0 }
  0x3d   :  { %4831 = vst [vmem:[#allocation40_spill] sm:$0xff] %v2730_v21  ;;  %v106_v9 = vmin.f32 %v99_v6, 6.0  ;;  %v2732_v3 = vmul.f32 %v2252_v57, %v341_v62  ;;  %v2734_v8 = vmul.f32 %v1130_v16, %v1130_v16  ;;  %v2738_v14 = vmul.f32 %v2726_v28, %v2726_v28 }
  0x3e   :  { %v112_v58 = vsel %vm19_vm0, %v103_v55, 0.0  ;;  %v113_v7 = vsel %vm19_vm0, %v104_v45, 0.0  ;;  %v2746_v30 = vsel %vm19_vm0, %v105_v36, 0.0  ;;  %v2748_v48 = vadd.f32 %v610_v34, %v609_v63 }
  0x3f   :  { %4832 = vst [vmem:[#allocation41_spill] sm:$0xff] %v2734_v8  ;;  %4833 = vst [vmem:[#allocation42_spill] sm:$0xff] %v2738_v14  ;;  %v122_v40 = vrot.slane %v112_v58, 7  ;;  %v123_v4 = vrot.slane %v113_v7, 7  ;;  %v129_v16 = vrot.slane %v112_v58, 1  ;;  %v107_v37 = vmin.f32 %v100_v35, 6.0 }
  0x40   :  { %v140_v62 = vmul.f32 %v2422_v42, %v112_v58  ;;  %v124_v57 = vrot.slane %v2746_v30, 7  ;;  %v108_v38 = vmin.f32 %v101_v22, 6.0  ;;  %v2752_v44 = vmin.f32 %v102_v49, 6.0 }
  0x41   :  { %v151_v5 = vmul.f32 %v2436_v50, %v122_v40  ;;  %v169_v45 = vmul.f32 %v2439_v51, %v123_v4  ;;  %v2758_v6 = vsel %vm19_vm0, %v106_v9, 0.0  ;;  %v2762_v63 = vmul.f32 %v2732_v3, %v2564_v17 }
  0x42   :  { %v130_v34 = vrot.slane %v113_v7, 1  ;;  %v141_v35 = vmul.f32 %v2422_v42, %v113_v7  ;;  %v152_v55 = vmul.f32 %v2436_v50, %v123_v4  ;;  %v170_v22 = vmul.f32 %v2439_v51, %v124_v57 }
  0x43   :  { %v158_v36 = vadd.f32 %v151_v5, %v140_v62  ;;  %v205_v49 = vmul.f32 %v2453_v59, %v113_v7  ;;  %v241_v14 = vmul.f32 %v2474_v11, %v129_v16  ;;  %v2770_v8 = vrot.slane %v2746_v30, 1 }
  0x44   :  { %v259_v9 = vmul.f32 %v2477_v12, %v130_v34  ;;  %v159_v2 = vadd.f32 %v152_v55, %v141_v35  ;;  %v188_v17 = vmul.f32 %v2442_v52, %v122_v40  ;;  %v125_v43 = vrot.slane %v2758_v6, 7 }
  0x45   :  { %v176_v18 = vadd.f32 %v169_v45, %v158_v36  ;;  %v206_v27 = vmul.f32 %v2453_v59, %v2746_v30  ;;  %v142_v62 = vmul.f32 %v2422_v42, %v2746_v30  ;;  %v153_v5 = vmul.f32 %v2436_v50, %v124_v57 }
  0x46   :  { %v177_v47 = vadd.f32 %v170_v22, %v159_v2  ;;  %v224_v19 = vmul.f32 %v2456_v60, %v112_v58  ;;  %v242_v1 = vmul.f32 %v2474_v11, %v130_v34  ;;  %v171_v35 = vmul.f32 %v2439_v51, %v125_v43 }
  0x47   :  { %v194_v40 = vadd.f32 %v2471_v10, %v176_v18  ;;  %v260_v45 = vmul.f32 %v2477_v12, %v2770_v8  ;;  %v160_v55 = vadd.f32 %v153_v5, %v142_v62  ;;  %v189_v36 = vmul.f32 %v2442_v52, %v123_v4 }
  0x48   :  { %v195_v29 = vadd.f32 %v188_v17, %v177_v47  ;;  %v278_v53 = vmul.f32 %v2459_v61, %v129_v16  ;;  %v2789_v21 = vrot.slane %v2758_v6, 1  ;;  %v2793_v2 = vsel %vm19_vm0, %v107_v37, 0.0 }
  0x49   :  { %v212_v58 = vadd.f32 %v205_v49, %v194_v40  ;;  %v178_v22 = vadd.f32 %v171_v35, %v160_v55  ;;  %v207_v10 = vmul.f32 %v2453_v59, %v2758_v6  ;;  %v2798_v18 = vrot.slane %v2793_v2, 7 }
  0x4a   :  { %v213_v62 = vadd.f32 %v206_v27, %v195_v29  ;;  %v225_v47 = vmul.f32 %v2456_v60, %v113_v7  ;;  %v143_v4 = vmul.f32 %v2422_v42, %v2758_v6  ;;  %v154_v16 = vmul.f32 %v2436_v50, %v125_v43 }
  0x4b   :  { %v230_v17 = vadd.f32 %v2486_v24, %v212_v58  ;;  %v196_v37 = vadd.f32 %v189_v36, %v178_v22  ;;  %v243_v49 = vmul.f32 %v2474_v11, %v2770_v8  ;;  %v172_v5 = vmul.f32 %v2439_v51, %v2798_v18 }
  0x4c   :  { %v231_v35 = vadd.f32 %v224_v19, %v213_v62  ;;  %v261_v27 = vmul.f32 %v2477_v12, %v2789_v21  ;;  %v161_v29 = vadd.f32 %v154_v16, %v143_v4  ;;  %v190_v7 = vmul.f32 %v2442_v52, %v124_v57 }
  0x4d   :  { %v248_v40 = vadd.f32 %v241_v14, %v230_v17  ;;  %v214_v55 = vadd.f32 %v207_v10, %v196_v37  ;;  %v279_v28 = vmul.f32 %v2459_v61, %v130_v34  ;;  %v208_v24 = vmul.f32 %v2453_v59, %v2793_v2 }
  0x4e   :  { %v249_v36 = vadd.f32 %v242_v1, %v231_v35  ;;  %v179_v58 = vadd.f32 %v172_v5, %v161_v29  ;;  %v2817_v22 = vsel %vm19_vm0, %v108_v38, 0.0  ;;  %v144_v19 = vmul.f32 %v2422_v42, %v2793_v2 }
  0x4f   :  { %v266_v62 = vadd.f32 %v259_v9, %v248_v40  ;;  %v232_v4 = vadd.f32 %v225_v47, %v214_v55  ;;  %v2822_v57 = vrot.slane %v2793_v2, 1  ;;  %v127_v14 = vrot.slane %v2817_v22, 7 }
  0x50   :  { %v267_v34 = vadd.f32 %v260_v45, %v249_v36  ;;  %v197_v10 = vadd.f32 %v190_v7, %v179_v58  ;;  %v226_v1 = vmul.f32 %v2456_v60, %v2746_v30  ;;  %v155_v16 = vmul.f32 %v2436_v50, %v2798_v18 }
  0x51   :  { %v284_v38 = vadd.f32 %v2492_v33, %v266_v62  ;;  %v250_v17 = vadd.f32 %v243_v49, %v232_v4  ;;  %v244_v9 = vmul.f32 %v2474_v11, %v2789_v21  ;;  %v173_v47 = vmul.f32 %v2439_v51, %v127_v14 }
  0x52   :  { %v285_v37 = vadd.f32 %v278_v53, %v267_v34  ;;  %v215_v5 = vadd.f32 %v208_v24, %v197_v10  ;;  %v162_v35 = vadd.f32 %v155_v16, %v144_v19  ;;  %v191_v45 = vmul.f32 %v2442_v52, %v125_v43 }
  0x53   :  { %291 = vst [vmem:[%s4712_s4] sm:$0xff] %v284_v38  ;;  %v268_v30 = vadd.f32 %v261_v27, %v250_v17  ;;  %v262_v29 = vmul.f32 %v2477_v12, %v2822_v57  ;;  %v280_v33 = vmul.f32 %v2459_v61, %v2770_v8  ;;  %v209_v49 = vmul.f32 %v2453_v59, %v2817_v22  ;;  %v345_v38 = vld [vmem:[%s4711_s2 + $0x1] sm:$0x1] }
  0x54   :  { %292 = vst [vmem:[%s4712_s4 + $0x40] sm:$0xff] %v285_v37  ;;  %v233_v53 = vadd.f32 %v226_v1, %v215_v5  ;;  %v180_v43 = vadd.f32 %v173_v47, %v162_v35  ;;  %v118_v7 = vsel %vm19_vm0, %v2752_v44, 0.0  ;;  %v145_v27 = vmul.f32 %v2422_v42, %v2817_v22 }
  0x55   :  { %v286_v40 = vadd.f32 %v279_v28, %v268_v30  ;;  %v2852_v55 = vrot.slane %v2817_v22, 1  ;;  %v227_v8 = vmul.f32 %v2456_v60, %v2758_v6  ;;  %v128_v24 = vrot.slane %v118_v7, 7 }
  0x56   :  { %v251_v36 = vadd.f32 %v244_v9, %v233_v53  ;;  %v198_v58 = vadd.f32 %v191_v45, %v180_v43  ;;  %v245_v19 = vmul.f32 %v2474_v11, %v2822_v57  ;;  %v156_v62 = vmul.f32 %v2436_v50, %v127_v14 }
  0x57   :  { %293 = vst [vmem:[%s4712_s4 + $0x80] sm:$0xff] %v286_v40  ;;  %v263_v28 = vmul.f32 %v2477_v12, %v2852_v55  ;;  %v281_v44 = vmul.f32 %v2459_v61, %v2789_v21  ;;  %v146_v6 = vmul.f32 %v2422_v42, %v118_v7  ;;  %v174_v4 = vmul.f32 %v2439_v51, %v128_v24 }
  0x58   :  { %v269_v34 = vadd.f32 %v262_v29, %v251_v36  ;;  %v216_v10 = vadd.f32 %v209_v49, %v198_v58  ;;  %v163_v1 = vadd.f32 %v156_v62, %v145_v27  ;;  %v192_v16 = vmul.f32 %v2442_v52, %v2798_v18 }
  0x59   :  { %v135_v17 = vrot.slane %v118_v7, 1  ;;  %v210_v9 = vmul.f32 %v2453_v59, %v118_v7  ;;  %v228_v21 = vmul.f32 %v2456_v60, %v2793_v2  ;;  %v157_v42 = vmul.f32 %v2436_v50, %v128_v24 }
  0x5a   :  { %v287_v47 = vadd.f32 %v280_v33, %v269_v34  ;;  %v234_v51 = vadd.f32 %v227_v8, %v216_v10  ;;  %v181_v37 = vadd.f32 %v174_v4, %v163_v1  ;;  %v246_v5 = vmul.f32 %v2474_v11, %v2852_v55  ;;  %v4834_v1 = vld [vmem:[#allocation5_spill] sm:$0xff] }
  0x5b   :  { %v164_v35 = vadd.f32 %v157_v42, %v146_v6  ;;  %v193_v18 = vmul.f32 %v2442_v52, %v127_v14  ;;  %v347_v45 = vsub.f32 %v345_v38, %v2762_v63  ;;  %v2883_v30 = vrot.slane %v2732_v3, %v2419_v41 }
  0x5c   :  { %294 = vst [vmem:[%s4712_s4 + $0xc0] sm:$0xff] %v287_v47  ;;  %v252_v50 = vadd.f32 %v245_v19, %v234_v51  ;;  %v199_v59 = vadd.f32 %v192_v16, %v181_v37  ;;  %v264_v2 = vmul.f32 %v2477_v12, %v135_v17  ;;  %v229_v29 = vmul.f32 %v2456_v60, %v2817_v22  ;;  %v4836_v47 = vld [vmem:[#allocation8_spill] sm:$0xff] }
  0x5d   :  { %v182_v33 = vadd.f32 %v2489_v26, %v164_v35  ;;  %v354_v52 = vmul.f32 %v2883_v30, %v2353_v13  ;;  %v355_v3 = vmul.f32 %v2883_v30, %v2363_v15  ;;  %v2897_v63 = vrot.slane %v347_v45, %v2419_v41 }
  0x5e   :  { %v270_v14 = vadd.f32 %v263_v28, %v252_v50  ;;  %v217_v49 = vadd.f32 %v210_v9, %v199_v59  ;;  %v356_v53 = vmul.f32 %v2883_v30, %v2383_v25  ;;  %v357_v12 = vmul.f32 %v2883_v30, %v2397_v31 }
  0x5f   :  { %v200_v60 = vadd.f32 %v193_v18, %v182_v33  ;;  %v367_v26 = vadd.f32 %v2897_v63, %v354_v52  ;;  %v368_v22 = vadd.f32 %v2897_v63, %v355_v3  ;;  %v358_v13 = vmul.f32 %v2883_v30, %v2414_v39 }
  0x60   :  { %v288_v15 = vadd.f32 %v281_v44, %v270_v14  ;;  %v235_v43 = vadd.f32 %v228_v21, %v217_v49  ;;  %v369_v7 = vadd.f32 %v2897_v63, %v356_v53  ;;  %v370_v27 = vadd.f32 %v2897_v63, %v357_v12  ;;  %v4838_v14 = vld [vmem:[#allocation11_spill] sm:$0xff] }
  0x61   :  { %v218_v40 = vadd.f32 %v2498_v46, %v200_v60  ;;  %v247_v25 = vmul.f32 %v2474_v11, %v135_v17  ;;  %v374_v8 = vmax.f32 %v367_v26, 0.0  ;;  %v375_v31 = vmax.f32 %v368_v22, 0.0  ;;  %v4840_v22 = vld [vmem:[#allocation15_spill] sm:$0xff] }
  0x62   :  { %295 = vst [vmem:[%s4712_s4 + $0x100] sm:$0xff] %v288_v15  ;;  %v253_v24 = vadd.f32 %v246_v5, %v235_v43  ;;  %v282_v39 = vmul.f32 %v2459_v61, %v2822_v57  ;;  %v376_v36 = vmax.f32 %v369_v7, 0.0  ;;  %v867_v58 = vrot.slane %v2721_v23, 1  ;;  %v4837_v5 = vld [vmem:[#allocation9_spill] sm:$0xff]  ;;  %v4841_v43 = vld [vmem:[#allocation10_spill] sm:$0xff] }
  0x63   :  { %v236_v19 = vadd.f32 %v229_v29, %v218_v40  ;;  %v381_v62 = vmin.f32 %v374_v8, 6.0  ;;  %v382_v28 = vmin.f32 %v375_v31, 6.0  ;;  %v371_v46 = vadd.f32 %v2897_v63, %v358_v13  ;;  %v4842_v31 = vld [vmem:[#allocation13_spill] sm:$0xff] }
  0x64   :  { %v271_v44 = vadd.f32 %v264_v2, %v253_v24  ;;  %v283_v11 = vmul.f32 %v2459_v61, %v2852_v55  ;;  %v383_v6 = vmin.f32 %v376_v36, 6.0  ;;  %v377_v4 = vmax.f32 %v370_v27, 0.0  ;;  %v4835_v55 = vld [vmem:[#allocation7_spill] sm:$0xff] }
  0x65   :  { %v254_v34 = vadd.f32 %v247_v25, %v236_v19  ;;  %v2922_v10 = vsel %vm19_vm0, %v381_v62, 0.0  ;;  %v389_v57 = vsel %vm19_vm0, %v382_v28, 0.0  ;;  %v359_v16 = vmul.f32 %v2883_v30, %v4834_v1  ;;  %v4843_v62 = vld [vmem:[#allocation12_spill] sm:$0xff] }
  0x66   :  { %v289_v38 = vadd.f32 %v282_v39, %v271_v44  ;;  %v398_v17 = vrot.slane %v2922_v10, 7  ;;  %v399_v9 = vrot.slane %v389_v57, 7  ;;  %v2931_v61 = vadd.f32 %v2728_v32, %v2682_v54 }
  0x67   :  { %v272_v21 = vadd.f32 %v4835_v55, %v254_v34  ;;  %v405_v42 = vrot.slane %v2922_v10, 1  ;;  %v416_v51 = vmul.f32 %v4836_v47, %v2922_v10  ;;  %v378_v37 = vmax.f32 %v371_v46, 0.0  ;;  %v4844_v55 = vld [vmem:[#allocation17_spill] sm:$0xff] }
  0x68   :  { %296 = vst [vmem:[%s4712_s4 + $0x140] sm:$0xff] %v289_v38  ;;  %v427_v35 = vmul.f32 %v4837_v5, %v398_v17  ;;  %v445_v18 = vmul.f32 %v2556_v56, %v399_v9  ;;  %v390_v54 = vsel %vm19_vm0, %v383_v6, 0.0  ;;  %v2945_v32 = vmul.f32 0.020408163, %v2748_v48  ;;  %v4839_v48 = vld [vmem:[#allocation14_spill] sm:$0xff] }
  0x69   :  { %v290_v45 = vadd.f32 %v283_v11, %v272_v21  ;;  %v400_v50 = vrot.slane %v390_v54, 7  ;;  %v384_v59 = vmin.f32 %v377_v4, 6.0  ;;  %v2948_v2 = vadd.f32 %v2897_v63, %v359_v16 }
  0x6a   :  { %v406_v29 = vrot.slane %v389_v57, 1  ;;  %v434_v33 = vadd.f32 %v427_v35, %v416_v51  ;;  %v417_v52 = vmul.f32 %v4836_v47, %v389_v57  ;;  %v428_v3 = vmul.f32 %v4837_v5, %v399_v9 }
  0x6b   :  { %297 = vst [vmem:[%s4712_s4 + $0x180] sm:$0xff] %v290_v45  ;;  %v481_v49 = vmul.f32 %v4838_v14, %v389_v57  ;;  %v517_v53 = vmul.f32 %v4839_v48, %v405_v42  ;;  %v446_v12 = vmul.f32 %v2556_v56, %v400_v50  ;;  %v385_v60 = vmin.f32 %v378_v37, 6.0 }
  0x6c   :  { %v452_v26 = vadd.f32 %v445_v18, %v434_v33  ;;  %v535_v13 = vmul.f32 %v4840_v22, %v406_v29  ;;  %v435_v15 = vadd.f32 %v428_v3, %v417_v52  ;;  %v464_v7 = vmul.f32 %v4841_v43, %v398_v17 }
  0x6d   :  { %v2960_v27 = vrot.slane %v390_v54, 1  ;;  %v2964_v40 = vsel %vm19_vm0, %v384_v59, 0.0  ;;  %v418_v25 = vmul.f32 %v4836_v47, %v390_v54  ;;  %v429_v8 = vmul.f32 %v4837_v5, %v400_v50 }
  0x6e   :  { %v470_v24 = vadd.f32 %v4842_v31, %v452_v26  ;;  %v453_v39 = vadd.f32 %v446_v12, %v435_v15  ;;  %v482_v36 = vmul.f32 %v4838_v14, %v390_v54  ;;  %v2971_v19 = vrot.slane %v2964_v40, 7  ;;  %v4845_v12 = vld [vmem:[#allocation16_spill] sm:$0xff] }
  0x6f   :  { %v500_v28 = vmul.f32 %v4843_v62, %v2922_v10  ;;  %v518_v46 = vmul.f32 %v4839_v48, %v406_v29  ;;  %v536_v44 = vmul.f32 %v4840_v22, %v2960_v27  ;;  %v436_v11 = vadd.f32 %v429_v8, %v418_v25 }
  0x70   :  { %v488_v6 = vadd.f32 %v481_v49, %v470_v24  ;;  %v471_v4 = vadd.f32 %v464_v7, %v453_v39  ;;  %v447_v34 = vmul.f32 %v2556_v56, %v2971_v19  ;;  %v465_v1 = vmul.f32 %v4841_v43, %v399_v9  ;;  %v4846_v39 = vld [vmem:[#allocation22_spill] sm:$0xff] }
  0x71   :  { %v483_v16 = vmul.f32 %v4838_v14, %v2964_v40  ;;  %v2985_v38 = vsel %vm19_vm0, %v385_v60, 0.0  ;;  %v419_v10 = vmul.f32 %v4836_v47, %v2964_v40  ;;  %v430_v17 = vmul.f32 %v4837_v5, %v2971_v19 }
  0x72   :  { %v506_v21 = vadd.f32 %v4844_v55, %v488_v6  ;;  %v489_v51 = vadd.f32 %v482_v36, %v471_v4  ;;  %v454_v37 = vadd.f32 %v447_v34, %v436_v11  ;;  %v2993_v35 = vrot.slane %v2985_v38, 7 }
  0x73   :  { %v2996_v9 = vrot.slane %v2964_v40, 1  ;;  %v501_v18 = vmul.f32 %v4843_v62, %v389_v57  ;;  %v437_v45 = vadd.f32 %v430_v17, %v419_v10  ;;  %v466_v59 = vmul.f32 %v4841_v43, %v400_v50  ;;  %v4847_v10 = vld [vmem:[#allocation6_spill] sm:$0xff]  ;;  %v4849_v17 = vld [vmem:[#allocation40_spill] sm:$0xff] }
  0x74   :  { %v524_v33 = vadd.f32 %v517_v53, %v506_v21  ;;  %v507_v52 = vadd.f32 %v500_v28, %v489_v51  ;;  %v472_v3 = vadd.f32 %v465_v1, %v454_v37  ;;  %v448_v49 = vmul.f32 %v2556_v56, %v2993_v35 }
  0x75   :  { %v554_v60 = vmul.f32 %v4845_v12, %v405_v42  ;;  %v519_v26 = vmul.f32 %v4839_v48, %v2960_v27  ;;  %v537_v15 = vmul.f32 %v4840_v22, %v2996_v9  ;;  %v484_v57 = vmul.f32 %v4838_v14, %v2985_v38 }
  0x76   :  { %v542_v7 = vadd.f32 %v535_v13, %v524_v33  ;;  %v525_v25 = vadd.f32 %v518_v46, %v507_v52  ;;  %v490_v50 = vadd.f32 %v483_v16, %v472_v3  ;;  %v455_v53 = vadd.f32 %v448_v49, %v437_v45  ;;  %v1132_v45 = vld [vmem:[%s4708_s0 + $0x1a0] sm:$0xff] }
  0x77   :  { %v502_v8 = vmul.f32 %v4843_v62, %v390_v54  ;;  %v379_v31 = vmax.f32 %v2948_v2, 0.0  ;;  %v420_v42 = vmul.f32 %v4836_v47, %v2985_v38  ;;  %v431_v24 = vmul.f32 %v4837_v5, %v2993_v35 }
  0x78   :  { %v560_v36 = vadd.f32 %v4846_v39, %v542_v7  ;;  %v543_v28 = vadd.f32 %v536_v44, %v525_v25  ;;  %v508_v11 = vadd.f32 %v501_v18, %v490_v50  ;;  %v473_v6 = vadd.f32 %v466_v59, %v455_v53  ;;  %v4850_v25 = vld [vmem:[#allocation33_spill] sm:$0xff] }
  0x79   :  { %v555_v13 = vmul.f32 %v4845_v12, %v406_v29  ;;  %v3018_v46 = vrot.slane %v2985_v38, 1  ;;  %v386_v4 = vmin.f32 %v379_v31, 6.0  ;;  %v615_v54 = vsub.f32 %v2945_v32, %v2709_v0  ;;  %v4848_v32 = vld [vmem:[#allocation39_spill] sm:$0xff] }
  0x7a   :  { %567 = vst [vmem:[%s4712_s4 + $0x8] sm:$0xff] %v560_v36  ;;  %v561_v2 = vadd.f32 %v554_v60, %v543_v28  ;;  %v526_v34 = vadd.f32 %v519_v26, %v508_v11  ;;  %v491_v1 = vadd.f32 %v484_v57, %v473_v6  ;;  %v520_v44 = vmul.f32 %v4839_v48, %v2996_v9 }
  0x7b   :  { %v538_v29 = vmul.f32 %v4840_v22, %v3018_v46  ;;  %v3031_v16 = vsel %vm19_vm0, %v386_v4, 0.0  ;;  %v360_v0 = vmul.f32 %v2883_v30, %v4847_v10  ;;  %v1137_v55 = vadd.f32 %v4849_v17, %v4848_v32 }
  0x7c   :  { %568 = vst [vmem:[%s4712_s4 + $0x48] sm:$0xff] %v561_v2  ;;  %v544_v21 = vadd.f32 %v537_v15, %v526_v34  ;;  %v509_v51 = vadd.f32 %v502_v8, %v491_v1  ;;  %v403_v37 = vrot.slane %v3031_v16, 7  ;;  %v438_v18 = vadd.f32 %v431_v24, %v420_v42  ;;  %v4852_v34 = vld [vmem:[#allocation26_spill] sm:$0xff] }
  0x7d   :  { %v556_v59 = vmul.f32 %v4845_v12, %v2960_v27  ;;  %v373_v30 = vadd.f32 %v2897_v63, %v360_v0  ;;  %v616_v33 = vmax.f32 %v615_v54, 0.0  ;;  %v882_v52 = vrot.slane %v2931_v61, 4  ;;  %v4851_v27 = vld [vmem:[#allocation36_spill] sm:$0xff] }
  0x7e   :  { %v562_v3 = vadd.f32 %v555_v13, %v544_v21  ;;  %v527_v49 = vadd.f32 %v520_v44, %v509_v51  ;;  %v449_v60 = vmul.f32 %v2556_v56, %v403_v37  ;;  %v467_v26 = vmul.f32 %v4841_v43, %v2971_v19 }
  0x7f   :  { %v485_v15 = vmul.f32 %v4838_v14, %v3031_v16  ;;  %v380_v57 = vmax.f32 %v373_v30, 0.0  ;;  %v3053_v7 = vmul.f32 %v1132_v45, %v1132_v45  ;;  %v1152_v50 = vadd.f32 %v4851_v27, %v4850_v25 }
  0x80   :  { %569 = vst [vmem:[%s4712_s4 + $0x88] sm:$0xff] %v562_v3  ;;  %v545_v63 = vadd.f32 %v538_v29, %v527_v49  ;;  %v456_v53 = vadd.f32 %v449_v60, %v438_v18  ;;  %v421_v8 = vmul.f32 %v4836_v47, %v3031_v16  ;;  %v432_v19 = vmul.f32 %v4837_v5, %v403_v37  ;;  %v4853_v29 = vld [vmem:[#allocation37_spill] sm:$0xff]  ;;  %v3106_v60 = vld [vmem:[%s4709_s3 + $0xc] sm:$0x7] }
  0x81   :  { %v387_v31 = vmin.f32 %v380_v57, 6.0  ;;  %v618_v42 = vadd.f32 1e-05, %v616_v33  ;;  %v868_v24 = vadd.f32 %v867_v58, %v2721_v23  ;;  %v3066_v39 = vadd.f32 %v1137_v55, %v1132_v45 }
  0x82   :  { %v563_v36 = vadd.f32 %v556_v59, %v545_v63  ;;  %v474_v28 = vadd.f32 %v467_v26, %v456_v53  ;;  %v503_v11 = vmul.f32 %v4843_v62, %v2964_v40  ;;  %v883_v6 = vadd.f32 %v882_v52, %v2931_v61 }
  0x83   :  { %v410_v13 = vrot.slane %v3031_v16, 1  ;;  %v521_v4 = vmul.f32 %v4839_v48, %v3018_v46  ;;  %v394_v54 = vsel %vm19_vm0, %v387_v31, 0.0  ;;  %2253 = vrsqrt.f32 %v618_v42 }
  0x84   :  { %570 = vst [vmem:[%s4712_s4 + $0xc8] sm:$0xff] %v563_v36  ;;  %v492_v23 = vadd.f32 %v485_v15, %v474_v28  ;;  %v404_v58 = vrot.slane %v394_v54, 7  ;;  %v422_v2 = vmul.f32 %v4836_v47, %v394_v54  ;;  %v439_v40 = vadd.f32 %v432_v19, %v421_v8  ;;  %v4856_v8 = vld [vmem:[#allocation32_spill] sm:$0xff] }
  0x85   :  { %v468_v61 = vmul.f32 %v4841_v43, %v2993_v35  ;;  %v3083_v1 = vmul.f32 0.0, %v4852_v34  ;;  %v884_v44 = vrot.slane %v883_v6, 2  ;;  %v3086_v10 = vadd.f32 %v1152_v50, %v4853_v29  ;;  %v4855_v50 = vld [vmem:[#allocation28_spill] sm:$0xff] }
  0x86   :  { %v510_v0 = vadd.f32 %v503_v11, %v492_v23  ;;  %v539_v32 = vmul.f32 %v4840_v22, %v410_v13  ;;  %v450_v17 = vmul.f32 %v2556_v56, %v404_v58  ;;  %v433_v55 = vmul.f32 %v4837_v5, %v404_v58  ;;  %v4858_v36 = vld [vmem:[#allocation20_spill] sm:$0xff] }
  0x87   :  { %v557_v47 = vmul.f32 %v4845_v12, %v2996_v9  ;;  %v469_v21 = vmul.f32 %v4841_v43, %v403_v37  ;;  %v885_v35 = vadd.f32 %v884_v44, %v883_v6  ;;  %v3094_v51 = vmul.f32 0.020408163, %v868_v24  ;;  %v4854_v37 = vld [vmem:[#allocation18_spill] sm:$0xff] }
  0x88   :  { %v528_v18 = vadd.f32 %v521_v4, %v510_v0  ;;  %v457_v45 = vadd.f32 %v450_v17, %v439_v40  ;;  %v486_v59 = vmul.f32 %v4838_v14, %v394_v54  ;;  %v440_v30 = vadd.f32 %v433_v55, %v422_v2  ;;  %v4859_v4 = vld [vmem:[#allocation2_spill] sm:$0xff] }
  0x89   :  { %v504_v33 = vmul.f32 %v4843_v62, %v2985_v38  ;;  %v522_v56 = vmul.f32 %v4839_v48, %v410_v13  ;;  %v558_v5 = vmul.f32 %v4845_v12, %v3018_v46  ;;  %v886_v52 = vrot.slane %v885_v35, 1  ;;  %v617_v46 = vld [vmem:[%s4710_s1 + $0x2] sm:$0x1] }
  0x8a   :  { %v546_v9 = vadd.f32 %v539_v32, %v528_v18  ;;  %v411_v3 = vrot.slane %v394_v54, 1  ;;  %v475_v43 = vadd.f32 %v468_v61, %v457_v45  ;;  %v458_v49 = vadd.f32 %v4854_v37, %v440_v30  ;;  %v4860_v61 = vld [vmem:[#allocation34_spill] sm:$0xff]  ;;  %v2266_v45 = vld [vmem:[%s4708_s0 + $0x50] sm:$0xff]  ;;  %v4862_v37 = vld [vmem:[#allocation23_spill] sm:$0xff] }
  0x8b   :  { %v505_v14 = vmul.f32 %v4843_v62, %v3031_v16  ;;  %v559_v38 = vmul.f32 %v4845_v12, %v410_v13  ;;  %v887_v26 = vadd.f32 %v886_v52, %v885_v35  ;;  %v890_v15 = vmul.f32 %v3094_v51, %v3094_v51  ;;  %v948_v62 = vld [vmem:[%s4709_s3 + $0x2c] sm:$0x7]  ;;  %v2265_v35 = vld [vmem:[%s4708_s0 + $0x10] sm:$0xff] }
  0x8c   :  { %v564_v57 = vadd.f32 %v557_v47, %v546_v9  ;;  %v493_v25 = vadd.f32 %v486_v59, %v475_v43  ;;  %v476_v27 = vadd.f32 %v469_v21, %v458_v49  ;;  %v3117_v63 = vmul.f32 0.0, %v4855_v50  ;;  %v3125_v12 = vld [vmem:[%s4709_s3 + $0x4c] sm:$0x7]  ;;  %v2267_v30 = vld [vmem:[%s4708_s0 + $0x90] sm:$0xff] }
  0x8d   :  { %v2254_v16 = vpop.eup %2253  ;;  %v540_v53 = vmul.f32 %v4840_v22, %v411_v3  ;;  %v3129_v19 = vmul.f32 0.0, %v4856_v8  ;;  %v889_v31 = vmul.f32 0.020408163, %v887_v26  ;;  %v3133_v42 = vrot.slane %v3106_v60, %v2419_v41  ;;  %v621_v22 = vld [vmem:[%s4711_s2 + $0x2] sm:$0x1]  ;;  %v2269_v9 = vld [vmem:[%s4708_s0 + $0x110] sm:$0xff] }
  0x8e   :  { %571 = vst [vmem:[%s4712_s4 + $0x108] sm:$0xff] %v564_v57  ;;  %v511_v24 = vadd.f32 %v504_v33, %v493_v25  ;;  %v494_v28 = vadd.f32 %v4858_v36, %v476_v27  ;;  %v523_v11 = vmul.f32 %v4839_v48, %v411_v3  ;;  %v620_v6 = vmul.f32 %v2254_v16, %v617_v46  ;;  %v2270_v46 = vld [vmem:[%s4708_s0 + $0x150] sm:$0xff] }
  0x8f   :  { %4857 = vst [vmem:[#allocation5_spill] sm:$0xff] %v3133_v42  ;;  %v891_v13 = vsub.f32 %v889_v31, %v890_v15  ;;  %v3144_v54 = vrot.slane %v948_v62, %v4859_v4  ;;  %v3147_v23 = vrot.slane %v948_v62, %v2419_v41  ;;  %v3151_v58 = vrot.slane %v3125_v12, %v2419_v41  ;;  %v2271_v15 = vld [vmem:[%s4708_s0 + $0x190] sm:$0xff] }
  0x90   :  { %v529_v2 = vadd.f32 %v522_v56, %v511_v24  ;;  %v512_v40 = vadd.f32 %v505_v14, %v494_v28  ;;  %v622_v48 = vmul.f32 %v620_v6, %v4860_v61  ;;  %v628_v44 = vrot.slane %v620_v6, %v2419_v41  ;;  %v2268_v56 = vld [vmem:[%s4708_s0 + $0xd0] sm:$0xff] }
  0x91   :  { %v892_v29 = vmax.f32 %v891_v13, 0.0  ;;  %v3156_v0 = vmul.f32 0.0, %v3133_v42  ;;  %v3160_v32 = vrot.slane %v3125_v12, %v4859_v4  ;;  %v1139_v17 = vrot.slane %v3066_v39, 4  ;;  %v4864_v27 = vld [vmem:[#allocation4_spill] sm:$0xff] }
  0x92   :  { %v547_v55 = vadd.f32 %v540_v53, %v529_v2  ;;  %v530_v47 = vadd.f32 %v523_v11, %v512_v40  ;;  %v623_v21 = vsub.f32 %v621_v22, %v622_v48  ;;  %v630_v18 = vmul.f32 %v2265_v35, %v628_v44 }
  0x93   :  { %4861 = vst [vmem:[#allocation7_spill] sm:$0xff] %v3156_v0  ;;  %v631_v59 = vmul.f32 %v2266_v45, %v628_v44  ;;  %v632_v33 = vmul.f32 %v2267_v30, %v628_v44  ;;  %v633_v52 = vmul.f32 %v2268_v56, %v628_v44  ;;  %v634_v3 = vmul.f32 %v2269_v9, %v628_v44  ;;  %v4868_v9 = vld [vmem:[#allocation24_spill] sm:$0xff] }
  0x94   :  { %v565_v43 = vadd.f32 %v558_v5, %v547_v55  ;;  %v548_v49 = vadd.f32 %v4862_v37, %v530_v47  ;;  %v641_v14 = vrot.slane %v623_v21, %v2419_v41  ;;  %v635_v26 = vmul.f32 %v2270_v46, %v628_v44 }
  0x95   :  { %v636_v57 = vmul.f32 %v2271_v15, %v628_v44  ;;  %v3188_v25 = vrot.slane %v3106_v60, %v4859_v4  ;;  %v3191_v5 = vrot.slane %v948_v62, %v4864_v27  ;;  %v3194_v16 = vadd.f32 %v1139_v17, %v3066_v39 }
  0x96   :  { %572 = vst [vmem:[%s4712_s4 + $0x148] sm:$0xff] %v565_v43  ;;  %v566_v53 = vadd.f32 %v559_v38, %v548_v49  ;;  %v643_v31 = vadd.f32 %v641_v14, %v630_v18  ;;  %v644_v24 = vadd.f32 %v641_v14, %v631_v59  ;;  %v645_v36 = vadd.f32 %v641_v14, %v632_v33  ;;  %v4867_v18 = vld [vmem:[#allocation38_spill] sm:$0xff] }
  0x97   :  { %4863 = vst [vmem:[#allocation8_spill] sm:$0xff] %v3188_v25  ;;  %v646_v28 = vadd.f32 %v641_v14, %v633_v52  ;;  %v647_v11 = vadd.f32 %v641_v14, %v634_v3  ;;  %v648_v6 = vadd.f32 %v641_v14, %v635_v26  ;;  %v649_v22 = vadd.f32 %v641_v14, %v636_v57  ;;  %v4869_v14 = vld [vmem:[#allocation25_spill] sm:$0xff] }
  0x98   :  { %573 = vst [vmem:[%s4712_s4 + $0x188] sm:$0xff] %v566_v53  ;;  %v650_v62 = vmax.f32 %v643_v31, 0.0  ;;  %v651_v13 = vmax.f32 %v644_v24, 0.0  ;;  %v652_v39 = vmax.f32 %v645_v36, 0.0  ;;  %v894_v2 = vadd.f32 1e-05, %v892_v29 }
  0x99   :  { %v653_v40 = vmax.f32 %v646_v28, 0.0  ;;  %v654_v61 = vmax.f32 %v647_v11, 0.0  ;;  %v3203_v48 = vmul.f32 0.0, %v3188_v25  ;;  %v3207_v38 = vrot.slane %v3125_v12, %v4864_v27  ;;  %v4870_v28 = vld [vmem:[#allocation31_spill] sm:$0xff] }
  0x9a   :  { %v657_v44 = vmin.f32 %v650_v62, 6.0  ;;  %v658_v17 = vmin.f32 %v651_v13, 6.0  ;;  %v659_v55 = vmin.f32 %v652_v39, 6.0  ;;  %v655_v47 = vmax.f32 %v648_v6, 0.0  ;;  %v4871_v13 = vld [vmem:[#allocation19_spill] sm:$0xff] }
  0x9b   :  { %4865 = vst [vmem:[#allocation9_spill] sm:$0xff] %v3203_v48  ;;  %4866 = vst [vmem:[#allocation11_spill] sm:$0xff] %v3207_v38  ;;  %v656_v21 = vmax.f32 %v649_v22, 0.0  ;;  %v3211_v35 = vrot.slane %v3106_v60, %v4864_v27  ;;  %v3216_v45 = vadd.f32 %v3086_v10, %v4867_v18  ;;  %2255 = vrsqrt.f32 %v894_v2 }
  0x9c   :  { %v664_v59 = vsel %vm19_vm0, %v657_v44, 0.0  ;;  %v665_v12 = vsel %vm19_vm0, %v658_v17, 0.0  ;;  %v3224_v30 = vsel %vm19_vm0, %v659_v55, 0.0  ;;  %v660_v52 = vmin.f32 %v653_v40, 6.0  ;;  %v4872_v44 = vld [vmem:[#allocation21_spill] sm:$0xff] }
  0x9d   :  { %v674_v33 = vrot.slane %v664_v59, 7  ;;  %v675_v60 = vrot.slane %v665_v12, 7  ;;  %v681_v56 = vrot.slane %v664_v59, 1  ;;  %v692_v3 = vmul.f32 %v4868_v9, %v664_v59 }
  0x9e   :  { %v676_v10 = vrot.slane %v3224_v30, 7  ;;  %v661_v43 = vmin.f32 %v654_v61, 6.0  ;;  %v662_v37 = vmin.f32 %v655_v47, 6.0  ;;  %v682_v49 = vrot.slane %v665_v12, 1 }
  0x9f   :  { %v703_v46 = vmul.f32 %v4869_v14, %v674_v33  ;;  %v721_v26 = vmul.f32 %v4852_v34, %v675_v60  ;;  %v3230_v15 = vmin.f32 %v656_v21, 6.0  ;;  %v757_v57 = vmul.f32 %v4855_v50, %v665_v12 }
  0xa0   :  { %v693_v53 = vmul.f32 %v4868_v9, %v665_v12  ;;  %v704_v31 = vmul.f32 %v4869_v14, %v675_v60  ;;  %v722_v24 = vmul.f32 %v4852_v34, %v676_v10  ;;  %v793_v11 = vmul.f32 %v4870_v28, %v681_v56 }
  0xa1   :  { %v710_v36 = vadd.f32 %v703_v46, %v692_v3  ;;  %v811_v6 = vmul.f32 %v4856_v8, %v682_v49  ;;  %v3239_v22 = vrot.slane %v3224_v30, 1  ;;  %v740_v39 = vmul.f32 %v4871_v13, %v674_v33  ;;  %v4873_v46 = vld [vmem:[#allocation27_spill] sm:$0xff] }
  0xa2   :  { %v711_v62 = vadd.f32 %v704_v31, %v693_v53  ;;  %v758_v2 = vmul.f32 %v4855_v50, %v3224_v30  ;;  %v3246_v40 = vsel %vm19_vm0, %v660_v52, 0.0  ;;  %v776_v17 = vmul.f32 %v4872_v44, %v664_v59  ;;  %v4874_v52 = vld [vmem:[#allocation30_spill] sm:$0xff] }
  0xa3   :  { %v728_v61 = vadd.f32 %v721_v26, %v710_v36  ;;  %v677_v55 = vrot.slane %v3246_v40, 7  ;;  %v694_v47 = vmul.f32 %v4868_v9, %v3224_v30  ;;  %v794_v18 = vmul.f32 %v4870_v28, %v682_v49 }
  0xa4   :  { %v729_v21 = vadd.f32 %v722_v24, %v711_v62  ;;  %v812_v33 = vmul.f32 %v4856_v8, %v3239_v22  ;;  %v705_v3 = vmul.f32 %v4869_v14, %v676_v10  ;;  %v830_v31 = vmul.f32 %v4874_v52, %v681_v56 }
  0xa5   :  { %v746_v53 = vadd.f32 %v4873_v46, %v728_v61  ;;  %v3259_v26 = vrot.slane %v3246_v40, 1  ;;  %v723_v59 = vmul.f32 %v4852_v34, %v677_v55  ;;  %v3262_v36 = vpop.eup %2255  ;;  %v741_v62 = vmul.f32 %v4871_v13, %v675_v60  ;;  %v4875_v60 = vld [vmem:[#allocation29_spill] sm:$0xff] }
  0xa6   :  { %v747_v29 = vadd.f32 %v740_v39, %v729_v21  ;;  %v712_v24 = vadd.f32 %v705_v3, %v694_v47  ;;  %v759_v27 = vmul.f32 %v4855_v50, %v3246_v40  ;;  %v3269_v61 = vsel %vm19_vm0, %v661_v43, 0.0 }
  0xa7   :  { %v764_v4 = vadd.f32 %v757_v57, %v746_v53  ;;  %v695_v56 = vmul.f32 %v4868_v9, %v3246_v40  ;;  %v706_v46 = vmul.f32 %v4869_v14, %v677_v55  ;;  %v777_v39 = vmul.f32 %v4872_v44, %v665_v12 }
  0xa8   :  { %v765_v48 = vadd.f32 %v758_v2, %v747_v29  ;;  %v730_v0 = vadd.f32 %v723_v59, %v712_v24  ;;  %v678_v47 = vrot.slane %v3269_v61, 7  ;;  %v795_v57 = vmul.f32 %v4870_v28, %v3239_v22 }
  0xa9   :  { %v782_v21 = vadd.f32 %v4875_v60, %v764_v4  ;;  %v813_v43 = vmul.f32 %v4856_v8, %v3259_v26  ;;  %v713_v3 = vadd.f32 %v706_v46, %v695_v56  ;;  %v742_v29 = vmul.f32 %v4871_v13, %v676_v10 }
  0xaa   :  { %v783_v53 = vadd.f32 %v776_v17, %v765_v48  ;;  %v748_v25 = vadd.f32 %v741_v62, %v730_v0  ;;  %v724_v42 = vmul.f32 %v4852_v34, %v678_v47  ;;  %v831_v12 = vmul.f32 %v4874_v52, %v682_v49 }
  0xab   :  { %v800_v2 = vadd.f32 %v793_v11, %v782_v21  ;;  %v3285_v59 = vrot.slane %v3269_v61, 1  ;;  %v760_v4 = vmul.f32 %v4855_v50, %v3269_v61  ;;  %v3291_v48 = vsel %vm19_vm0, %v662_v37, 0.0 }
  0xac   :  { %v801_v24 = vadd.f32 %v794_v18, %v783_v53  ;;  %v766_v60 = vadd.f32 %v759_v27, %v748_v25  ;;  %v731_v38 = vadd.f32 %v724_v42, %v713_v3  ;;  %v778_v10 = vmul.f32 %v4872_v44, %v3224_v30  ;;  %v4876_v25 = vld [vmem:[#allocation35_spill] sm:$0xff] }
  0xad   :  { %v818_v0 = vadd.f32 %v811_v6, %v800_v2  ;;  %v679_v11 = vrot.slane %v3291_v48, 7  ;;  %v696_v49 = vmul.f32 %v4868_v9, %v3269_v61  ;;  %v707_v18 = vmul.f32 %v4869_v14, %v678_v47 }
  0xae   :  { %v819_v17 = vadd.f32 %v812_v33, %v801_v24  ;;  %v784_v62 = vadd.f32 %v777_v39, %v766_v60  ;;  %v749_v56 = vadd.f32 %v742_v29, %v731_v38  ;;  %v796_v27 = vmul.f32 %v4870_v28, %v3259_v26 }
  0xaf   :  { %v836_v42 = vadd.f32 %v4876_v25, %v818_v0  ;;  %v725_v37 = vmul.f32 %v4852_v34, %v679_v11  ;;  %v743_v6 = vmul.f32 %v4871_v13, %v677_v55  ;;  %v714_v3 = vadd.f32 %v707_v18, %v696_v49  ;;  %v4878_v55 = vld [vmem:[#allocation41_spill] sm:$0xff]  ;;  %v893_v25 = vld [vmem:[%s4710_s1 + $0x3] sm:$0x1] }
  0xb0   :  { %v837_v30 = vadd.f32 %v830_v31, %v819_v17  ;;  %v802_v46 = vadd.f32 %v795_v57, %v784_v62  ;;  %v767_v21 = vadd.f32 %v760_v4, %v749_v56  ;;  %v814_v38 = vmul.f32 %v4856_v8, %v3285_v59 }
  0xb1   :  { %843 = vst [vmem:[%s4712_s4 + $0x10] sm:$0xff] %v836_v42  ;;  %v761_v33 = vmul.f32 %v4855_v50, %v3291_v48  ;;  %v4877_v39 = vrot.slane %v3194_v16, 2  ;;  %v1155_v31 = vadd.f32 %v3216_v45, %v4878_v55  ;;  %v732_v2 = vadd.f32 %v725_v37, %v714_v3  ;;  %v4879_v37 = vld [vmem:[#allocation42_spill] sm:$0xff] }
  0xb2   :  { %844 = vst [vmem:[%s4712_s4 + $0x50] sm:$0xff] %v837_v30  ;;  %v820_v57 = vadd.f32 %v813_v43, %v802_v46  ;;  %v785_v29 = vadd.f32 %v778_v10, %v767_v21  ;;  %v670_v4 = vsel %vm19_vm0, %v3230_v15, 0.0  ;;  %v832_v24 = vmul.f32 %v4874_v52, %v3239_v22 }
  0xb3   :  { %v3314_v53 = vadd.f32 %v4877_v39, %v3194_v16  ;;  %v779_v16 = vmul.f32 %v4872_v44, %v3246_v40  ;;  %v680_v60 = vrot.slane %v670_v4, 7  ;;  %v697_v45 = vmul.f32 %v4868_v9, %v3291_v48 }
  0xb4   :  { %v838_v0 = vadd.f32 %v831_v12, %v820_v57  ;;  %v803_v49 = vadd.f32 %v796_v27, %v785_v29  ;;  %v750_v17 = vadd.f32 %v743_v6, %v732_v2  ;;  %v708_v43 = vmul.f32 %v4869_v14, %v679_v11 }
  0xb5   :  { %v686_v10 = vrot.slane %v3291_v48, 1  ;;  %v797_v15 = vmul.f32 %v4870_v28, %v3285_v59  ;;  %v698_v62 = vmul.f32 %v4868_v9, %v670_v4  ;;  %v726_v22 = vmul.f32 %v4852_v34, %v680_v60 }
  0xb6   :  { %845 = vst [vmem:[%s4712_s4 + $0x90] sm:$0xff] %v838_v0  ;;  %v821_v40 = vadd.f32 %v814_v38, %v803_v49  ;;  %v768_v56 = vadd.f32 %v761_v33, %v750_v17  ;;  %v715_v12 = vadd.f32 %v708_v43, %v697_v45  ;;  %v744_v18 = vmul.f32 %v4871_v13, %v678_v47  ;;  %v2276_v43 = vld [vmem:[%s4708_s0 + $0x118] sm:$0xff] }
  0xb7   :  { %v815_v42 = vmul.f32 %v4856_v8, %v686_v10  ;;  %v687_v27 = vrot.slane %v670_v4, 1  ;;  %v709_v9 = vmul.f32 %v4869_v14, %v680_v60  ;;  %v1156_v34 = vadd.f32 %v1155_v31, %v4879_v37 }
  0xb8   :  { %v839_v6 = vadd.f32 %v832_v24, %v821_v40  ;;  %v786_v30 = vadd.f32 %v779_v16, %v768_v56  ;;  %v733_v46 = vadd.f32 %v726_v22, %v715_v12  ;;  %v762_v21 = vmul.f32 %v4855_v50, %v670_v4  ;;  %v897_v50 = vld [vmem:[%s4711_s2 + $0x3] sm:$0x1]  ;;  %v2272_v16 = vld [vmem:[%s4708_s0 + $0x18] sm:$0xff] }
  0xb9   :  { %v833_v3 = vmul.f32 %v4874_v52, %v3259_v26  ;;  %v716_v47 = vadd.f32 %v709_v9, %v698_v62  ;;  %v745_v38 = vmul.f32 %v4871_v13, %v679_v11  ;;  %v896_v33 = vmul.f32 %v3262_v36, %v893_v25  ;;  %v2277_v62 = vld [vmem:[%s4708_s0 + $0x158] sm:$0xff] }
  0xba   :  { %846 = vst [vmem:[%s4712_s4 + $0xd0] sm:$0xff] %v839_v6  ;;  %v804_v14 = vadd.f32 %v797_v15, %v786_v30  ;;  %v751_v39 = vadd.f32 %v744_v18, %v733_v46  ;;  %v780_v55 = vmul.f32 %v4872_v44, %v3269_v61  ;;  %v798_v31 = vmul.f32 %v4870_v28, %v686_v10 }
  0xbb   :  { %v816_v26 = vmul.f32 %v4856_v8, %v687_v27  ;;  %v734_v13 = vadd.f32 %v3083_v1, %v716_v47  ;;  %v898_v36 = vmul.f32 %v896_v33, %v3094_v51  ;;  %v904_v11 = vrot.slane %v896_v33, %v2419_v41  ;;  %v2273_v1 = vld [vmem:[%s4708_s0 + $0x58] sm:$0xff] }
  0xbc   :  { %v822_v57 = vadd.f32 %v815_v42, %v804_v14  ;;  %v769_v29 = vadd.f32 %v762_v21, %v751_v39  ;;  %v781_v2 = vmul.f32 %v4872_v44, %v3291_v48  ;;  %v799_v61 = vmul.f32 %v4870_v28, %v687_v27  ;;  %v2274_v44 = vld [vmem:[%s4708_s0 + $0x98] sm:$0xff] }
  0xbd   :  { %v752_v4 = vadd.f32 %v745_v38, %v734_v13  ;;  %v899_v24 = vsub.f32 %v897_v50, %v898_v36  ;;  %v906_v8 = vmul.f32 %v2272_v16, %v904_v11  ;;  %v907_v51 = vmul.f32 %v2273_v1, %v904_v11  ;;  %v2275_v28 = vld [vmem:[%s4708_s0 + $0xd8] sm:$0xff] }
  0xbe   :  { %v840_v60 = vadd.f32 %v833_v3, %v822_v57  ;;  %v787_v45 = vadd.f32 %v780_v55, %v769_v29  ;;  %v908_v48 = vmul.f32 %v2274_v44, %v904_v11  ;;  %v909_v0 = vmul.f32 %v2275_v28, %v904_v11  ;;  %v2278_v55 = vld [vmem:[%s4708_s0 + $0x198] sm:$0xff] }
  0xbf   :  { %v770_v49 = vadd.f32 %v3117_v63, %v752_v4  ;;  %v917_v17 = vrot.slane %v899_v24, %v2419_v41  ;;  %v910_v15 = vmul.f32 %v2276_v43, %v904_v11  ;;  %v911_v22 = vmul.f32 %v2277_v62, %v904_v11 }
  0xc0   :  { %847 = vst [vmem:[%s4712_s4 + $0x110] sm:$0xff] %v840_v60  ;;  %v805_v40 = vadd.f32 %v798_v31, %v787_v45  ;;  %v834_v63 = vmul.f32 %v4874_v52, %v3285_v59  ;;  %v835_v56 = vmul.f32 %v4874_v52, %v686_v10  ;;  %v3394_v12 = vadd.f32 %v1156_v34, %v3053_v7 }
  0xc1   :  { %v788_v18 = vadd.f32 %v781_v2, %v770_v49  ;;  %v919_v25 = vadd.f32 %v917_v17, %v906_v8  ;;  %v920_v42 = vadd.f32 %v917_v17, %v907_v51  ;;  %v921_v27 = vadd.f32 %v917_v17, %v908_v48 }
  0xc2   :  { %v823_v9 = vadd.f32 %v816_v26, %v805_v40  ;;  %v922_v37 = vadd.f32 %v917_v17, %v909_v0  ;;  %v923_v6 = vadd.f32 %v917_v17, %v910_v15  ;;  %v924_v30 = vadd.f32 %v917_v17, %v911_v22  ;;  %v4880_v15 = vld [vmem:[#allocation11_spill] sm:$0xff] }
  0xc3   :  { %v806_v46 = vadd.f32 %v799_v61, %v788_v18  ;;  %v926_v21 = vmax.f32 %v919_v25, 0.0  ;;  %v927_v3 = vmax.f32 %v920_v42, 0.0  ;;  %v928_v47 = vmax.f32 %v921_v27, 0.0  ;;  %v4882_v42 = vld [vmem:[#allocation8_spill] sm:$0xff] }
  0xc4   :  { %v841_v38 = vadd.f32 %v834_v63, %v823_v9  ;;  %v929_v33 = vmax.f32 %v922_v37, 0.0  ;;  %v930_v59 = vmax.f32 %v923_v6, 0.0  ;;  %v931_v14 = vmax.f32 %v924_v30, 0.0  ;;  %v4881_v63 = vld [vmem:[#allocation5_spill] sm:$0xff] }
  0xc5   :  { %v824_v52 = vadd.f32 %v3129_v19, %v806_v46  ;;  %v933_v7 = vmin.f32 %v926_v21, 6.0  ;;  %v934_v10 = vmin.f32 %v927_v3, 6.0  ;;  %v935_v34 = vmin.f32 %v928_v47, 6.0  ;;  %v4883_v3 = vld [vmem:[#allocation7_spill] sm:$0xff] }
  0xc6   :  { %848 = vst [vmem:[%s4712_s4 + $0x150] sm:$0xff] %v841_v38  ;;  %v3401_v39 = vmul.f32 0.0, %v3211_v35  ;;  %v912_v31 = vmul.f32 %v2278_v55, %v904_v11  ;;  %v1143_v50 = vrot.slane %v3314_v53, 1  ;;  %v1158_v26 = vrot.slane %v3394_v12, 4 }
  0xc7   :  { %v842_v19 = vadd.f32 %v835_v56, %v824_v52  ;;  %v940_v13 = vsel %vm19_vm0, %v933_v7, 0.0  ;;  %v941_v36 = vsel %vm19_vm0, %v934_v10, 0.0  ;;  %v3414_v57 = vsel %vm19_vm0, %v935_v34, 0.0 }
  0xc8   :  { %v950_v29 = vrot.slane %v940_v13, 7  ;;  %v951_v2 = vrot.slane %v941_v36, 7  ;;  %v957_v61 = vrot.slane %v940_v13, 1  ;;  %v936_v4 = vmin.f32 %v929_v33, 6.0 }
  0xc9   :  { %849 = vst [vmem:[%s4712_s4 + $0x190] sm:$0xff] %v842_v19  ;;  %v968_v11 = vmul.f32 %v3144_v54, %v940_v13  ;;  %v952_v24 = vrot.slane %v3414_v57, 7  ;;  %v937_v16 = vmin.f32 %v930_v59, 6.0  ;;  %v938_v8 = vmin.f32 %v931_v14, 6.0 }
  0xca   :  { %v958_v1 = vrot.slane %v941_v36, 1  ;;  %v979_v51 = vmul.f32 %v3147_v23, %v950_v29  ;;  %v997_v60 = vmul.f32 %v3151_v58, %v951_v2  ;;  %v3423_v45 = vadd.f32 %v917_v17, %v912_v31 }
  0xcb   :  { %v1033_v44 = vmul.f32 %v3160_v32, %v941_v36  ;;  %v969_v48 = vmul.f32 %v3144_v54, %v941_v36  ;;  %v980_v28 = vmul.f32 %v3147_v23, %v951_v2  ;;  %v998_v0 = vmul.f32 %v3151_v58, %v952_v24 }
  0xcc   :  { %v986_v49 = vadd.f32 %v979_v51, %v968_v11  ;;  %v1069_v43 = vmul.f32 %v3191_v5, %v957_v61  ;;  %v1087_v62 = vmul.f32 %v4880_v15, %v958_v1  ;;  %v3432_v22 = vrot.slane %v3414_v57, 1 }
  0xcd   :  { %v987_v40 = vadd.f32 %v980_v28, %v969_v48  ;;  %v1016_v17 = vmul.f32 %v4881_v63, %v950_v29  ;;  %v1034_v56 = vmul.f32 %v3160_v32, %v3414_v57  ;;  %v3439_v18 = vsel %vm19_vm0, %v936_v4, 0.0 }
  0xce   :  { %v1004_v25 = vadd.f32 %v997_v60, %v986_v49  ;;  %v1052_v27 = vmul.f32 %v4882_v42, %v940_v13  ;;  %v953_v9 = vrot.slane %v3439_v18, 7  ;;  %v970_v37 = vmul.f32 %v3144_v54, %v3414_v57 }
  0xcf   :  { %v1005_v6 = vadd.f32 %v998_v0, %v987_v40  ;;  %v1070_v30 = vmul.f32 %v3191_v5, %v958_v1  ;;  %v1088_v46 = vmul.f32 %v4880_v15, %v3432_v22  ;;  %v981_v21 = vmul.f32 %v3147_v23, %v952_v24 }
  0xd0   :  { %v1022_v47 = vadd.f32 %v4883_v3, %v1004_v25  ;;  %v1106_v38 = vmul.f32 %v3211_v35, %v957_v61  ;;  %v3452_v33 = vrot.slane %v3439_v18, 1  ;;  %v999_v59 = vmul.f32 %v3151_v58, %v953_v9 }
  0xd1   :  { %v1023_v14 = vadd.f32 %v1016_v17, %v1005_v6  ;;  %v988_v52 = vadd.f32 %v981_v21, %v970_v37  ;;  %v1017_v7 = vmul.f32 %v4881_v63, %v951_v2  ;;  %v1035_v10 = vmul.f32 %v3160_v32, %v3439_v18  ;;  %v4884_v2 = vld [vmem:[#allocation9_spill] sm:$0xff] }
  0xd2   :  { %v1040_v34 = vadd.f32 %v1033_v44, %v1022_v47  ;;  %v3460_v55 = vsel %vm19_vm0, %v937_v16, 0.0  ;;  %v971_v31 = vmul.f32 %v3144_v54, %v3439_v18  ;;  %v982_v19 = vmul.f32 %v3147_v23, %v953_v9 }
  0xd3   :  { %v1041_v13 = vadd.f32 %v1034_v56, %v1023_v14  ;;  %v1006_v29 = vadd.f32 %v999_v59, %v988_v52  ;;  %v1053_v61 = vmul.f32 %v4882_v42, %v941_v36  ;;  %v3467_v4 = vrot.slane %v3460_v55, 7 }
  0xd4   :  { %v1058_v11 = vadd.f32 %v4884_v2, %v1040_v34  ;;  %v1071_v51 = vmul.f32 %v3191_v5, %v3432_v22  ;;  %v1089_v16 = vmul.f32 %v4880_v15, %v3452_v33  ;;  %v989_v60 = vadd.f32 %v982_v19, %v971_v31 }
  0xd5   :  { %v1059_v44 = vadd.f32 %v1052_v27, %v1041_v13  ;;  %v1024_v48 = vadd.f32 %v1017_v7, %v1006_v29  ;;  %v1000_v28 = vmul.f32 %v3151_v58, %v3467_v4  ;;  %v1018_v0 = vmul.f32 %v4881_v63, %v952_v24 }
  0xd6   :  { %v1076_v36 = vadd.f32 %v1069_v43, %v1058_v11  ;;  %v1107_v49 = vmul.f32 %v3211_v35, %v958_v1  ;;  %v3479_v40 = vrot.slane %v3460_v55, 1  ;;  %v1036_v17 = vmul.f32 %v3160_v32, %v3460_v55 }
  0xd7   :  { %v1077_v56 = vadd.f32 %v1070_v30, %v1059_v44  ;;  %v1042_v25 = vadd.f32 %v1035_v10, %v1024_v48  ;;  %v1007_v37 = vadd.f32 %v1000_v28, %v989_v60  ;;  %v3485_v27 = vsel %vm19_vm0, %v938_v8, 0.0 }
  0xd8   :  { %v1094_v6 = vadd.f32 %v1087_v62, %v1076_v36  ;;  %v1054_v24 = vmul.f32 %v4882_v42, %v3414_v57  ;;  %v955_v43 = vrot.slane %v3485_v27, 7  ;;  %v972_v1 = vmul.f32 %v3144_v54, %v3460_v55 }
  0xd9   :  { %v1095_v21 = vadd.f32 %v1088_v46, %v1077_v56  ;;  %v1060_v3 = vadd.f32 %v1053_v61, %v1042_v25  ;;  %v1025_v47 = vadd.f32 %v1018_v0, %v1007_v37  ;;  %v983_v30 = vmul.f32 %v3147_v23, %v3467_v4 }
  0xda   :  { %v1112_v59 = vadd.f32 %v3401_v39, %v1094_v6  ;;  %v1072_v8 = vmul.f32 %v3191_v5, %v3452_v33  ;;  %v1001_v62 = vmul.f32 %v3151_v58, %v955_v43  ;;  %v1019_v57 = vmul.f32 %v4881_v63, %v953_v9 }
  0xdb   :  { %v1113_v14 = vadd.f32 %v1106_v38, %v1095_v21  ;;  %v1078_v52 = vadd.f32 %v1071_v51, %v1060_v3  ;;  %v1043_v7 = vadd.f32 %v1036_v17, %v1025_v47  ;;  %v990_v10 = vadd.f32 %v983_v30, %v972_v1 }
  0xdc   :  { %1119 = vst [vmem:[%s4712_s4 + $0x18] sm:$0xff] %v1112_v59  ;;  %v1090_v46 = vmul.f32 %v4880_v15, %v3479_v40  ;;  %v1037_v39 = vmul.f32 %v3160_v32, %v3485_v27  ;;  %v1144_v34 = vadd.f32 %v1143_v50, %v3314_v53  ;;  %v1159_v9 = vadd.f32 %v1158_v26, %v3394_v12 }
  0xdd   :  { %1120 = vst [vmem:[%s4712_s4 + $0x58] sm:$0xff] %v1113_v14  ;;  %v1096_v38 = vadd.f32 %v1089_v16, %v1078_v52  ;;  %v1061_v31 = vadd.f32 %v1054_v24, %v1043_v7  ;;  %v1008_v19 = vadd.f32 %v1001_v62, %v990_v10  ;;  %v932_v13 = vmax.f32 %v3423_v45, 0.0 }
  0xde   :  { %v1108_v29 = vmul.f32 %v3211_v35, %v3432_v22  ;;  %v1055_v61 = vmul.f32 %v4882_v42, %v3439_v18  ;;  %v973_v53 = vmul.f32 %v3144_v54, %v3485_v27  ;;  %v984_v12 = vmul.f32 %v3147_v23, %v955_v43 }
  0xdf   :  { %v1114_v50 = vadd.f32 %v1107_v49, %v1096_v38  ;;  %v1079_v26 = vadd.f32 %v1072_v8, %v1061_v31  ;;  %v1026_v2 = vadd.f32 %v1019_v57, %v1008_v19  ;;  %v939_v11 = vmin.f32 %v932_v13, 6.0  ;;  %v3556_v8 = vld [vmem:[%s4708_s0 + $0x28] sm:$0xff] }
  0xe0   :  { %v3524_v51 = vrot.slane %v3485_v27, 1  ;;  %v1073_v18 = vmul.f32 %v3191_v5, %v3479_v40  ;;  %v991_v48 = vadd.f32 %v984_v12, %v973_v53  ;;  %v3534_v28 = vmul.f32 0.020408163, %v1144_v34  ;;  %4885 = vst [vmem:[#allocation14_spill] sm:$0xff] %v3556_v8 }
  0xe1   :  { %1121 = vst [vmem:[%s4712_s4 + $0x98] sm:$0xff] %v1114_v50  ;;  %v1097_v45 = vadd.f32 %v1090_v46, %v1079_v26  ;;  %v1044_v22 = vadd.f32 %v1037_v39, %v1026_v2  ;;  %v946_v16 = vsel %vm19_vm0, %v939_v11, 0.0  ;;  %v1160_v17 = vrot.slane %v1159_v9, 2 }
  0xe2   :  { %v956_v60 = vrot.slane %v946_v16, 7  ;;  %v974_v44 = vmul.f32 %v3144_v54, %v946_v16  ;;  %v1091_v49 = vmul.f32 %v4880_v15, %v3524_v51  ;;  %v1020_v25 = vmul.f32 %v4881_v63, %v3467_v4 }
  0xe3   :  { %v1115_v0 = vadd.f32 %v1108_v29, %v1097_v45  ;;  %v1062_v36 = vadd.f32 %v1055_v61, %v1044_v22  ;;  %v1003_v6 = vmul.f32 0.0, %v3151_v58  ;;  %v1109_v24 = vmul.f32 %v3211_v35, %v3452_v33  ;;  %v3561_v33 = vld [vmem:[%s4708_s0 + $0x68] sm:$0xff] }
  0xe4   :  { %v1002_v56 = vmul.f32 %v3151_v58, %v956_v60  ;;  %v985_v37 = vmul.f32 %v3147_v23, %v956_v60  ;;  %v1161_v1 = vadd.f32 %v1160_v17, %v1159_v9  ;;  %v1038_v3 = vmul.f32 %v3160_v32, %v946_v16  ;;  %4886 = vst [vmem:[#allocation15_spill] sm:$0xff] %v3561_v33  ;;  %v3595_v61 = vld [vmem:[%s4708_s0 + $0x128] sm:$0xff] }
  0xe5   :  { %1122 = vst [vmem:[%s4712_s4 + $0xd8] sm:$0xff] %v1115_v0  ;;  %v1080_v54 = vadd.f32 %v1073_v18, %v1062_v36  ;;  %v1021_v30 = vmul.f32 %v4881_v63, %v955_v43  ;;  %v1039_v23 = vmul.f32 0.0, %v3160_v32  ;;  %v1166_v58 = vmul.f32 %v3534_v28, %v3534_v28  ;;  %v3568_v43 = vld [vmem:[%s4708_s0 + $0xa8] sm:$0xff]  ;;  %4889 = vst [vmem:[#allocation12_spill] sm:$0xff] %v3595_v61 }
  0xe6   :  { %v1009_v21 = vadd.f32 %v1002_v56, %v991_v48  ;;  %v992_v47 = vadd.f32 %v985_v37, %v974_v44  ;;  %v1162_v59 = vrot.slane %v1161_v1, 1  ;;  %v963_v62 = vrot.slane %v946_v16, 1  ;;  %4887 = vst [vmem:[#allocation10_spill] sm:$0xff] %v3568_v43  ;;  %v3609_v18 = vld [vmem:[%s4708_s0 + $0x168] sm:$0xff]  ;;  %v1224_v56 = vld [vmem:[%s4709_s3 + $0x30] sm:$0x7] }
  0xe7   :  { %v1098_v4 = vadd.f32 %v1091_v49, %v1080_v54  ;;  %v1056_v63 = vmul.f32 %v4882_v42, %v3460_v55  ;;  %v1074_v52 = vmul.f32 %v3191_v5, %v3524_v51  ;;  %v1057_v7 = vmul.f32 %v4882_v42, %v3485_v27  ;;  %v3577_v55 = vld [vmem:[%s4708_s0 + $0xe8] sm:$0xff]  ;;  %4890 = vst [vmem:[#allocation17_spill] sm:$0xff] %v3609_v18  ;;  %v1225_v54 = vld [vmem:[%s4709_s3 + $0x50] sm:$0x7] }
  0xe8   :  { %v1027_v57 = vadd.f32 %v1020_v25, %v1009_v21  ;;  %v1010_v32 = vadd.f32 %v1003_v6, %v992_v47  ;;  %v1163_v10 = vadd.f32 %v1162_v59, %v1161_v1  ;;  %4888 = vst [vmem:[#allocation13_spill] sm:$0xff] %v3577_v55  ;;  %v1409_v34 = vadd.f32 %v3561_v33, %v3556_v8  ;;  %v3619_v36 = vld [vmem:[%s4708_s0 + $0x1a8] sm:$0xff]  ;;  %v3637_v1 = vld [vmem:[%s4708_s0 + $0x30] sm:$0xff] }
  0xe9   :  { %v1116_v14 = vadd.f32 %v1109_v24, %v1098_v4  ;;  %v1421_v9 = vmul.f32 %v3556_v8, %v3556_v8  ;;  %v1092_v42 = vmul.f32 %v4880_v15, %v963_v62  ;;  %v1422_v38 = vmul.f32 %v3561_v33, %v3561_v33  ;;  %4891 = vst [vmem:[#allocation16_spill] sm:$0xff] %v3619_v36  ;;  %v3642_v21 = vld [vmem:[%s4708_s0 + $0x70] sm:$0xff]  ;;  %v4894_v4 = vld [vmem:[#allocation2_spill] sm:$0xff] }
  0xea   :  { %v1045_v46 = vadd.f32 %v1038_v3, %v1027_v57  ;;  %v1028_v39 = vadd.f32 %v1021_v30, %v1010_v32  ;;  %v1165_v27 = vmul.f32 0.020408163, %v1163_v10  ;;  %v1423_v31 = vmul.f32 %v3568_v43, %v3568_v43  ;;  %4892 = vst [vmem:[#allocation22_spill] sm:$0xff] %v3637_v1  ;;  %4893 = vst [vmem:[#allocation6_spill] sm:$0xff] %v3642_v21 }
  0xeb   :  { %1123 = vst [vmem:[%s4712_s4 + $0x118] sm:$0xff] %v1116_v14  ;;  %v1075_v29 = vmul.f32 %v3191_v5, %v963_v62  ;;  %v1410_v53 = vadd.f32 %v1409_v34, %v3568_v43  ;;  %v1093_v12 = vmul.f32 0.0, %v4880_v15  ;;  %v1424_v26 = vmul.f32 %v3577_v55, %v3577_v55  ;;  %v1223_v5 = vld [vmem:[%s4709_s3 + $0x10] sm:$0x7] }
  0xec   :  { %v1063_v19 = vadd.f32 %v1056_v63, %v1045_v46  ;;  %v1046_v13 = vadd.f32 %v1039_v23, %v1028_v39  ;;  %v1167_v50 = vsub.f32 %v1165_v27, %v1166_v58  ;;  %v1428_v2 = vadd.f32 %v1422_v38, %v1421_v9  ;;  %v3659_v62 = vld [vmem:[%s4708_s0 + $0xb0] sm:$0xff] }
  0xed   :  { %v1110_v45 = vmul.f32 %v3211_v35, %v3479_v40  ;;  %v1411_v15 = vadd.f32 %v1410_v53, %v3577_v55  ;;  %v1425_v60 = vmul.f32 %v3595_v61, %v3595_v61  ;;  %v1111_v40 = vmul.f32 %v3211_v35, %v3524_v51  ;;  %4895 = vst [vmem:[#allocation39_spill] sm:$0xff] %v3659_v62  ;;  %v3681_v46 = vld [vmem:[%s4708_s0 + $0xf0] sm:$0xff] }
  0xee   :  { %v1081_v11 = vadd.f32 %v1074_v52, %v1063_v19  ;;  %v1064_v22 = vadd.f32 %v1057_v7, %v1046_v13  ;;  %v1168_v16 = vmax.f32 %v1167_v50, 0.0  ;;  %v1429_v44 = vadd.f32 %v1428_v2, %v1423_v31  ;;  %4896 = vst [vmem:[#allocation40_spill] sm:$0xff] %v3681_v46  ;;  %v3688_v9 = vld [vmem:[%s4709_s3 + $0x14] sm:$0x7] }
  0xef   :  { %v1412_v49 = vadd.f32 %v1411_v15, %v3595_v61  ;;  %v3626_v25 = vrot.slane %v1223_v5, %v2419_v41  ;;  %v1426_v37 = vmul.f32 %v3609_v18, %v3609_v18  ;;  %v1427_v3 = vmul.f32 %v3619_v36, %v3619_v36  ;;  %v4897_v31 = vld [vmem:[#allocation4_spill] sm:$0xff] }
  0xf0   :  { %v1099_v48 = vadd.f32 %v1092_v42, %v1081_v11  ;;  %v1082_v0 = vadd.f32 %v1075_v29, %v1064_v22  ;;  %v1170_v17 = vadd.f32 1e-05, %v1168_v16  ;;  %v1430_v6 = vadd.f32 %v1429_v44, %v1424_v26  ;;  %v3725_v16 = vld [vmem:[%s4708_s0 + $0x170] sm:$0xff] }
  0xf1   :  { %v1413_v24 = vadd.f32 %v1412_v49, %v3609_v18  ;;  %v3650_v23 = vrot.slane %v1224_v56, %v4894_v4  ;;  %v3653_v59 = vrot.slane %v1224_v56, %v2419_v41  ;;  %v3662_v57 = vrot.slane %v1225_v54, %v2419_v41  ;;  %4900 = vst [vmem:[#allocation26_spill] sm:$0xff] %v3725_v16 }
  0xf2   :  { %v1117_v35 = vadd.f32 %v1110_v45, %v1099_v48  ;;  %v1100_v51 = vadd.f32 %v1093_v12, %v1082_v0  ;;  %2257 = vrsqrt.f32 %v1170_v17  ;;  %v1431_v47 = vadd.f32 %v1430_v6, %v1425_v60  ;;  %v3707_v12 = vld [vmem:[%s4708_s0 + $0x130] sm:$0xff]  ;;  %v1169_v60 = vld [vmem:[%s4710_s1 + $0x4] sm:$0x1] }
  0xf3   :  { %v1414_v58 = vadd.f32 %v1413_v24, %v3619_v36  ;;  %v3665_v63 = vmul.f32 0.0, %v3626_v25  ;;  %v1685_v14 = vadd.f32 %v3642_v21, %v3637_v1  ;;  %v3673_v52 = vrot.slane %v1225_v54, %v4894_v4  ;;  %4898 = vst [vmem:[#allocation33_spill] sm:$0xff] %v3707_v12  ;;  %v3733_v48 = vld [vmem:[%s4709_s3 + $0x34] sm:$0x7] }
  0xf4   :  { %1124 = vst [vmem:[%s4712_s4 + $0x158] sm:$0xff] %v1117_v35  ;;  %v1118_v30 = vadd.f32 %v1111_v40, %v1100_v51  ;;  %v1432_v32 = vadd.f32 %v1431_v47, %v1426_v37  ;;  %v3676_v7 = vrot.slane %v1223_v5, %v4894_v4  ;;  %v1697_v39 = vmul.f32 %v3637_v1, %v3637_v1  ;;  %v1501_v0 = vld [vmem:[%s4709_s3 + $0x54] sm:$0x7] }
  0xf5   :  { %v1415_v10 = vrot.slane %v1414_v58, 4  ;;  %v1686_v42 = vadd.f32 %v1685_v14, %v3659_v62  ;;  %v1698_v27 = vmul.f32 %v3642_v21, %v3642_v21  ;;  %v1699_v38 = vmul.f32 %v3659_v62, %v3659_v62 }
  0xf6   :  { %1125 = vst [vmem:[%s4712_s4 + $0x198] sm:$0xff] %v1118_v30  ;;  %v1433_v34 = vadd.f32 %v1432_v32, %v1427_v3  ;;  %v3696_v19 = vrot.slane %v1224_v56, %v4897_v31  ;;  %v3699_v13 = vrot.slane %v1225_v54, %v4897_v31  ;;  %v3702_v29 = vrot.slane %v1223_v5, %v4897_v31 }
  0xf7   :  { %v1416_v53 = vadd.f32 %v1415_v10, %v1414_v58  ;;  %v1687_v26 = vadd.f32 %v1686_v42, %v3681_v46  ;;  %v1700_v2 = vmul.f32 %v3681_v46, %v3681_v46  ;;  %v1704_v11 = vadd.f32 %v1698_v27, %v1697_v39  ;;  %v3769_v10 = vld [vmem:[%s4708_s0 + $0x1b0] sm:$0xff]  ;;  %v1173_v39 = vld [vmem:[%s4711_s2 + $0x4] sm:$0x1] }
  0xf8   :  { %v1434_v50 = vrot.slane %v1433_v34, 4  ;;  %v3713_v45 = vmul.f32 0.0, %v3676_v7  ;;  %v3716_v22 = vmul.f32 0.0, %v3662_v57  ;;  %v3720_v15 = vrot.slane %v3688_v9, %v2419_v41  ;;  %4904 = vst [vmem:[#allocation32_spill] sm:$0xff] %v3769_v10 }
  0xf9   :  { %v1417_v5 = vrot.slane %v1416_v53, 2  ;;  %v3740_v40 = vrot.slane %v3688_v9, %v4894_v4  ;;  %v1688_v49 = vadd.f32 %v1687_v26, %v3707_v12  ;;  %v1705_v17 = vadd.f32 %v1704_v11, %v1699_v38 }
  0xfa   :  { %4899 = vst [vmem:[#allocation36_spill] sm:$0xff] %v3720_v15  ;;  %v1435_v44 = vadd.f32 %v1434_v50, %v1433_v34  ;;  %v3744_v56 = vmul.f32 0.0, %v3702_v29  ;;  %v3747_v37 = vmul.f32 0.0, %v3673_v52  ;;  %v3750_v6 = vmul.f32 0.0, %v3699_v13 }
  0xfb   :  { %4901 = vst [vmem:[#allocation37_spill] sm:$0xff] %v3740_v40  ;;  %v1418_v35 = vadd.f32 %v1417_v5, %v1416_v53  ;;  %v1689_v24 = vadd.f32 %v1688_v49, %v3725_v16  ;;  %v1701_v3 = vmul.f32 %v3707_v12, %v3707_v12  ;;  %v1706_v47 = vadd.f32 %v1705_v17, %v1700_v2  ;;  %v2279_v49 = vld [vmem:[%s4708_s0 + $0x20] sm:$0xff] }
  0xfc   :  { %v2258_v51 = vpop.eup %2257  ;;  %v1436_v54 = vrot.slane %v1435_v44, 2  ;;  %v3757_v58 = vrot.slane %v3733_v48, %v4894_v4  ;;  %v3761_v32 = vrot.slane %v3733_v48, %v2419_v41  ;;  %v3764_v14 = vrot.slane %v1501_v0, %v2419_v41 }
  0xfd   :  { %v1172_v30 = vmul.f32 %v2258_v51, %v1169_v60  ;;  %v3775_v42 = vmul.f32 0.0, %v3720_v15  ;;  %v3778_v27 = vrot.slane %v1501_v0, %v4894_v4  ;;  %v3781_v38 = vmul.f32 0.0, %v3740_v40 }
  0xfe   :  { %4902 = vst [vmem:[#allocation18_spill] sm:$0xff] %v3757_v58  ;;  %4903 = vst [vmem:[#allocation28_spill] sm:$0xff] %v3761_v32  ;;  %v1437_v34 = vadd.f32 %v1436_v54, %v1435_v44  ;;  %v1419_v26 = vrot.slane %v1418_v35, 1  ;;  %v1702_v2 = vmul.f32 %v3725_v16, %v3725_v16  ;;  %v1690_v5 = vadd.f32 %v1689_v24, %v3769_v10  ;;  %v2281_v54 = vld [vmem:[%s4708_s0 + $0xa0] sm:$0xff]  ;;  %v3800_v24 = vld [vmem:[%s4708_s0 + $0x38] sm:$0xff] }
  0xff   :  { %4905 = vst [vmem:[#allocation20_spill] sm:$0xff] %v3775_v42  ;;  %4906 = vst [vmem:[#allocation34_spill] sm:$0xff] %v3781_v38  ;;  %v1174_v53 = vmul.f32 %v1172_v30, %v3534_v28  ;;  %v1180_v50 = vrot.slane %v1172_v30, %v2419_v41  ;;  %v1707_v60 = vadd.f32 %v1706_v47, %v1701_v3  ;;  %v2280_v28 = vld [vmem:[%s4708_s0 + $0x60] sm:$0xff]  ;;  %v3826_v1 = vsel %vm1961_vm1, %v3800_v24, 0.0 }
 0x100   :  { %v1438_v11 = vrot.slane %v1437_v34, 1  ;;  %4907 = vst [vmem:[#allocation23_spill] sm:$0xff] %v3800_v24  ;;  %v2282_v3 = vld [vmem:[%s4708_s0 + $0xe0] sm:$0xff]  ;;  %v3816_v46 = vrot.slane %v1501_v0, %v4897_v31  ;;  %v1420_v62 = vadd.f32 %v1419_v26, %v1418_v35  ;;  %v1691_v21 = vrot.slane %v1690_v5, 4  ;;  %v3831_v35 = vld [vmem:[%s4708_s0 + $0x78] sm:$0xff] }
 0x101   :  { %v1175_v44 = vsub.f32 %v1173_v39, %v1174_v53  ;;  %v1182_v17 = vmul.f32 %v2279_v49, %v1180_v50  ;;  %v1183_v51 = vmul.f32 %v2280_v28, %v1180_v50  ;;  %v1184_v30 = vmul.f32 %v2281_v54, %v1180_v50  ;;  %v2283_v39 = vld [vmem:[%s4708_s0 + $0x120] sm:$0xff]  ;;  %4908 = vst [vmem:[#allocation38_spill] sm:$0xff] %v3831_v35  ;;  %v3836_v26 = vld [vmem:[%s4708_s0 + $0xb8] sm:$0xff] }
 0x102   :  { %v1185_v47 = vmul.f32 %v2282_v3, %v1180_v50  ;;  %v1186_v53 = vmul.f32 %v2283_v39, %v1180_v50  ;;  %v2284_v49 = vld [vmem:[%s4708_s0 + $0x160] sm:$0xff]  ;;  %v3820_v3 = vrot.slane %v3688_v9, %v4897_v31  ;;  %v1703_v39 = vmul.f32 %v3769_v10, %v3769_v10  ;;  %4909 = vst [vmem:[#allocation24_spill] sm:$0xff] %v3836_v26 }
 0x103   :  { %v1187_v28 = vmul.f32 %v2284_v49, %v1180_v50  ;;  %v2285_v54 = vld [vmem:[%s4708_s0 + $0x1a0] sm:$0xff]  ;;  %v1193_v12 = vrot.slane %v1175_v44, %v2419_v41  ;;  %v1708_v49 = vadd.f32 %v1707_v60, %v1702_v2  ;;  %v1439_v15 = vadd.f32 %v1438_v11, %v1437_v34 }
 0x104   :  { %v1188_v16 = vmul.f32 %v2285_v54, %v1180_v50  ;;  %v3838_v60 = vmul.f32 0.020408163, %v1420_v62 }
 0x105   :  { %v1195_v50 = vadd.f32 %v1193_v12, %v1182_v17  ;;  %v1196_v54 = vadd.f32 %v1193_v12, %v1183_v51  ;;  %v1197_v44 = vadd.f32 %v1193_v12, %v1184_v30  ;;  %v1198_v38 = vadd.f32 %v1193_v12, %v1185_v47 }
 0x106   :  { %v1199_v0 = vadd.f32 %v1193_v12, %v1186_v53  ;;  %v1200_v42 = vadd.f32 %v1193_v12, %v1187_v28  ;;  %v1201_v40 = vadd.f32 %v1193_v12, %v1188_v16  ;;  %4910 = vst [vmem:[#allocation25_spill] sm:$0xff] %v3838_v60  ;;  %v3840_v17 = vadd.f32 %v1691_v21, %v1690_v5 }
 0x107   :  { %v1202_v9 = vmax.f32 %v1195_v50, 0.0  ;;  %v1203_v32 = vmax.f32 %v1196_v54, 0.0  ;;  %v1204_v58 = vmax.f32 %v1197_v44, 0.0  ;;  %v1205_v36 = vmax.f32 %v1198_v38, 0.0 }
 0x108   :  { %v1206_v2 = vmax.f32 %v1199_v0, 0.0  ;;  %v3842_v12 = vadd.f32 %v1708_v49, %v1703_v39  ;;  %v1207_v11 = vmax.f32 %v1200_v42, 0.0  ;;  %v1208_v30 = vmax.f32 %v1201_v40, 0.0 }
 0x109   :  { %v1209_v16 = vmin.f32 %v1202_v9, 6.0  ;;  %v1210_v34 = vmin.f32 %v1203_v32, 6.0  ;;  %v1211_v38 = vmin.f32 %v1204_v58, 6.0  ;;  %v1212_v51 = vmin.f32 %v1205_v36, 6.0 }
 0x10a   :  { %v3846_v47 = vsel %vm1961_vm1, %v3831_v35, 0.0  ;;  %v3850_v53 = vsel %vm1961_vm1, %v3836_v26, 0.0  ;;  %v3860_v36 = vmul.f32 0.020408163, %v1439_v15  ;;  %v3864_v5 = vmul.f32 %v3838_v60, %v3838_v60 }
 0x10b   :  { %v1216_v21 = vsel %vm19_vm0, %v1209_v16, 0.0  ;;  %v1217_v62 = vsel %vm19_vm0, %v1210_v34, 0.0  ;;  %v3858_v58 = vsel %vm19_vm0, %v1211_v38, 0.0  ;;  %v1213_v49 = vmin.f32 %v1206_v2, 6.0 }
 0x10c   :  { %v1226_v40 = vrot.slane %v1216_v21, 7  ;;  %v1227_v32 = vrot.slane %v1217_v62, 7  ;;  %v1233_v42 = vrot.slane %v1216_v21, 1  ;;  %v1244_v28 = vmul.f32 %v3650_v23, %v1216_v21 }
 0x10d   :  { %v1228_v39 = vrot.slane %v3858_v58, 7  ;;  %v1214_v50 = vmin.f32 %v1207_v11, 6.0  ;;  %v3872_v15 = vsel %vm19_vm0, %v1212_v51, 0.0  ;;  %v3874_v0 = vmin.f32 %v1208_v30, 6.0 }
 0x10e   :  { %v1255_v54 = vmul.f32 %v3653_v59, %v1226_v40  ;;  %v1273_v44 = vmul.f32 %v3662_v57, %v1227_v32  ;;  %v1234_v9 = vrot.slane %v1217_v62, 1  ;;  %v1245_v16 = vmul.f32 %v3650_v23, %v1217_v62 }
 0x10f   :  { %v1256_v34 = vmul.f32 %v3653_v59, %v1227_v32  ;;  %v1274_v38 = vmul.f32 %v3662_v57, %v1228_v39  ;;  %v1309_v2 = vmul.f32 %v3673_v52, %v1217_v62  ;;  %v1345_v11 = vmul.f32 %v3696_v19, %v1233_v42 }
 0x110   :  { %v1262_v10 = vadd.f32 %v1255_v54, %v1244_v28  ;;  %v3882_v18 = vrot.slane %v3858_v58, 1  ;;  %v1363_v51 = vmul.f32 %v3699_v13, %v1234_v9  ;;  %v1292_v30 = vmul.f32 %v3626_v25, %v1226_v40 }
 0x111   :  { %v1263_v61 = vadd.f32 %v1256_v34, %v1245_v16  ;;  %v1229_v55 = vrot.slane %v3872_v15, 7  ;;  %v1310_v33 = vmul.f32 %v3673_v52, %v3858_v58  ;;  %v1246_v28 = vmul.f32 %v3650_v23, %v3858_v58 }
 0x112   :  { %v1280_v43 = vadd.f32 %v1273_v44, %v1262_v10  ;;  %v1257_v54 = vmul.f32 %v3653_v59, %v1228_v39  ;;  %v1328_v26 = vmul.f32 %v3676_v7, %v1216_v21  ;;  %v1346_v60 = vmul.f32 %v3696_v19, %v1234_v9 }
 0x113   :  { %v1281_v8 = vadd.f32 %v1274_v38, %v1263_v61  ;;  %v1275_v16 = vmul.f32 %v3662_v57, %v1229_v55  ;;  %v1364_v10 = vmul.f32 %v3699_v13, %v3882_v18  ;;  %v1293_v34 = vmul.f32 %v3626_v25, %v1227_v32 }
 0x114   :  { %v1298_v40 = vadd.f32 %v3665_v63, %v1280_v43  ;;  %v1264_v44 = vadd.f32 %v1257_v54, %v1246_v28  ;;  %v1382_v24 = vmul.f32 %v3702_v29, %v1233_v42  ;;  %v3901_v41 = vrot.slane %v3872_v15, 1 }
 0x115   :  { %v1299_v35 = vadd.f32 %v1292_v30, %v1281_v8  ;;  %v3905_v61 = vsel %vm19_vm0, %v1213_v49, 0.0  ;;  %v1311_v43 = vmul.f32 %v3673_v52, %v3872_v15  ;;  %v1329_v8 = vmul.f32 %v3676_v7, %v1217_v62 }
 0x116   :  { %v1316_v21 = vadd.f32 %v1309_v2, %v1298_v40  ;;  %v1282_v38 = vadd.f32 %v1275_v16, %v1264_v44  ;;  %v3910_v63 = vrot.slane %v3905_v61, 7  ;;  %v1247_v32 = vmul.f32 %v3650_v23, %v3872_v15 }
 0x117   :  { %v1317_v28 = vadd.f32 %v1310_v33, %v1299_v35  ;;  %v1258_v42 = vmul.f32 %v3653_v59, %v1229_v55  ;;  %v1347_v2 = vmul.f32 %v3696_v19, %v3882_v18  ;;  %v1365_v33 = vmul.f32 %v3699_v13, %v3901_v41 }
 0x118   :  { %v1334_v30 = vadd.f32 %v3713_v45, %v1316_v21  ;;  %v1300_v49 = vadd.f32 %v1293_v34, %v1282_v38  ;;  %v1276_v54 = vmul.f32 %v3662_v57, %v3910_v63  ;;  %v1294_v62 = vmul.f32 %v3626_v25, %v1228_v39 }
 0x119   :  { %v1335_v16 = vadd.f32 %v1328_v26, %v1317_v28  ;;  %v1265_v35 = vadd.f32 %v1258_v42, %v1247_v32  ;;  %v1383_v4 = vmul.f32 %v3702_v29, %v1234_v9  ;;  %v1312_v45 = vmul.f32 %v3673_v52, %v3905_v61 }
 0x11a   :  { %v1352_v40 = vadd.f32 %v1345_v11, %v1334_v30  ;;  %v1318_v44 = vadd.f32 %v1311_v43, %v1300_v49  ;;  %v3929_v38 = vsel %vm19_vm0, %v1214_v50, 0.0  ;;  %v1248_v26 = vmul.f32 %v3650_v23, %v3905_v61 }
 0x11b   :  { %v1353_v34 = vadd.f32 %v1346_v60, %v1335_v16  ;;  %v1283_v21 = vadd.f32 %v1276_v54, %v1265_v35  ;;  %v3934_v39 = vrot.slane %v3905_v61, 1  ;;  %v1231_v11 = vrot.slane %v3929_v38, 7 }
 0x11c   :  { %v1370_v28 = vadd.f32 %v1363_v51, %v1352_v40  ;;  %v1336_v32 = vadd.f32 %v1329_v8, %v1318_v44  ;;  %v1330_v60 = vmul.f32 %v3676_v7, %v3858_v58  ;;  %v1259_v42 = vmul.f32 %v3653_v59, %v3910_v63 }
 0x11d   :  { %v1371_v9 = vadd.f32 %v1364_v10, %v1353_v34  ;;  %v1301_v43 = vadd.f32 %v1294_v62, %v1283_v21  ;;  %v1348_v51 = vmul.f32 %v3696_v19, %v3901_v41  ;;  %v1277_v8 = vmul.f32 %v3662_v57, %v1231_v11 }
 0x11e   :  { %v1388_v50 = vadd.f32 %v3744_v56, %v1370_v28  ;;  %v1354_v30 = vadd.f32 %v1347_v2, %v1336_v32  ;;  %v1266_v16 = vadd.f32 %v1259_v42, %v1248_v26  ;;  %v1295_v10 = vmul.f32 %v3626_v25, %v1229_v55 }
 0x11f   :  { %v1389_v49 = vadd.f32 %v1382_v24, %v1371_v9  ;;  %v1319_v54 = vadd.f32 %v1312_v45, %v1301_v43  ;;  %v1366_v35 = vmul.f32 %v3699_v13, %v3934_v39  ;;  %v1313_v56 = vmul.f32 %v3673_v52, %v3929_v38 }
 0x120   :  { %1395 = vst [vmem:[%s4712_s4 + $0x20] sm:$0xff] %v1388_v50  ;;  %v1372_v58 = vadd.f32 %v1365_v33, %v1354_v30  ;;  %v1443_v2 = vsub.f32 %v3860_v36, %v3864_v5  ;;  %v1284_v55 = vadd.f32 %v1277_v8, %v1266_v16  ;;  %v1222_v62 = vsel %vm19_vm0, %v3874_v0, 0.0 }
 0x121   :  { %1396 = vst [vmem:[%s4712_s4 + $0x60] sm:$0xff] %v1389_v49  ;;  %v1337_v24 = vadd.f32 %v1330_v60, %v1319_v54  ;;  %v1249_v33 = vmul.f32 %v3650_v23, %v3929_v38  ;;  %v1384_v44 = vmul.f32 %v3702_v29, %v3882_v18  ;;  %v3966_v45 = vrot.slane %v3929_v38, 1 }
 0x122   :  { %v1390_v40 = vadd.f32 %v1383_v4, %v1372_v58  ;;  %v1232_v36 = vrot.slane %v1222_v62, 7  ;;  %v1302_v34 = vadd.f32 %v1295_v10, %v1284_v55  ;;  %v1331_v21 = vmul.f32 %v3676_v7, %v3872_v15 }
 0x123   :  { %v1355_v5 = vadd.f32 %v1348_v51, %v1337_v24  ;;  %v1260_v26 = vmul.f32 %v3653_v59, %v1231_v11  ;;  %v1349_v4 = vmul.f32 %v3696_v19, %v3934_v39  ;;  %v1367_v18 = vmul.f32 %v3699_v13, %v3966_v45 }
 0x124   :  { %1397 = vst [vmem:[%s4712_s4 + $0xa0] sm:$0xff] %v1390_v40  ;;  %v1250_v0 = vmul.f32 %v3650_v23, %v1222_v62  ;;  %v1278_v28 = vmul.f32 %v3662_v57, %v1232_v36  ;;  %v1320_v9 = vadd.f32 %v1313_v56, %v1302_v34  ;;  %v1296_v15 = vmul.f32 %v3626_v25, %v3910_v63 }
 0x125   :  { %v1373_v32 = vadd.f32 %v1366_v35, %v1355_v5  ;;  %v1267_v43 = vadd.f32 %v1260_v26, %v1249_v33  ;;  %v1385_v60 = vmul.f32 %v3702_v29, %v3901_v41  ;;  %v1239_v42 = vrot.slane %v1222_v62, 1 }
 0x126   :  { %v1314_v50 = vmul.f32 %v3673_v52, %v1222_v62  ;;  %v1261_v30 = vmul.f32 %v3653_v59, %v1232_v36  ;;  %v1338_v8 = vadd.f32 %v1331_v21, %v1320_v9  ;;  %v1332_v23 = vmul.f32 %v3676_v7, %v3905_v61 }
 0x127   :  { %v1391_v51 = vadd.f32 %v1384_v44, %v1373_v32  ;;  %v1285_v49 = vadd.f32 %v1278_v28, %v1267_v43  ;;  %v1297_v54 = vmul.f32 %v3626_v25, %v1231_v11  ;;  %v1444_v16 = vmax.f32 %v1443_v2, 0.0  ;;  %v4002_v11 = vld [vmem:[%s4708_s0 + $0xf8] sm:$0xff] }
 0x128   :  { %v1268_v57 = vadd.f32 %v1261_v30, %v1250_v0  ;;  %v1693_v63 = vrot.slane %v3840_v17, 2  ;;  %v1356_v41 = vadd.f32 %v1349_v4, %v1338_v8  ;;  %v1350_v59 = vmul.f32 %v3696_v19, %v3966_v45  ;;  %4911 = vst [vmem:[#allocation31_spill] sm:$0xff] %v4002_v11  ;;  %v1775_v32 = vld [vmem:[%s4709_s3 + $0x18] sm:$0x7] }
 0x129   :  { %1398 = vst [vmem:[%s4712_s4 + $0xe0] sm:$0xff] %v1391_v51  ;;  %v1303_v52 = vadd.f32 %v1296_v15, %v1285_v49  ;;  %v1710_v10 = vrot.slane %v3842_v12, 4  ;;  %v1368_v58 = vmul.f32 %v3699_v13, %v1239_v42  ;;  %v1446_v35 = vadd.f32 1e-05, %v1444_v16 }
 0x12a   :  { %v1286_v61 = vadd.f32 %v3716_v22, %v1268_v57  ;;  %v1694_v25 = vadd.f32 %v1693_v63, %v3840_v17  ;;  %v1374_v56 = vadd.f32 %v1367_v18, %v1356_v41  ;;  %v1333_v24 = vmul.f32 %v3676_v7, %v3929_v38  ;;  %v4010_v22 = vld [vmem:[%s4708_s0 + $0x138] sm:$0xff]  ;;  %v4915_v57 = vld [vmem:[#allocation3_spill] sm:$0xff] }
 0x12b   :  { %v1321_v2 = vadd.f32 %v1314_v50, %v1303_v52  ;;  %v1711_v55 = vadd.f32 %v1710_v10, %v3842_v12  ;;  %2259 = vrsqrt.f32 %v1446_v35  ;;  %4912 = vst [vmem:[#allocation19_spill] sm:$0xff] %v4010_v22  ;;  %v1964_v17 = vadd.f32 %v3846_v47, %v3826_v1  ;;  %v4078_v63 = vld [vmem:[%s4708_s0 + $0x1b8] sm:$0xff]  ;;  %v4919_v52 = vld [vmem:[#allocation23_spill] sm:$0xff]  ;;  %v4920_v10 = vld [vmem:[#allocation38_spill] sm:$0xff] }
 0x12c   :  { %v1304_v62 = vadd.f32 %v1297_v54, %v1286_v61  ;;  %v1695_v13 = vrot.slane %v1694_v25, 1  ;;  %v1392_v33 = vadd.f32 %v1385_v60, %v1374_v56  ;;  %v1967_v36 = vsel %vm1961_vm1, %v4002_v11, 0.0  ;;  %v1777_v60 = vld [vmem:[%s4709_s3 + $0x58] sm:$0x7]  ;;  %4918 = vst [vmem:[#allocation29_spill] sm:$0xff] %v4078_v63 }
 0x12d   :  { %v1339_v40 = vadd.f32 %v1332_v23, %v1321_v2  ;;  %v1712_v44 = vrot.slane %v1711_v55, 2  ;;  %v1351_v12 = vmul.f32 %v3696_v19, %v1239_v42  ;;  %v1966_v5 = vadd.f32 %v3850_v53, %v1964_v17  ;;  %v1776_v53 = vld [vmem:[%s4709_s3 + $0x38] sm:$0x7]  ;;  %v1449_v17 = vld [vmem:[%s4711_s2 + $0x5] sm:$0x1] }
 0x12e   :  { %v1322_v7 = vadd.f32 %v3747_v37, %v1304_v62  ;;  %v1696_v38 = vadd.f32 %v1695_v13, %v1694_v25  ;;  %1399 = vst [vmem:[%s4712_s4 + $0x120] sm:$0xff] %v1392_v33  ;;  %v1386_v1 = vmul.f32 %v3702_v29, %v3934_v39  ;;  %v1969_v21 = vsel %vm1961_vm1, %v4010_v22, 0.0  ;;  %v4039_v39 = vld [vmem:[%s4708_s0 + $0x178] sm:$0xff] }
 0x12f   :  { %v1357_v34 = vadd.f32 %v1350_v59, %v1339_v40  ;;  %v1713_v47 = vadd.f32 %v1712_v44, %v1711_v55  ;;  %v4028_v37 = vrot.slane %v3733_v48, %v4897_v31  ;;  %v4031_v19 = vmul.f32 0.0, %v3764_v14  ;;  %4913 = vst [vmem:[#allocation21_spill] sm:$0xff] %v4039_v39 }
 0x130   :  { %v1340_v26 = vadd.f32 %v1333_v24, %v1322_v7  ;;  %v1968_v4 = vadd.f32 %v1967_v36, %v1966_v5  ;;  %v4042_v0 = vmul.f32 0.0, %v3820_v3  ;;  %v4045_v48 = vmul.f32 0.0, %v3778_v27  ;;  %v4926_v7 = vld [vmem:[#allocation25_spill] sm:$0xff]  ;;  %v4927_v5 = vld [vmem:[#allocation24_spill] sm:$0xff] }
 0x131   :  { %v1375_v18 = vadd.f32 %v1368_v58, %v1357_v34  ;;  %v1714_v28 = vrot.slane %v1713_v47, 1  ;;  %v1387_v43 = vmul.f32 %v3702_v29, %v3966_v45  ;;  %v4052_v15 = vmul.f32 0.020408163, %v1696_v38  ;;  %v1445_v29 = vld [vmem:[%s4710_s1 + $0x5] sm:$0x1] }
 0x132   :  { %v1358_v9 = vadd.f32 %v1351_v12, %v1340_v26  ;;  %v1970_v42 = vadd.f32 %v1969_v21, %v1968_v4  ;;  %v4058_v30 = vmul.f32 0.0, %v3816_v46  ;;  %v1971_v8 = vsel %vm1961_vm1, %v4039_v39, 0.0  ;;  %v4914_v45 = vld [vmem:[#allocation2_spill] sm:$0xff] }
 0x133   :  { %v1393_v50 = vadd.f32 %v1386_v1, %v1375_v18  ;;  %v1715_v51 = vadd.f32 %v1714_v28, %v1713_v47  ;;  %v4067_v23 = vrot.slane %v1776_v53, %v4914_v45  ;;  %v4070_v54 = vrot.slane %v1775_v32, %v4915_v57  ;;  %v4928_v18 = vld [vmem:[#allocation14_spill] sm:$0xff] }
 0x134   :  { %v1376_v49 = vadd.f32 %v3750_v6, %v1358_v9  ;;  %v4073_v16 = vrot.slane %v1775_v32, %v4914_v45  ;;  %v4084_v6 = vrot.slane %v1776_v53, %v4915_v57  ;;  %v4087_v41 = vrot.slane %v1777_v60, %v4915_v57 }
 0x135   :  { %4916 = vst [vmem:[#allocation27_spill] sm:$0xff] %v4070_v54  ;;  %1400 = vst [vmem:[%s4712_s4 + $0x160] sm:$0xff] %v1393_v50  ;;  %v1981_v59 = vmul.f32 %v4919_v52, %v4919_v52  ;;  %v1982_v58 = vmul.f32 %v4920_v10, %v4920_v10  ;;  %v2260_v61 = vpop.eup %2259  ;;  %v1717_v25 = vmul.f32 0.020408163, %v1715_v51  ;;  %v1718_v56 = vmul.f32 %v4052_v15, %v4052_v15  ;;  %v4932_v51 = vld [vmem:[#allocation12_spill] sm:$0xff] }
 0x136   :  { %4917 = vst [vmem:[#allocation30_spill] sm:$0xff] %v4073_v16  ;;  %v1394_v35 = vadd.f32 %v1387_v43, %v1376_v49  ;;  %v1972_v2 = vadd.f32 %v1971_v8, %v1970_v42  ;;  %v1448_v24 = vmul.f32 %v2260_v61, %v1445_v29  ;;  %v4096_v55 = vrot.slane %v1777_v60, %v4914_v45  ;;  %v4930_v43 = vld [vmem:[#allocation10_spill] sm:$0xff]  ;;  %v4931_v42 = vld [vmem:[#allocation13_spill] sm:$0xff]  ;;  %v4934_v52 = vld [vmem:[#allocation16_spill] sm:$0xff] }
 0x137   :  { %v4099_v62 = vrot.slane %v1776_v53, %v4897_v31  ;;  %v1973_v13 = vsel %vm1961_vm1, %v4078_v63, 0.0  ;;  %v4110_v33 = vmul.f32 0.0, %v4070_v54  ;;  %v4113_v40 = vmul.f32 0.0, %v4073_v16  ;;  %v4933_v49 = vld [vmem:[#allocation17_spill] sm:$0xff] }
 0x138   :  { %4921 = vst [vmem:[#allocation35_spill] sm:$0xff] %v4096_v55  ;;  %1401 = vst [vmem:[%s4712_s4 + $0x1a0] sm:$0xff] %v1394_v35  ;;  %v4116_v44 = vrot.slane %v1777_v60, %v4897_v31  ;;  %v4119_v36 = vrot.slane %v1775_v32, %v4897_v31  ;;  %v1450_v12 = vmul.f32 %v1448_v24, %v4926_v7  ;;  %v1988_v26 = vsel %vm1961_vm1, %v1981_v59, 0.0  ;;  %v4929_v32 = vld [vmem:[#allocation15_spill] sm:$0xff] }
 0x139   :  { %4922 = vst [vmem:[#allocation41_spill] sm:$0xff] %v4099_v62  ;;  %4923 = vst [vmem:[#allocation42_spill] sm:$0xff] %v4110_v33  ;;  %v1456_v38 = vrot.slane %v1448_v24, %v4915_v57  ;;  %v1983_v34 = vmul.f32 %v4927_v5, %v4927_v5  ;;  %v1984_v1 = vmul.f32 %v4002_v11, %v4002_v11  ;;  %v1989_v53 = vsel %vm1961_vm1, %v1982_v58, 0.0 }
 0x13a   :  { %4924 = vst [vmem:[#allocation11_spill] sm:$0xff] %v4113_v40  ;;  %4925 = vst [vmem:[#allocation5_spill] sm:$0xff] %v4116_v44  ;;  %v1719_v47 = vsub.f32 %v1717_v25, %v1718_v56  ;;  %v1974_v21 = vadd.f32 %v1973_v13, %v1972_v2  ;;  %v1451_v4 = vsub.f32 %v1449_v17, %v1450_v12 }
 0x13b   :  { %v1458_v28 = vmul.f32 %v1456_v38, %v4928_v18  ;;  %v1459_v9 = vmul.f32 %v1456_v38, %v4929_v32  ;;  %v1460_v60 = vmul.f32 %v1456_v38, %v4930_v43  ;;  %v1461_v50 = vmul.f32 %v1456_v38, %v4931_v42 }
 0x13c   :  { %v1462_v8 = vmul.f32 %v1456_v38, %v4932_v51  ;;  %v1463_v29 = vmul.f32 %v1456_v38, %v4933_v49  ;;  %v1464_v10 = vmul.f32 %v1456_v38, %v4934_v52  ;;  %v1469_v61 = vrot.slane %v1451_v4, %v4915_v57 }
 0x13d   :  { %v1985_v59 = vmul.f32 %v4010_v22, %v4010_v22  ;;  %v1986_v58 = vmul.f32 %v4039_v39, %v4039_v39  ;;  %v1987_v35 = vmul.f32 %v4078_v63, %v4078_v63  ;;  %v1720_v25 = vmax.f32 %v1719_v47, 0.0  ;;  %v4938_v39 = vld [vmem:[#allocation37_spill] sm:$0xff] }
 0x13e   :  { %v1990_v56 = vadd.f32 %v1989_v53, %v1988_v26  ;;  %v1991_v2 = vsel %vm1961_vm1, %v1983_v34, 0.0  ;;  %v4145_v24 = vsel %vm1961_vm1, %v1984_v1, 0.0  ;;  %v1471_v13 = vadd.f32 %v1469_v61, %v1458_v28 }
 0x13f   :  { %v1472_v17 = vadd.f32 %v1469_v61, %v1459_v9  ;;  %v1473_v7 = vadd.f32 %v1469_v61, %v1460_v60  ;;  %v1474_v12 = vadd.f32 %v1469_v61, %v1461_v50  ;;  %v1475_v38 = vadd.f32 %v1469_v61, %v1462_v8 }
 0x140   :  { %v1476_v5 = vadd.f32 %v1469_v61, %v1463_v29  ;;  %v1477_v4 = vadd.f32 %v1469_v61, %v1464_v10  ;;  %v1975_v18 = vrot.slane %v1974_v21, 4  ;;  %v1478_v32 = vmax.f32 %v1471_v13, 0.0 }
 0x141   :  { %v1479_v43 = vmax.f32 %v1472_v17, 0.0  ;;  %v1480_v42 = vmax.f32 %v1473_v7, 0.0  ;;  %v1481_v51 = vmax.f32 %v1474_v12, 0.0  ;;  %v1482_v49 = vmax.f32 %v1475_v38, 0.0  ;;  %v4936_v12 = vld [vmem:[#allocation28_spill] sm:$0xff] }
 0x142   :  { %v1722_v47 = vadd.f32 1e-05, %v1720_v25  ;;  %v4148_v26 = vsel %vm1961_vm1, %v1985_v59, 0.0  ;;  %v4151_v34 = vsel %vm1961_vm1, %v1986_v58, 0.0  ;;  %v1485_v1 = vmin.f32 %v1478_v32, 6.0 }
 0x143   :  { %v1486_v53 = vmin.f32 %v1479_v43, 6.0  ;;  %v1487_v28 = vmin.f32 %v1480_v42, 6.0  ;;  %v1483_v9 = vmax.f32 %v1476_v5, 0.0  ;;  %v1488_v60 = vmin.f32 %v1481_v51, 6.0 }
 0x144   :  { %v1484_v50 = vmax.f32 %v1477_v4, 0.0  ;;  %v4153_v8 = vadd.f32 %v1991_v2, %v1990_v56  ;;  %v4156_v29 = vsel %vm1961_vm1, %v1987_v35, 0.0  ;;  %v1492_v52 = vsel %vm19_vm0, %v1485_v1, 0.0  ;;  %v4935_v56 = vld [vmem:[#allocation18_spill] sm:$0xff] }
 0x145   :  { %v1493_v10 = vsel %vm19_vm0, %v1486_v53, 0.0  ;;  %v4164_v61 = vsel %vm19_vm0, %v1487_v28, 0.0  ;;  %v4166_v59 = vadd.f32 %v1975_v18, %v1974_v21  ;;  %v1502_v58 = vrot.slane %v1492_v52, 7 }
 0x146   :  { %v1503_v25 = vrot.slane %v1493_v10, 7  ;;  %v1509_v13 = vrot.slane %v1492_v52, 1  ;;  %2261 = vrsqrt.f32 %v1722_v47  ;;  %v1520_v2 = vmul.f32 %v4935_v56, %v1492_v52 }
 0x147   :  { %v1504_v35 = vrot.slane %v4164_v61, 7  ;;  %v1489_v17 = vmin.f32 %v1482_v49, 6.0  ;;  %v1490_v7 = vmin.f32 %v1483_v9, 6.0  ;;  %v1531_v38 = vmul.f32 %v4936_v12, %v1502_v58  ;;  %v4937_v9 = vld [vmem:[#allocation36_spill] sm:$0xff] }
 0x148   :  { %v1549_v5 = vmul.f32 %v3764_v14, %v1503_v25  ;;  %v4174_v4 = vsel %vm19_vm0, %v1488_v60, 0.0  ;;  %v4176_v21 = vmin.f32 %v1484_v50, 6.0  ;;  %v1510_v18 = vrot.slane %v1493_v10, 1 }
 0x149   :  { %v1521_v32 = vmul.f32 %v4935_v56, %v1493_v10  ;;  %v1532_v43 = vmul.f32 %v4936_v12, %v1503_v25  ;;  %v1550_v42 = vmul.f32 %v3764_v14, %v1504_v35  ;;  %v1538_v51 = vadd.f32 %v1531_v38, %v1520_v2 }
 0x14a   :  { %v1585_v49 = vmul.f32 %v3778_v27, %v1493_v10  ;;  %v1621_v47 = vmul.f32 %v4028_v37, %v1509_v13  ;;  %v4184_v1 = vrot.slane %v4164_v61, 1  ;;  %v1639_v53 = vmul.f32 %v3816_v46, %v1510_v18 }
 0x14b   :  { %v1539_v28 = vadd.f32 %v1532_v43, %v1521_v32  ;;  %v1568_v60 = vmul.f32 %v4937_v9, %v1502_v58  ;;  %v1505_v50 = vrot.slane %v4174_v4, 7  ;;  %v1556_v31 = vadd.f32 %v1549_v5, %v1538_v51  ;;  %v4939_v43 = vld [vmem:[#allocation20_spill] sm:$0xff] }
 0x14c   :  { %v1586_v45 = vmul.f32 %v3778_v27, %v4164_v61  ;;  %v1522_v2 = vmul.f32 %v4935_v56, %v4164_v61  ;;  %v1533_v38 = vmul.f32 %v4936_v12, %v1504_v35  ;;  %v1604_v22 = vmul.f32 %v4938_v39, %v1492_v52 }
 0x14d   :  { %v1557_v63 = vadd.f32 %v1550_v42, %v1539_v28  ;;  %v1622_v11 = vmul.f32 %v4028_v37, %v1510_v18  ;;  %v1551_v32 = vmul.f32 %v3764_v14, %v1505_v50  ;;  %v1574_v58 = vadd.f32 %v4939_v43, %v1556_v31 }
 0x14e   :  { %v1640_v5 = vmul.f32 %v3816_v46, %v4184_v1  ;;  %v1540_v51 = vadd.f32 %v1533_v38, %v1522_v2  ;;  %v1569_v40 = vmul.f32 %v4937_v9, %v1503_v25  ;;  %v1658_v16 = vmul.f32 %v3820_v3, %v1509_v13 }
 0x14f   :  { %v1575_v33 = vadd.f32 %v1568_v60, %v1557_v63  ;;  %v4203_v54 = vrot.slane %v4174_v4, 1  ;;  %v4207_v52 = vsel %vm19_vm0, %v1489_v17, 0.0  ;;  %v1592_v28 = vadd.f32 %v1585_v49, %v1574_v58  ;;  %v4940_v17 = vld [vmem:[#allocation34_spill] sm:$0xff] }
 0x150   :  { %v4209_v42 = vpop.eup %2261  ;;  %v1558_v31 = vadd.f32 %v1551_v32, %v1540_v51  ;;  %v1587_v43 = vmul.f32 %v3778_v27, %v4174_v4  ;;  %v4214_v2 = vrot.slane %v4207_v52, 7  ;;  %v1605_v25 = vmul.f32 %v4938_v39, %v1493_v10 }
 0x151   :  { %v1593_v63 = vadd.f32 %v1586_v45, %v1575_v33  ;;  %v1523_v13 = vmul.f32 %v4935_v56, %v4174_v4  ;;  %v1534_v60 = vmul.f32 %v4936_v12, %v1505_v50  ;;  %v1610_v38 = vadd.f32 %v4940_v17, %v1592_v28 }
 0x152   :  { %v1576_v44 = vadd.f32 %v1569_v40, %v1558_v31  ;;  %v1623_v49 = vmul.f32 %v4028_v37, %v4184_v1  ;;  %v1552_v32 = vmul.f32 %v3764_v14, %v4214_v2  ;;  %v1641_v45 = vmul.f32 %v3816_v46, %v4203_v54 }
 0x153   :  { %v1611_v58 = vadd.f32 %v1604_v22, %v1593_v63  ;;  %v1541_v33 = vadd.f32 %v1534_v60, %v1523_v13  ;;  %v1570_v10 = vmul.f32 %v4937_v9, %v1504_v35  ;;  %v1628_v51 = vadd.f32 %v1621_v47, %v1610_v38 }
 0x154   :  { %v1594_v62 = vadd.f32 %v1587_v43, %v1576_v44  ;;  %v1659_v55 = vmul.f32 %v3820_v3, %v1510_v18  ;;  %v1588_v40 = vmul.f32 %v3778_v27, %v4207_v52  ;;  %v4233_v17 = vsel %vm19_vm0, %v1490_v7, 0.0 }
 0x155   :  { %v1629_v28 = vadd.f32 %v1622_v11, %v1611_v58  ;;  %v1559_v31 = vadd.f32 %v1552_v32, %v1541_v33  ;;  %v1524_v22 = vmul.f32 %v4935_v56, %v4207_v52  ;;  %v1646_v63 = vadd.f32 %v1639_v53, %v1628_v51 }
 0x156   :  { %v1612_v13 = vadd.f32 %v1605_v25, %v1594_v62  ;;  %v4238_v35 = vrot.slane %v4207_v52, 1  ;;  %v1507_v44 = vrot.slane %v4233_v17, 7  ;;  %v1606_v11 = vmul.f32 %v4938_v39, %v4164_v61 }
 0x157   :  { %v1647_v18 = vadd.f32 %v1640_v5, %v1629_v28  ;;  %v1577_v47 = vadd.f32 %v1570_v10, %v1559_v31  ;;  %v1535_v43 = vmul.f32 %v4936_v12, %v4214_v2  ;;  %v1664_v7 = vadd.f32 %v4042_v0, %v1646_v63 }
 0x158   :  { %v1630_v60 = vadd.f32 %v1623_v49, %v1612_v13  ;;  %v1624_v53 = vmul.f32 %v4028_v37, %v4203_v54  ;;  %v1553_v62 = vmul.f32 %v3764_v14, %v1507_v44  ;;  %v1571_v5 = vmul.f32 %v4937_v9, %v1505_v50 }
 0x159   :  { %v1665_v25 = vadd.f32 %v1658_v16, %v1647_v18  ;;  %v1595_v38 = vadd.f32 %v1588_v40, %v1577_v47  ;;  %v1542_v32 = vadd.f32 %v1535_v43, %v1524_v22  ;;  %1671 = vst [vmem:[%s4712_s4 + $0x28] sm:$0xff] %v1664_v7  ;;  %v1642_v58 = vmul.f32 %v3816_v46, %v4238_v35 }
 0x15a   :  { %v1648_v61 = vadd.f32 %v1641_v45, %v1630_v60  ;;  %v1589_v0 = vmul.f32 %v3778_v27, %v4233_v17  ;;  %v1994_v49 = vadd.f32 %v4145_v24, %v4153_v8  ;;  %v1498_v33 = vsel %vm19_vm0, %v4176_v21, 0.0 }
 0x15b   :  { %1672 = vst [vmem:[%s4712_s4 + $0x68] sm:$0xff] %v1665_v25  ;;  %v1613_v16 = vadd.f32 %v1606_v11, %v1595_v38  ;;  %v1560_v50 = vadd.f32 %v1553_v62, %v1542_v32  ;;  %v1525_v45 = vmul.f32 %v4935_v56, %v4233_v17  ;;  %v1660_v51 = vmul.f32 %v3820_v3, %v4184_v1  ;;  %v1721_v11 = vld [vmem:[%s4710_s1 + $0x6] sm:$0x1] }
 0x15c   :  { %v1666_v10 = vadd.f32 %v1659_v55, %v1648_v61  ;;  %v1508_v40 = vrot.slane %v1498_v33, 7  ;;  %v1977_v24 = vrot.slane %v4166_v59, 2  ;;  %v1607_v31 = vmul.f32 %v4938_v39, %v4174_v4 }
 0x15d   :  { %v1631_v8 = vadd.f32 %v1624_v53, %v1613_v16  ;;  %v1578_v28 = vadd.f32 %v1571_v5, %v1560_v50  ;;  %v1536_v22 = vmul.f32 %v4936_v12, %v1507_v44  ;;  %v1514_v21 = vrot.slane %v4233_v17, 1 }
 0x15e   :  { %1673 = vst [vmem:[%s4712_s4 + $0xa8] sm:$0xff] %v1666_v10  ;;  %v1625_v55 = vmul.f32 %v4028_v37, %v4238_v35  ;;  %v1526_v1 = vmul.f32 %v4935_v56, %v1498_v33  ;;  %v1554_v63 = vmul.f32 %v3764_v14, %v1508_v40  ;;  %v1572_v4 = vmul.f32 %v4937_v9, %v4214_v2 }
 0x15f   :  { %v1649_v13 = vadd.f32 %v1642_v58, %v1631_v8  ;;  %v1596_v18 = vadd.f32 %v1589_v0, %v1578_v28  ;;  %v1543_v47 = vadd.f32 %v1536_v22, %v1525_v45  ;;  %v1643_v43 = vmul.f32 %v3816_v46, %v1514_v21  ;;  %v4941_v45 = vld [vmem:[#allocation22_spill] sm:$0xff] }
 0x160   :  { %v1515_v7 = vrot.slane %v1498_v33, 1  ;;  %v1537_v60 = vmul.f32 %v4936_v12, %v1508_v40  ;;  %v1996_v53 = vadd.f32 %v4148_v26, %v1994_v49  ;;  %v1590_v25 = vmul.f32 %v3778_v27, %v1498_v33  ;;  %v1725_v27 = vld [vmem:[%s4711_s2 + $0x6] sm:$0x1] }
 0x161   :  { %v1667_v56 = vadd.f32 %v1660_v51, %v1649_v13  ;;  %v1614_v62 = vadd.f32 %v1607_v31, %v1596_v18  ;;  %v1561_v14 = vadd.f32 %v1554_v63, %v1543_v47  ;;  %v1661_v38 = vmul.f32 %v3820_v3, %v4203_v54  ;;  %v4942_v51 = vld [vmem:[#allocation6_spill] sm:$0xff] }
 0x162   :  { %v1544_v2 = vadd.f32 %v1537_v60, %v1526_v1  ;;  %v1573_v32 = vmul.f32 %v4937_v9, %v1507_v44  ;;  %v1724_v5 = vmul.f32 %v4209_v42, %v1721_v11  ;;  %v1608_v26 = vmul.f32 %v4938_v39, %v4207_v52  ;;  %v4945_v1 = vld [vmem:[#allocation33_spill] sm:$0xff] }
 0x163   :  { %1674 = vst [vmem:[%s4712_s4 + $0xe8] sm:$0xff] %v1667_v56  ;;  %v1632_v12 = vadd.f32 %v1625_v55, %v1614_v62  ;;  %v1579_v61 = vadd.f32 %v1572_v4, %v1561_v14  ;;  %v1626_v58 = vmul.f32 %v4028_v37, %v1514_v21  ;;  %v1644_v54 = vmul.f32 %v3816_v46, %v1515_v7 }
 0x164   :  { %v1562_v9 = vadd.f32 %v4031_v19, %v1544_v2  ;;  %v1726_v42 = vmul.f32 %v1724_v5, %v4052_v15  ;;  %v1732_v44 = vrot.slane %v1724_v5, %v4915_v57  ;;  %v1609_v16 = vmul.f32 %v4938_v39, %v4233_v17  ;;  %v4943_v19 = vld [vmem:[#allocation39_spill] sm:$0xff]  ;;  %v4944_v15 = vld [vmem:[#allocation40_spill] sm:$0xff]  ;;  %v4946_v17 = vld [vmem:[#allocation26_spill] sm:$0xff] }
 0x165   :  { %v1650_v0 = vadd.f32 %v1643_v43, %v1632_v12  ;;  %v1597_v49 = vadd.f32 %v1590_v25, %v1579_v61  ;;  %v1627_v52 = vmul.f32 %v4028_v37, %v1515_v7  ;;  %v1662_v13 = vmul.f32 %v3820_v3, %v4238_v35 }
 0x166   :  { %v1580_v50 = vadd.f32 %v1573_v32, %v1562_v9  ;;  %v1727_v33 = vsub.f32 %v1725_v27, %v1726_v42  ;;  %v1734_v10 = vmul.f32 %v1732_v44, %v4941_v45  ;;  %v1735_v40 = vmul.f32 %v1732_v44, %v4942_v51 }
 0x167   :  { %v1668_v46 = vadd.f32 %v1661_v38, %v1650_v0  ;;  %v1615_v8 = vadd.f32 %v1608_v26, %v1597_v49  ;;  %v1736_v28 = vmul.f32 %v1732_v44, %v4943_v19  ;;  %v1737_v31 = vmul.f32 %v1732_v44, %v4944_v15  ;;  %v4947_v26 = vld [vmem:[#allocation32_spill] sm:$0xff] }
 0x168   :  { %v1598_v22 = vadd.f32 %v4045_v48, %v1580_v50  ;;  %v1745_v55 = vrot.slane %v1727_v33, %v4915_v57  ;;  %v1738_v39 = vmul.f32 %v1732_v44, %v4945_v1  ;;  %v1739_v37 = vmul.f32 %v1732_v44, %v4946_v17  ;;  %v4950_v1 = vld [vmem:[#allocation5_spill] sm:$0xff] }
 0x169   :  { %1675 = vst [vmem:[%s4712_s4 + $0x128] sm:$0xff] %v1668_v46  ;;  %v1633_v63 = vadd.f32 %v1626_v58, %v1615_v8  ;;  %v1663_v18 = vmul.f32 %v3820_v3, %v1514_v21  ;;  %v1998_v47 = vadd.f32 %v4151_v34, %v1996_v53  ;;  %v4330_v61 = vmul.f32 0.0, %v4119_v36 }
 0x16a   :  { %v1616_v4 = vadd.f32 %v1609_v16, %v1598_v22  ;;  %v1747_v48 = vadd.f32 %v1745_v55, %v1734_v10  ;;  %v1748_v11 = vadd.f32 %v1745_v55, %v1735_v40  ;;  %v1749_v43 = vadd.f32 %v1745_v55, %v1736_v28  ;;  %v4948_v40 = vld [vmem:[#allocation35_spill] sm:$0xff] }
 0x16b   :  { %v1651_v7 = vadd.f32 %v1644_v54, %v1633_v63  ;;  %v1750_v60 = vadd.f32 %v1745_v55, %v1737_v31  ;;  %v1751_v56 = vadd.f32 %v1745_v55, %v1738_v39  ;;  %v1752_v62 = vadd.f32 %v1745_v55, %v1739_v37  ;;  %v4949_v31 = vld [vmem:[#allocation41_spill] sm:$0xff]  ;;  %v4951_v63 = vld [vmem:[#allocation27_spill] sm:$0xff] }
 0x16c   :  { %v1634_v14 = vadd.f32 %v1627_v52, %v1616_v4  ;;  %v1754_v25 = vmax.f32 %v1747_v48, 0.0  ;;  %v1755_v38 = vmax.f32 %v1748_v11, 0.0  ;;  %v1756_v2 = vmax.f32 %v1749_v43, 0.0  ;;  %v4952_v4 = vld [vmem:[#allocation30_spill] sm:$0xff] }
 0x16d   :  { %v1669_v32 = vadd.f32 %v1662_v13, %v1651_v7  ;;  %v1757_v5 = vmax.f32 %v1750_v60, 0.0  ;;  %v1758_v12 = vmax.f32 %v1751_v56, 0.0  ;;  %v1759_v35 = vmax.f32 %v1752_v62, 0.0 }
 0x16e   :  { %v1652_v3 = vadd.f32 %v4058_v30, %v1634_v14  ;;  %v1761_v21 = vmin.f32 %v1754_v25, 6.0  ;;  %v1762_v34 = vmin.f32 %v1755_v38, 6.0  ;;  %v1763_v53 = vmin.f32 %v1756_v2, 6.0  ;;  %v4953_v14 = vld [vmem:[#allocation42_spill] sm:$0xff] }
 0x16f   :  { %1676 = vst [vmem:[%s4712_s4 + $0x168] sm:$0xff] %v1669_v32  ;;  %v1740_v58 = vmul.f32 %v1732_v44, %v4947_v26  ;;  %v4336_v27 = vadd.f32 %v1977_v24, %v4166_v59  ;;  %v4339_v54 = vadd.f32 %v4156_v29, %v1998_v47  ;;  %v1764_v52 = vmin.f32 %v1757_v5, 6.0 }
 0x170   :  { %v1670_v30 = vadd.f32 %v1663_v18, %v1652_v3  ;;  %v1768_v9 = vsel %vm19_vm0, %v1761_v21, 0.0  ;;  %v1769_v42 = vsel %vm19_vm0, %v1762_v34, 0.0  ;;  %v4347_v0 = vsel %vm19_vm0, %v1763_v53, 0.0 }
 0x171   :  { %v1778_v44 = vrot.slane %v1768_v9, 7  ;;  %v1779_v49 = vrot.slane %v1769_v42, 7  ;;  %v1785_v16 = vrot.slane %v1768_v9, 1  ;;  %v1796_v29 = vmul.f32 %v4067_v23, %v1768_v9 }
 0x172   :  { %1677 = vst [vmem:[%s4712_s4 + $0x1a8] sm:$0xff] %v1670_v30  ;;  %v1780_v59 = vrot.slane %v4347_v0, 7  ;;  %v1765_v24 = vmin.f32 %v1758_v12, 6.0  ;;  %v1766_v50 = vmin.f32 %v1759_v35, 6.0  ;;  %v1786_v33 = vrot.slane %v1769_v42, 1 }
 0x173   :  { %v1807_v45 = vmul.f32 %v4084_v6, %v1778_v44  ;;  %v1825_v10 = vmul.f32 %v4087_v41, %v1779_v49  ;;  %v4356_v51 = vadd.f32 %v1745_v55, %v1740_v58  ;;  %v1861_v46 = vmul.f32 %v4948_v40, %v1769_v42 }
 0x174   :  { %v1797_v8 = vmul.f32 %v4067_v23, %v1769_v42  ;;  %v1808_v19 = vmul.f32 %v4084_v6, %v1779_v49  ;;  %v1826_v28 = vmul.f32 %v4087_v41, %v1780_v59  ;;  %v1897_v22 = vmul.f32 %v4949_v31, %v1785_v16 }
 0x175   :  { %v1814_v15 = vadd.f32 %v1807_v45, %v1796_v29  ;;  %v1915_v39 = vmul.f32 %v4950_v1, %v1786_v33  ;;  %v4365_v17 = vrot.slane %v4347_v0, 1  ;;  %v1844_v55 = vmul.f32 %v4951_v63, %v1778_v44 }
 0x176   :  { %v1815_v37 = vadd.f32 %v1808_v19, %v1797_v8  ;;  %v1862_v13 = vmul.f32 %v4948_v40, %v4347_v0  ;;  %v4372_v18 = vsel %vm19_vm0, %v1764_v52, 0.0  ;;  %v1880_v48 = vmul.f32 %v4952_v4, %v1768_v9 }
 0x177   :  { %v1832_v47 = vadd.f32 %v1825_v10, %v1814_v15  ;;  %v1781_v11 = vrot.slane %v4372_v18, 7  ;;  %v1798_v43 = vmul.f32 %v4067_v23, %v4347_v0  ;;  %v1898_v60 = vmul.f32 %v4949_v31, %v1786_v33 }
 0x178   :  { %v1833_v7 = vadd.f32 %v1826_v28, %v1815_v37  ;;  %v1916_v56 = vmul.f32 %v4950_v1, %v4365_v17  ;;  %v1809_v62 = vmul.f32 %v4084_v6, %v1780_v59  ;;  %v1934_v38 = vmul.f32 %v4119_v36, %v1785_v16 }
 0x179   :  { %v1850_v25 = vadd.f32 %v4953_v14, %v1832_v47  ;;  %v4385_v2 = vrot.slane %v4372_v18, 1  ;;  %v1827_v32 = vmul.f32 %v4087_v41, %v1781_v11  ;;  %v1845_v35 = vmul.f32 %v4951_v63, %v1779_v49  ;;  %v4954_v49 = vld [vmem:[#allocation11_spill] sm:$0xff] }
 0x17a   :  { %v1851_v5 = vadd.f32 %v1844_v55, %v1833_v7  ;;  %v1816_v12 = vadd.f32 %v1809_v62, %v1798_v43  ;;  %v1863_v3 = vmul.f32 %v4948_v40, %v4372_v18  ;;  %v4393_v34 = vsel %vm19_vm0, %v1765_v24, 0.0 }
 0x17b   :  { %v1868_v21 = vadd.f32 %v1861_v46, %v1850_v25  ;;  %v1799_v53 = vmul.f32 %v4067_v23, %v4372_v18  ;;  %v1810_v26 = vmul.f32 %v4084_v6, %v1781_v11  ;;  %v1881_v9 = vmul.f32 %v4952_v4, %v1769_v42 }
 0x17c   :  { %v1869_v58 = vadd.f32 %v1862_v13, %v1851_v5  ;;  %v1834_v30 = vadd.f32 %v1827_v32, %v1816_v12  ;;  %v4400_v44 = vrot.slane %v4393_v34, 7  ;;  %v1899_v52 = vmul.f32 %v4949_v31, %v4365_v17 }
 0x17d   :  { %v1886_v16 = vadd.f32 %v4954_v49, %v1868_v21  ;;  %v1917_v29 = vmul.f32 %v4950_v1, %v4385_v2  ;;  %v1817_v24 = vadd.f32 %v1810_v26, %v1799_v53  ;;  %v1846_v8 = vmul.f32 %v4951_v63, %v1780_v59 }
 0x17e   :  { %v1887_v45 = vadd.f32 %v1880_v48, %v1869_v58  ;;  %v1852_v10 = vadd.f32 %v1845_v35, %v1834_v30  ;;  %v1828_v46 = vmul.f32 %v4087_v41, %v4400_v44  ;;  %v1935_v19 = vmul.f32 %v4119_v36, %v1786_v33 }
 0x17f   :  { %v1904_v42 = vadd.f32 %v1897_v22, %v1886_v16  ;;  %v4412_v28 = vrot.slane %v4393_v34, 1  ;;  %v1864_v15 = vmul.f32 %v4948_v40, %v4393_v34  ;;  %v4418_v47 = vsel %vm19_vm0, %v1766_v50, 0.0 }
 0x180   :  { %v1905_v37 = vadd.f32 %v1898_v60, %v1887_v45  ;;  %v1870_v55 = vadd.f32 %v1863_v3, %v1852_v10  ;;  %v1835_v13 = vadd.f32 %v1828_v46, %v1817_v24  ;;  %v1882_v59 = vmul.f32 %v4952_v4, %v4347_v0 }
 0x181   :  { %v1922_v48 = vadd.f32 %v1915_v39, %v1904_v42  ;;  %v1783_v22 = vrot.slane %v4418_v47, 7  ;;  %v1800_v33 = vmul.f32 %v4067_v23, %v4393_v34  ;;  %v1811_v60 = vmul.f32 %v4084_v6, %v4400_v44 }
 0x182   :  { %v1923_v43 = vadd.f32 %v1916_v56, %v1905_v37  ;;  %v1888_v7 = vadd.f32 %v1881_v9, %v1870_v55  ;;  %v1853_v62 = vadd.f32 %v1846_v8, %v1835_v13  ;;  %v1900_v50 = vmul.f32 %v4949_v31, %v4385_v2 }
 0x183   :  { %v1940_v14 = vadd.f32 %v4330_v61, %v1922_v48  ;;  %v1829_v39 = vmul.f32 %v4087_v41, %v1783_v22  ;;  %v1847_v0 = vmul.f32 %v4951_v63, %v1781_v11  ;;  %v1818_v12 = vadd.f32 %v1811_v60, %v1800_v33 }
 0x184   :  { %v1941_v25 = vadd.f32 %v1934_v38, %v1923_v43  ;;  %v1906_v32 = vadd.f32 %v1899_v52, %v1888_v7  ;;  %v1871_v5 = vadd.f32 %v1864_v15, %v1853_v62  ;;  %v1918_v56 = vmul.f32 %v4950_v1, %v4412_v28 }
 0x185   :  { %1947 = vst [vmem:[%s4712_s4 + $0x30] sm:$0xff] %v1940_v14  ;;  %v1865_v61 = vmul.f32 %v4948_v40, %v4418_v47  ;;  %v1979_v35 = vrot.slane %v4336_v27, 1  ;;  %v2001_v3 = vrot.slane %v4339_v54, 4  ;;  %v1836_v21 = vadd.f32 %v1829_v39, %v1818_v12 }
 0x186   :  { %1948 = vst [vmem:[%s4712_s4 + $0x70] sm:$0xff] %v1941_v25  ;;  %v1924_v11 = vadd.f32 %v1917_v29, %v1906_v32  ;;  %v1889_v38 = vadd.f32 %v1882_v59, %v1871_v5  ;;  %v1760_v53 = vmax.f32 %v4356_v51, 0.0  ;;  %v1936_v26 = vmul.f32 %v4119_v36, %v4365_v17 }
 0x187   :  { %v1883_v58 = vmul.f32 %v4952_v4, %v4372_v18  ;;  %v1801_v30 = vmul.f32 %v4067_v23, %v4418_v47  ;;  %v1812_v9 = vmul.f32 %v4084_v6, %v1783_v22  ;;  %v1854_v52 = vadd.f32 %v1847_v0, %v1836_v21 }
 0x188   :  { %v1942_v49 = vadd.f32 %v1935_v19, %v1924_v11  ;;  %v1907_v16 = vadd.f32 %v1900_v50, %v1889_v38  ;;  %v1767_v24 = vmin.f32 %v1760_v53, 6.0  ;;  %v1790_v29 = vrot.slane %v4418_v47, 1 }
 0x189   :  { %v1872_v17 = vadd.f32 %v1865_v61, %v1854_v52  ;;  %v1901_v18 = vmul.f32 %v4949_v31, %v4412_v28  ;;  %v1819_v8 = vadd.f32 %v1812_v9, %v1801_v30  ;;  %v1980_v42 = vadd.f32 %v1979_v35, %v4336_v27 }
 0x18a   :  { %1949 = vst [vmem:[%s4712_s4 + $0xb0] sm:$0xff] %v1942_v49  ;;  %v1925_v51 = vadd.f32 %v1918_v56, %v1907_v16  ;;  %v1774_v45 = vsel %vm19_vm0, %v1767_v24, 0.0  ;;  %v1919_v37 = vmul.f32 %v4950_v1, %v1790_v29  ;;  %v2002_v55 = vadd.f32 %v2001_v3, %v4339_v54  ;;  %v2016_v24 = vld [vmem:[%s4711_s2 + $0x7] sm:$0x1] }
 0x18b   :  { %v1784_v10 = vrot.slane %v1774_v45, 7  ;;  %v1802_v46 = vmul.f32 %v4067_v23, %v1774_v45  ;;  %v1890_v15 = vadd.f32 %v1883_v58, %v1872_v17  ;;  %v1848_v48 = vmul.f32 %v4951_v63, %v4400_v44 }
 0x18c   :  { %v1943_v19 = vadd.f32 %v1936_v26, %v1925_v51  ;;  %v1831_v33 = vmul.f32 0.0, %v4087_v41  ;;  %v1937_v27 = vmul.f32 %v4119_v36, %v4385_v2  ;;  %v2003_v43 = vrot.slane %v2002_v55, 2 }
 0x18d   :  { %v1830_v13 = vmul.f32 %v4087_v41, %v1784_v10  ;;  %v1813_v59 = vmul.f32 %v4084_v6, %v1784_v10  ;;  %v1908_v23 = vadd.f32 %v1901_v18, %v1890_v15  ;;  %v1866_v54 = vmul.f32 %v4948_v40, %v1774_v45  ;;  %v2286_v18 = vld [vmem:[%s4708_s0 + $0x38] sm:$0xff] }
 0x18e   :  { %1950 = vst [vmem:[%s4712_s4 + $0xf0] sm:$0xff] %v1943_v19  ;;  %v1849_v60 = vmul.f32 %v4951_v63, %v1783_v22  ;;  %v1867_v6 = vmul.f32 0.0, %v4948_v40  ;;  %v2004_v14 = vadd.f32 %v2003_v43, %v2002_v55  ;;  %v2007_v41 = vmul.f32 0.020408163, %v1980_v42  ;;  %v2287_v10 = vld [vmem:[%s4708_s0 + $0x78] sm:$0xff]  ;;  %v4955_v55 = vld [vmem:[#allocation31_spill] sm:$0xff] }
 0x18f   :  { %v1837_v7 = vadd.f32 %v1830_v13, %v1819_v8  ;;  %v1820_v62 = vadd.f32 %v1813_v59, %v1802_v46  ;;  %v1926_v44 = vadd.f32 %v1919_v37, %v1908_v23  ;;  %v1791_v50 = vrot.slane %v1774_v45, 1  ;;  %v2066_v8 = vld [vmem:[%s4709_s3 + $0x1c] sm:$0x7] }
 0x190   :  { %v1884_v0 = vmul.f32 %v4952_v4, %v4393_v34  ;;  %v2005_v2 = vrot.slane %v2004_v14, 1  ;;  %v1902_v12 = vmul.f32 %v4949_v31, %v1790_v29  ;;  %v1885_v63 = vmul.f32 %v4952_v4, %v4418_v47  ;;  %v2067_v42 = vld [vmem:[%s4709_s3 + $0x3c] sm:$0x7] }
 0x191   :  { %v1855_v39 = vadd.f32 %v1848_v48, %v1837_v7  ;;  %v1838_v25 = vadd.f32 %v1831_v33, %v1820_v62  ;;  %v1944_v32 = vadd.f32 %v1937_v27, %v1926_v44  ;;  %v2009_v22 = vmul.f32 %v2007_v41, %v2007_v41  ;;  %v2068_v19 = vld [vmem:[%s4709_s3 + $0x5c] sm:$0x7]  ;;  %v4956_v48 = vld [vmem:[#allocation19_spill] sm:$0xff] }
 0x192   :  { %v2006_v40 = vadd.f32 %v2005_v2, %v2004_v14  ;;  %v1920_v35 = vmul.f32 %v4950_v1, %v1791_v50  ;;  %v1903_v3 = vmul.f32 %v4949_v31, %v1791_v50  ;;  %v1938_v21 = vmul.f32 %v4119_v36, %v4412_v28  ;;  %v2288_v15 = vld [vmem:[%s4708_s0 + $0xb8] sm:$0xff] }
 0x193   :  { %v1873_v5 = vadd.f32 %v1866_v54, %v1855_v39  ;;  %v1856_v56 = vadd.f32 %v1849_v60, %v1838_v25  ;;  %1951 = vst [vmem:[%s4712_s4 + $0x130] sm:$0xff] %v1944_v32  ;;  %v1921_v4 = vmul.f32 0.0, %v4950_v1  ;;  %v1939_v30 = vmul.f32 %v4119_v36, %v1790_v29  ;;  %v2012_v1 = vld [vmem:[%s4710_s1 + $0x7] sm:$0x1]  ;;  %v4957_v33 = vld [vmem:[#allocation21_spill] sm:$0xff] }
 0x194   :  { %v2008_v11 = vmul.f32 0.020408163, %v2006_v40  ;;  %v4958_v27 = vld [vmem:[#allocation29_spill] sm:$0xff]  ;;  %v4959_v54 = vld [vmem:[#allocation2_spill] sm:$0xff]  ;;  %v4531_v60 = vrot.slane %v2067_v42, %v4915_v57  ;;  %v4534_v44 = vrot.slane %v2068_v19, %v4915_v57 }
 0x195   :  { %v1891_v61 = vadd.f32 %v1884_v0, %v1873_v5  ;;  %v1874_v34 = vadd.f32 %v1867_v6, %v1856_v56  ;;  %v4528_v62 = vrot.slane %v2067_v42, %v4959_v54  ;;  %v4537_v6 = vrot.slane %v2066_v8, %v4915_v57 }
 0x196   :  { %v2010_v47 = vsub.f32 %v2008_v11, %v2009_v22  ;;  %v4540_v0 = vrot.slane %v2066_v8, %v4959_v54  ;;  %v4544_v22 = vrot.slane %v2068_v19, %v4959_v54 }
 0x197   :  { %v1909_v38 = vadd.f32 %v1902_v12, %v1891_v61  ;;  %v1892_v53 = vadd.f32 %v1885_v63, %v1874_v34  ;;  %v2134_v40 = vmul.f32 0.0, %v4537_v6 }
 0x198   :  { %v2011_v9 = vmax.f32 %v2010_v47, 0.0 }
 0x199   :  { %v1927_v26 = vadd.f32 %v1920_v35, %v1909_v38  ;;  %v1910_v58 = vadd.f32 %v1903_v3, %v1892_v53 }
 0x19a   :  { %v2013_v52 = vadd.f32 1e-05, %v2011_v9 }
 0x19b   :  { %v1945_v49 = vadd.f32 %v1938_v21, %v1927_v26  ;;  %v1928_v16 = vadd.f32 %v1921_v4, %v1910_v58  ;;  %v2170_v21 = vmul.f32 0.0, %v4540_v0 }
 0x19c   :  { %2263 = vrsqrt.f32 %v2013_v52 }
 0x19d   :  { %1952 = vst [vmem:[%s4712_s4 + $0x170] sm:$0xff] %v1945_v49  ;;  %v1946_v31 = vadd.f32 %v1939_v30, %v1928_v16 }
 0x19f   :  { %1953 = vst [vmem:[%s4712_s4 + $0x1b0] sm:$0xff] %v1946_v31 }
 0x1a6   :  { %v2264_v28 = vpop.eup %2263 }
 0x1a7   :  { %v2015_v36 = vmul.f32 %v2264_v28, %v2012_v1 }
 0x1a9   :  { %v2017_v29 = vmul.f32 %v2015_v36, %v2007_v41  ;;  %v2023_v51 = vrot.slane %v2015_v36, %v4915_v57 }
 0x1ab   :  { %v2018_v17 = vsub.f32 %v2016_v24, %v2017_v29  ;;  %v2025_v45 = vmul.f32 %v2286_v18, %v2023_v51  ;;  %v2026_v46 = vmul.f32 %v2287_v10, %v2023_v51  ;;  %v2027_v37 = vmul.f32 %v2288_v15, %v2023_v51 }
 0x1ac   :  { %v2028_v13 = vmul.f32 %v2023_v51, %v4955_v55  ;;  %v2029_v59 = vmul.f32 %v2023_v51, %v4956_v48  ;;  %v2030_v23 = vmul.f32 %v2023_v51, %v4957_v33  ;;  %v2031_v43 = vmul.f32 %v2023_v51, %v4958_v27 }
 0x1ad   :  { %v2036_v7 = vrot.slane %v2018_v17, %v4915_v57  ;;  %v4960_v57 = vld [vmem:[#allocation4_spill] sm:$0xff] }
 0x1ae   :  { %v4547_v61 = vrot.slane %v2066_v8, %v4960_v57  ;;  %v4551_v53 = vrot.slane %v2067_v42, %v4960_v57  ;;  %v4558_v30 = vrot.slane %v2068_v19, %v4960_v57 }
 0x1af   :  { %v2038_v14 = vadd.f32 %v2036_v7, %v2025_v45  ;;  %v2039_v41 = vadd.f32 %v2036_v7, %v2026_v46  ;;  %v2040_v50 = vadd.f32 %v2036_v7, %v2027_v37  ;;  %v2041_v39 = vadd.f32 %v2036_v7, %v2028_v13 }
 0x1b0   :  { %v2042_v25 = vadd.f32 %v2036_v7, %v2029_v59  ;;  %v2043_v32 = vadd.f32 %v2036_v7, %v2030_v23  ;;  %v2044_v2 = vadd.f32 %v2036_v7, %v2031_v43  ;;  %v4565_v31 = vmul.f32 0.0, %v4547_v61 }
 0x1b1   :  { %v2045_v5 = vmax.f32 %v2038_v14, 0.0  ;;  %v2046_v12 = vmax.f32 %v2039_v41, 0.0  ;;  %v2047_v56 = vmax.f32 %v2040_v50, 0.0  ;;  %v2048_v63 = vmax.f32 %v2041_v39, 0.0 }
 0x1b2   :  { %v2049_v35 = vmax.f32 %v2042_v25, 0.0  ;;  %v2050_v38 = vmax.f32 %v2043_v32, 0.0  ;;  %v2051_v47 = vmax.f32 %v2044_v2, 0.0 }
 0x1b3   :  { %v2052_v34 = vmin.f32 %v2045_v5, 6.0  ;;  %v2053_v3 = vmin.f32 %v2046_v12, 6.0  ;;  %v2054_v11 = vmin.f32 %v2047_v56, 6.0  ;;  %v2055_v4 = vmin.f32 %v2048_v63, 6.0 }
 0x1b4   :  { %v2056_v36 = vmin.f32 %v2049_v35, 6.0  ;;  %v2057_v24 = vmin.f32 %v2050_v38, 6.0  ;;  %v4575_v18 = vmin.f32 %v2051_v47, 6.0 }
 0x1b5   :  { %v2059_v26 = vsel %vm19_vm0, %v2052_v34, 0.0  ;;  %v2060_v58 = vsel %vm19_vm0, %v2053_v3, 0.0  ;;  %v4562_v9 = vsel %vm19_vm0, %v2054_v11, 0.0  ;;  %v4573_v17 = vsel %vm19_vm0, %v2055_v4, 0.0 }
 0x1b6   :  { %v2069_v49 = vrot.slane %v2059_v26, 7  ;;  %v2070_v16 = vrot.slane %v2060_v58, 7  ;;  %v2076_v52 = vrot.slane %v2059_v26, 1  ;;  %v2087_v1 = vmul.f32 %v4528_v62, %v2059_v26 }
 0x1b7   :  { %v2071_v28 = vrot.slane %v4562_v9, 7  ;;  %v2077_v45 = vrot.slane %v2060_v58, 1  ;;  %v2088_v10 = vmul.f32 %v4528_v62, %v2060_v58  ;;  %v2152_v19 = vmul.f32 %v4544_v22, %v2060_v58 }
 0x1b8   :  { %v2098_v29 = vmul.f32 %v4531_v60, %v2069_v49  ;;  %v2116_v51 = vmul.f32 %v4534_v44, %v2070_v16  ;;  %v2099_v46 = vmul.f32 %v4531_v60, %v2070_v16  ;;  %v2188_v15 = vmul.f32 %v4551_v53, %v2076_v52 }
 0x1b9   :  { %v2117_v8 = vmul.f32 %v4534_v44, %v2071_v28  ;;  %v4583_v37 = vrot.slane %v4562_v9, 1  ;;  %v2206_v55 = vmul.f32 %v4558_v30, %v2077_v45  ;;  %v2135_v48 = vmul.f32 %v4537_v6, %v2069_v49 }
 0x1ba   :  { %v2105_v42 = vadd.f32 %v2098_v29, %v2087_v1  ;;  %v2106_v13 = vadd.f32 %v2099_v46, %v2088_v10  ;;  %v2072_v59 = vrot.slane %v4573_v17, 7  ;;  %v2153_v23 = vmul.f32 %v4544_v22, %v4562_v9 }
 0x1bb   :  { %v2089_v27 = vmul.f32 %v4528_v62, %v4562_v9  ;;  %v2100_v43 = vmul.f32 %v4531_v60, %v2071_v28  ;;  %v2171_v54 = vmul.f32 %v4540_v0, %v2059_v26  ;;  %v2189_v14 = vmul.f32 %v4551_v53, %v2077_v45 }
 0x1bc   :  { %v2123_v33 = vadd.f32 %v2116_v51, %v2105_v42  ;;  %v2124_v7 = vadd.f32 %v2117_v8, %v2106_v13  ;;  %v2118_v41 = vmul.f32 %v4534_v44, %v2072_v59  ;;  %v2207_v39 = vmul.f32 %v4558_v30, %v4583_v37 }
 0x1bd   :  { %v2107_v25 = vadd.f32 %v2100_v43, %v2089_v27  ;;  %v2136_v32 = vmul.f32 %v4537_v6, %v2070_v16  ;;  %v2225_v5 = vmul.f32 %v4547_v61, %v2076_v52  ;;  %v4601_v12 = vrot.slane %v4573_v17, 1 }
 0x1be   :  { %v2141_v50 = vadd.f32 %v2134_v40, %v2123_v33  ;;  %v2142_v2 = vadd.f32 %v2135_v48, %v2124_v7  ;;  %v4605_v56 = vsel %vm19_vm0, %v2056_v36, 0.0  ;;  %v2154_v40 = vmul.f32 %v4544_v22, %v4573_v17 }
 0x1bf   :  { %v2125_v57 = vadd.f32 %v2118_v41, %v2107_v25  ;;  %v2073_v35 = vrot.slane %v4605_v56, 7  ;;  %v2172_v3 = vmul.f32 %v4540_v0, %v2060_v58  ;;  %v2090_v11 = vmul.f32 %v4528_v62, %v4573_v17 }
 0x1c0   :  { %v2159_v63 = vadd.f32 %v2152_v19, %v2141_v50  ;;  %v2160_v34 = vadd.f32 %v2153_v23, %v2142_v2  ;;  %v2101_v38 = vmul.f32 %v4531_v60, %v2072_v59  ;;  %v2190_v26 = vmul.f32 %v4551_v53, %v4583_v37 }
 0x1c1   :  { %v2143_v47 = vadd.f32 %v2136_v32, %v2125_v57  ;;  %v2119_v49 = vmul.f32 %v4534_v44, %v2073_v35  ;;  %v2208_v52 = vmul.f32 %v4558_v30, %v4601_v12  ;;  %v2137_v36 = vmul.f32 %v4537_v6, %v2071_v28 }
 0x1c2   :  { %v2177_v4 = vadd.f32 %v2170_v21, %v2159_v63  ;;  %v2178_v16 = vadd.f32 %v2171_v54, %v2160_v34  ;;  %v2108_v1 = vadd.f32 %v2101_v38, %v2090_v11  ;;  %v2226_v51 = vmul.f32 %v4547_v61, %v2077_v45 }
 0x1c3   :  { %v2161_v29 = vadd.f32 %v2154_v40, %v2143_v47  ;;  %v2155_v21 = vmul.f32 %v4544_v22, %v4605_v56  ;;  %v4625_v8 = vsel %vm19_vm0, %v2057_v24, 0.0  ;;  %v2091_v42 = vmul.f32 %v4528_v62, %v4605_v56 }
 0x1c4   :  { %v2195_v58 = vadd.f32 %v2188_v15, %v2177_v4  ;;  %v2196_v10 = vadd.f32 %v2189_v14, %v2178_v16  ;;  %v2126_v46 = vadd.f32 %v2119_v49, %v2108_v1  ;;  %v4630_v28 = vrot.slane %v4605_v56, 1 }
 0x1c5   :  { %v2179_v13 = vadd.f32 %v2172_v3, %v2161_v29  ;;  %v2074_v15 = vrot.slane %v4625_v8, 7  ;;  %v2173_v33 = vmul.f32 %v4540_v0, %v4562_v9  ;;  %v2102_v23 = vmul.f32 %v4531_v60, %v2073_v35 }
 0x1c6   :  { %v2213_v19 = vadd.f32 %v2206_v55, %v2195_v58  ;;  %v2214_v45 = vadd.f32 %v2207_v39, %v2196_v10  ;;  %v2144_v48 = vadd.f32 %v2137_v36, %v2126_v46  ;;  %v2191_v43 = vmul.f32 %v4551_v53, %v4601_v12 }
 0x1c7   :  { %v2197_v27 = vadd.f32 %v2190_v26, %v2179_v13  ;;  %v2120_v55 = vmul.f32 %v4534_v44, %v2074_v15  ;;  %v2109_v14 = vadd.f32 %v2102_v23, %v2091_v42  ;;  %v2138_v41 = vmul.f32 %v4537_v6, %v2072_v59 }
 0x1c8   :  { %v2231_v24 = vadd.f32 %v4565_v31, %v2213_v19  ;;  %v2232_v7 = vadd.f32 %v2225_v5, %v2214_v45  ;;  %v2162_v54 = vadd.f32 %v2155_v21, %v2144_v48  ;;  %v2209_v31 = vmul.f32 %v4558_v30, %v4630_v28 }
 0x1c9   :  { %v2215_v9 = vadd.f32 %v2208_v52, %v2197_v27  ;;  %v2156_v50 = vmul.f32 %v4544_v22, %v4625_v8  ;;  %v2127_v25 = vadd.f32 %v2120_v55, %v2109_v14  ;;  %v2065_v59 = vsel %vm19_vm0, %v4575_v18, 0.0 }
 0x1ca   :  { %2238 = vst.msk [vmem:[%s4712_s4 + $0x38] sm:$0xff] %vm1961_vm1, %v2231_v24  ;;  %2239 = vst.msk [vmem:[%s4712_s4 + $0x78] sm:$0xff] %vm1961_vm1, %v2232_v7  ;;  %v2180_v39 = vadd.f32 %v2173_v33, %v2162_v54  ;;  %v2092_v32 = vmul.f32 %v4528_v62, %v4625_v8  ;;  %v2227_v5 = vmul.f32 %v4547_v61, %v4583_v37  ;;  %v2075_v63 = vrot.slane %v2065_v59, 7 }
 0x1cb   :  { %v2233_v2 = vadd.f32 %v2226_v51, %v2215_v9  ;;  %v2145_v40 = vadd.f32 %v2138_v41, %v2127_v25  ;;  %v2174_v34 = vmul.f32 %v4540_v0, %v4573_v17  ;;  %v2103_v3 = vmul.f32 %v4531_v60, %v2074_v15 }
 0x1cc   :  { %v2198_v57 = vadd.f32 %v2191_v43, %v2180_v39  ;;  %v2081_v20 = vrot.slane %v4625_v8, 1  ;;  %v2192_v18 = vmul.f32 %v4551_v53, %v4630_v28  ;;  %v2093_v37 = vmul.f32 %v4528_v62, %v2065_v59 }
 0x1cd   :  { %2240 = vst.msk [vmem:[%s4712_s4 + $0xb8] sm:$0xff] %vm1961_vm1, %v2233_v2  ;;  %v2121_v11 = vmul.f32 %v4534_v44, %v2075_v63  ;;  %v2163_v4 = vadd.f32 %v2156_v50, %v2145_v40  ;;  %v2110_v47 = vadd.f32 %v2103_v3, %v2092_v32  ;;  %v2139_v17 = vmul.f32 %v4537_v6, %v2073_v35 }
 0x1ce   :  { %v2216_v38 = vadd.f32 %v2209_v31, %v2198_v57  ;;  %v2210_v26 = vmul.f32 %v4558_v30, %v2081_v20  ;;  %v2104_v49 = vmul.f32 %v4531_v60, %v2075_v63  ;;  %v2122_v16 = vmul.f32 0.0, %v4534_v44 }
 0x1cf   :  { %v2181_v1 = vadd.f32 %v2174_v34, %v2163_v4  ;;  %v2128_v36 = vadd.f32 %v2121_v11, %v2110_v47  ;;  %v2157_v58 = vmul.f32 %v4544_v22, %v2065_v59  ;;  %v2140_v62 = vmul.f32 %v4537_v6, %v2074_v15 }
 0x1d0   :  { %v2234_v52 = vadd.f32 %v2227_v5, %v2216_v38  ;;  %v2111_v29 = vadd.f32 %v2104_v49, %v2093_v37  ;;  %v2228_v51 = vmul.f32 %v4547_v61, %v4601_v12  ;;  %v2175_v44 = vmul.f32 %v4540_v0, %v4605_v56 }
 0x1d1   :  { %v2199_v35 = vadd.f32 %v2192_v18, %v2181_v1  ;;  %v2146_v60 = vadd.f32 %v2139_v17, %v2128_v36  ;;  %v2082_v21 = vrot.slane %v2065_v59, 1  ;;  %v2158_v46 = vmul.f32 0.0, %v4544_v22 }
 0x1d2   :  { %2241 = vst.msk [vmem:[%s4712_s4 + $0xf8] sm:$0xff] %vm1961_vm1, %v2234_v52  ;;  %v2129_v10 = vadd.f32 %v2122_v16, %v2111_v29  ;;  %v2193_v6 = vmul.f32 %v4551_v53, %v2081_v20  ;;  %v2176_v15 = vmul.f32 %v4540_v0, %v4625_v8  ;;  %v2229_v56 = vmul.f32 %v4547_v61, %v4630_v28 }
 0x1d3   :  { %v2217_v42 = vadd.f32 %v2210_v26, %v2199_v35  ;;  %v2164_v19 = vadd.f32 %v2157_v58, %v2146_v60  ;;  %v2211_v12 = vmul.f32 %v4558_v30, %v2082_v21  ;;  %v2194_v23 = vmul.f32 %v4551_v53, %v2082_v21 }
 0x1d4   :  { %v2147_v13 = vadd.f32 %v2140_v62, %v2129_v10  ;;  %v2212_v27 = vmul.f32 0.0, %v4558_v30  ;;  %v2230_v43 = vmul.f32 %v4547_v61, %v2081_v20 }
 0x1d5   :  { %v2235_v45 = vadd.f32 %v2228_v51, %v2217_v42  ;;  %v2182_v48 = vadd.f32 %v2175_v44, %v2164_v19 }
 0x1d6   :  { %v2165_v33 = vadd.f32 %v2158_v46, %v2147_v13 }
 0x1d7   :  { %2242 = vst.msk [vmem:[%s4712_s4 + $0x138] sm:$0xff] %vm1961_vm1, %v2235_v45  ;;  %v2200_v22 = vadd.f32 %v2193_v6, %v2182_v48 }
 0x1d8   :  { %v2183_v24 = vadd.f32 %v2176_v15, %v2165_v33 }
 0x1d9   :  { %v2218_v0 = vadd.f32 %v2211_v12, %v2200_v22 }
 0x1da   :  { %v2201_v8 = vadd.f32 %v2194_v23, %v2183_v24 }
 0x1db   :  { %v2236_v55 = vadd.f32 %v2229_v56, %v2218_v0 }
 0x1dc   :  { %v2219_v7 = vadd.f32 %v2212_v27, %v2201_v8 }
 0x1dd   :  { %2243 = vst.msk [vmem:[%s4712_s4 + $0x178] sm:$0xff] %vm1961_vm1, %v2236_v55 }
 0x1de   :  { %v2237_v53 = vadd.f32 %v2230_v43, %v2219_v7 }
 0x1e0   :  { %2244 = vst.msk [vmem:[%s4712_s4 + $0x1b8] sm:$0xff] %vm1961_vm1, %v2237_v53 }

</bundles_post_ra>
